<compile_context>
chip_gen: v6e
topology: v6e:2x2x1
jax: 0.10.0
libtpu: 0.0.40
codegen_flags: <defaults>
</compile_context>

<pallas_src>
import functools

import jax
import jax.numpy as jnp
from jax.experimental import pallas as pl
from jax.experimental.pallas import tpu as pltpu


def _attention_pool_kernel(tok_ref, wq_ref, wk_ref, wv_ref, wc_ref,
                           bq_ref, bv_ref, bc_ref, o_ref, *, num_heads: int):
    tok = tok_ref[...]                                   # (Nb, C, L) compute dtype
    Nb, C, L = tok.shape
    H = num_heads
    hd = C // H
    scale = float(hd) ** -0.5
    cdt = tok.dtype

    # Pooled (mean) token over the flattened spatial positions, in f32.
    mean = jnp.mean(tok.astype(jnp.float32), axis=-1)    # (Nb, C)

    # q projection of the pooled token (tiny matmul); post-bias scaling as in
    # F.multi_head_attention_forward.
    q = (jnp.dot(mean.astype(cdt), wq_ref[...],
                 preferred_element_type=jnp.float32) + bq_ref[...]) * scale   # (Nb, C)

    # Head mask (H, C): channel c belongs to head c // hd.  Built once per
    # grid step and only ever applied to SMALL (Nb, H, C) tensors.
    c_idx = jax.lax.broadcasted_iota(jnp.int32, (H, C), 1)
    h_idx = jax.lax.broadcasted_iota(jnp.int32, (H, C), 0)
    maskf = ((c_idx >= h_idx * hd) & (c_idx < (h_idx + 1) * hd)).astype(jnp.float32)

    # Fold the k projection onto the (block-diagonal) query:
    #   A[n, h, c] = sum_{o in head h} q[n, o] * Wk[o, c]
    q_bd = (q[:, None, :] * maskf[None, :, :]).reshape(Nb * H, C)
    A = jnp.dot(q_bd.astype(cdt), wk_ref[...],
                preferred_element_type=jnp.float32).reshape(Nb, H, C)         # (Nb, H, C)

    # Scores of the pooled query against all L spatial keys, all heads in one
    # batched MXU matmul.  (k in-proj bias is softmax-invariant -> dropped.)
    s = jnp.einsum('nhc,ncl->nhl', A.astype(cdt), tok,
                   preferred_element_type=jnp.float32)                        # (Nb, H, L)
    # Score of the prepended mean token == mean of the spatial scores.
    s0 = jnp.mean(s, axis=-1, keepdims=True)                                  # (Nb, H, 1)

    # Numerically stable softmax over the (L + 1) keys, in f32.
    m = jnp.maximum(jnp.max(s, axis=-1, keepdims=True), s0)
    e0 = jnp.exp(s0 - m)
    er = jnp.exp(s - m)
    denom = e0 + jnp.sum(er, axis=-1, keepdims=True)
    inv = 1.0 / denom        # exact; approx reciprocal would eat the 1e-4 budget
    p0 = e0 * inv                                                             # (Nb, H, 1)
    p = er * inv                                                              # (Nb, H, L)

    # Mean token's value contribution folded onto the spatial tokens
    # (t_mean = (1/L) sum_l t_l), then weighted sum + v projection in
    # weight space: o = (P @ tok^T) @ Wv^T.
    p_adj = p + p0 * (1.0 / L)                                                # (Nb, H, L)
    B = jnp.einsum('nhl,ncl->nhc', p_adj.astype(cdt), tok,
                   preferred_element_type=jnp.float32)                        # (Nb, H, C)
    o_full = jnp.dot(B.reshape(Nb * H, C).astype(cdt), wv_ref[...],
                     preferred_element_type=jnp.float32).reshape(Nb, H, C)

    # Keep only head h's own output channels; v bias passes through unchanged
    # because the attention weights sum to 1.
    out = jnp.sum(o_full * maskf[None, :, :], axis=1) + bv_ref[...]           # (Nb, C)

    # Output projection (c_proj).
    res = jnp.dot(out.astype(cdt), wc_ref[...],
                  preferred_element_type=jnp.float32) + bc_ref[...]
    o_ref[...] = res.astype(o_ref.dtype)


def _default_batch_block(n, c, l, itemsize):
    """Pick a batch tile: ~4 MiB token block (x2 for double-buffering) so the
    pipeline fits comfortably in the 16-32 MiB default scoped VMEM on
    v5e/v6e/v7x, while keeping the (Nb, C) output block 8-row aligned."""
    per_row = max(c * l * itemsize, 1)
    nb = max(1, (4 * 1024 * 1024) // per_row)
    if nb >= n:
        return n
    return max(8, (nb // 8) * 8)


def attention_pool_2d(x, q_proj, k_proj, v_proj, in_bias, c_w, c_b, num_heads,
                      *, batch_block=None, compute_dtype=None):
    """Pallas implementation of AttentionPool2d.forward.

    x:        (N, C, H, W) (NCHW like PyTorch)
    q/k/v:    (C, C) torch-convention weights (applied as x @ W.T)
    in_bias:  (3*C,)   c_w: (C, C)   c_b: (C,)
    returns:  (N, C) -- attention output at the pooled (mean) token.
    """
    N, C, Hs, Ws = x.shape
    L = Hs * Ws
    assert C % num_heads == 0

    cdt = jnp.dtype(compute_dtype) if compute_dtype is not None else x.dtype
    tok = x.reshape(N, C, L).astype(cdt)       # free reshape; no HBM transpose

    wq = q_proj.T.astype(cdt)   # q   = mean @ q_proj.T
    wk = k_proj.astype(cdt)     # A   = blockdiag(q) @ k_proj   (no transpose needed)
    wv = v_proj.T.astype(cdt)   # o   = B @ v_proj.T
    wc = c_w.T.astype(cdt)      # res = out @ c_w.T
    bq = in_bias[:C].reshape(1, C).astype(jnp.float32)
    # k in-proj bias is softmax-invariant (constant logit shift) -> not passed.
    bv = in_bias[2 * C:].reshape(1, C).astype(jnp.float32)
    bc = c_b.reshape(1, C).astype(jnp.float32)

    if batch_block is None:
        batch_block = _default_batch_block(N, C, L, tok.dtype.itemsize)
    batch_block = min(batch_block, N)
    grid = (pl.cdiv(N, batch_block),)

    kernel = functools.partial(_attention_pool_kernel, num_heads=num_heads)
    wspec = pl.BlockSpec((C, C), lambda i: (0, 0))   # resident weights
    bspec = pl.BlockSpec((1, C), lambda i: (0, 0))   # resident biases
    return pl.pallas_call(
        kernel,
        out_shape=jax.ShapeDtypeStruct((N, C), x.dtype),
        grid=grid,
        in_specs=[pl.BlockSpec((batch_block, C, L), lambda i: (i, 0, 0)),
                  wspec, wspec, wspec, wspec, bspec, bspec, bspec],
        out_specs=pl.BlockSpec((batch_block, C), lambda i: (i, 0)),
        compiler_params=pltpu.CompilerParams(
            dimension_semantics=("parallel",),
            vmem_limit_bytes=32 * 1024 * 1024),
    )(tok, wq, wk, wv, wc, bq, bv, bc)


def attention_pool_2d_ref(x, q_proj, k_proj, v_proj, in_bias, c_w, c_b, num_heads):
    """Pure-JAX reference mirroring F.multi_head_attention_forward semantics."""
    N, C, H, W = x.shape
    L = H * W
    hd = C // num_heads
    t = x.reshape(N, C, L).transpose(2, 0, 1)                      # (L, N, C)
    t = jnp.concatenate([t.mean(axis=0, keepdims=True), t], 0)     # (S, N, C)
    S = L + 1
    bq, bk, bv = in_bias[:C], in_bias[C:2 * C], in_bias[2 * C:]
    q = (t @ q_proj.T + bq) * hd ** -0.5
    k = t @ k_proj.T + bk
    v = t @ v_proj.T + bv
    qh = q.reshape(S, N * num_heads, hd).transpose(1, 0, 2)
    kh = k.reshape(S, N * num_heads, hd).transpose(1, 0, 2)
    vh = v.reshape(S, N * num_heads, hd).transpose(1, 0, 2)
    attn = jax.nn.softmax(jnp.einsum('bqd,bkd->bqk', qh, kh), axis=-1)
    o = jnp.einsum('bqk,bkd->bqd', attn, vh)
    o = o.transpose(1, 0, 2).reshape(S, N, C)
    o = o @ c_w.T + c_b
    return o[0]


if __name__ == "__main__":
    key = jax.random.PRNGKey(0)
    N, C, Hs, Ws = 16, 128, 8, 8
    num_heads = 8
    std = C ** -0.5

    kx, kq, kk, kv, kc, kb, ki = jax.random.split(key, 7)
    x = jax.random.normal(kx, (N, C, Hs, Ws), jnp.float32)
    # Module-shaped synthetic parameters (std = embed_dim**-0.5).
    q_proj = std * jax.random.normal(kq, (C, C), jnp.float32)
    k_proj = std * jax.random.normal(kk, (C, C), jnp.float32)
    v_proj = std * jax.random.normal(kv, (C, C), jnp.float32)
    c_w = std * jax.random.normal(kc, (C, C), jnp.float32)
    c_b = std * jax.random.normal(kb, (C,), jnp.float32)
    # The module zero-inits in_bias; use a non-zero one here so the kernel's
    # bias algebra (dropped k-bias, folded v-bias) is also verified.
    in_bias = 0.1 * jax.random.normal(ki, (3 * C,), jnp.float32)

    out = attention_pool_2d(x, q_proj, k_proj, v_proj, in_bias, c_w, c_b,
                            num_heads, batch_block=8)     # grid of 2 batch tiles
    out = jax.block_until_ready(out)

    ref = attention_pool_2d_ref(x, q_proj, k_proj, v_proj, in_bias, c_w, c_b, num_heads)
    assert out.shape == (N, C)
    max_err = float(jnp.max(jnp.abs(out - ref)))
    assert jnp.allclose(out, ref, atol=1e-4, rtol=1e-4), max_err
    print("KERNEL_OK")
</pallas_src>

<mosaic_0001>
module attributes {stable_mosaic.version = 11 : i64} {
  func.func @_attention_pool_kernel(%arg0: i32, %arg1: memref<8x128x64xf32, #tpu.memory_space<vmem>>, %arg2: memref<128x128xf32, #tpu.memory_space<vmem>>, %arg3: memref<128x128xf32, #tpu.memory_space<vmem>>, %arg4: memref<128x128xf32, #tpu.memory_space<vmem>>, %arg5: memref<128x128xf32, #tpu.memory_space<vmem>>, %arg6: memref<1x128xf32, #tpu.memory_space<vmem>>, %arg7: memref<1x128xf32, #tpu.memory_space<vmem>>, %arg8: memref<1x128xf32, #tpu.memory_space<vmem>>, %arg9: memref<8x128xf32, #tpu.memory_space<vmem>>) attributes {dimension_semantics = [#tpu.dimension_semantics<parallel>], iteration_bounds = array<i64: 2>, scalar_prefetch = 0 : i64, scratch_operands = 0 : i64, tpu.core_type = #tpu.core_type<tc>, window_params = [{transform_indices = @transform_0, window_bounds = array<i64: 8, 128, 64>}, {pipeline_mode = #tpu.pipeline_mode<synchronous>, transform_indices = @transform_1, window_bounds = array<i64: 128, 128>}, {pipeline_mode = #tpu.pipeline_mode<synchronous>, transform_indices = @transform_2, window_bounds = array<i64: 128, 128>}, {pipeline_mode = #tpu.pipeline_mode<synchronous>, transform_indices = @transform_3, window_bounds = array<i64: 128, 128>}, {pipeline_mode = #tpu.pipeline_mode<synchronous>, transform_indices = @transform_4, window_bounds = array<i64: 128, 128>}, {pipeline_mode = #tpu.pipeline_mode<synchronous>, transform_indices = @transform_5, window_bounds = array<i64: 1, 128>}, {pipeline_mode = #tpu.pipeline_mode<synchronous>, transform_indices = @transform_6, window_bounds = array<i64: 1, 128>}, {pipeline_mode = #tpu.pipeline_mode<synchronous>, transform_indices = @transform_7, window_bounds = array<i64: 1, 128>}, {transform_indices = @transform_8, window_bounds = array<i64: 8, 128>}]} {
    %c0 = arith.constant 0 : index
    %c0_0 = arith.constant 0 : index
    %c0_1 = arith.constant 0 : index
    %0 = vector.load %arg1[%c0, %c0_0, %c0_1] : memref<8x128x64xf32, #tpu.memory_space<vmem>>, vector<8x128x64xf32>
    %cst = arith.constant dense<0.000000e+00> : vector<8x128xf32>
    %1 = vector.multi_reduction <add>, %0, %cst [2] : vector<8x128x64xf32> to vector<8x128xf32>
    %cst_2 = arith.constant 6.400000e+01 : f32
    %2 = vector.broadcast %cst_2 : f32 to vector<8x128xf32>
    %3 = arith.divf %1, %2 : vector<8x128xf32>
    %c0_3 = arith.constant 0 : index
    %c0_4 = arith.constant 0 : index
    %4 = vector.load %arg2[%c0_3, %c0_4] : memref<128x128xf32, #tpu.memory_space<vmem>>, vector<128x128xf32>
    %cst_5 = arith.constant dense<0.000000e+00> : vector<8x128xf32>
    %5 = tpu.matmul %3, %4, %cst_5 {dimension_numbers = #tpu.dot_dimension_numbers<[1], [0], [0], [1], [0, 0, 1, 1], [], []>} : vector<8x128xf32>, vector<128x128xf32>, vector<8x128xf32> -> vector<8x128xf32>
    %c0_6 = arith.constant 0 : index
    %c0_7 = arith.constant 0 : index
    %6 = vector.load %arg6[%c0_6, %c0_7] : memref<1x128xf32, #tpu.memory_space<vmem>>, vector<1x128xf32>
    %7 = vector.broadcast %6 : vector<1x128xf32> to vector<8x128xf32>
    %8 = arith.addf %5, %7 : vector<8x128xf32>
    %cst_8 = arith.constant 2.500000e-01 : f32
    %9 = vector.broadcast %cst_8 : f32 to vector<8x128xf32>
    %10 = arith.mulf %8, %9 : vector<8x128xf32>
    %11 = tpu.iota {dimensions = array<i32: 1>} : vector<8x128xi32>
    %12 = tpu.iota {dimensions = array<i32: 0>} : vector<8x128xi32>
    %c16_i32 = arith.constant 16 : i32
    %13 = vector.broadcast %c16_i32 : i32 to vector<8x128xi32>
    %14 = arith.muli %12, %13 : vector<8x128xi32>
    %15 = arith.cmpi sge, %11, %14 : vector<8x128xi32>
    %c1_i32 = arith.constant 1 : i32
    %16 = vector.broadcast %c1_i32 : i32 to vector<8x128xi32>
    %17 = arith.addi %12, %16 : vector<8x128xi32>
    %c16_i32_9 = arith.constant 16 : i32
    %18 = vector.broadcast %c16_i32_9 : i32 to vector<8x128xi32>
    %19 = arith.muli %17, %18 : vector<8x128xi32>
    %20 = arith.cmpi slt, %11, %19 : vector<8x128xi32>
    %21 = arith.andi %15, %20 : vector<8x128xi1>
    %22 = arith.extui %21 : vector<8x128xi1> to vector<8x128xi32>
    %23 = arith.sitofp %22 : vector<8x128xi32> to vector<8x128xf32>
    %24 = vector.shape_cast %10 : vector<8x128xf32> to vector<8x1x128xf32>
    %25 = vector.shape_cast %23 : vector<8x128xf32> to vector<1x8x128xf32>
    %26 = vector.broadcast %24 : vector<8x1x128xf32> to vector<8x8x128xf32>
    %27 = vector.broadcast %25 : vector<1x8x128xf32> to vector<8x8x128xf32>
    %28 = arith.mulf %26, %27 : vector<8x8x128xf32>
    %29 = vector.shape_cast %28 : vector<8x8x128xf32> to vector<64x128xf32>
    %c0_10 = arith.constant 0 : index
    %c0_11 = arith.constant 0 : index
    %30 = vector.load %arg3[%c0_10, %c0_11] : memref<128x128xf32, #tpu.memory_space<vmem>>, vector<128x128xf32>
    %cst_12 = arith.constant dense<0.000000e+00> : vector<64x128xf32>
    %31 = tpu.matmul %29, %30, %cst_12 {dimension_numbers = #tpu.dot_dimension_numbers<[1], [0], [0], [1], [0, 0, 1, 1], [], []>} : vector<64x128xf32>, vector<128x128xf32>, vector<64x128xf32> -> vector<64x128xf32>
    %32 = vector.shape_cast %31 : vector<64x128xf32> to vector<8x8x128xf32>
    "tpu.trace_start"() <{level = 10 : i32, message = "nhc,ncl->nhl"}> : () -> ()
    %cst_13 = arith.constant dense<0.000000e+00> : vector<8x8x64xf32>
    %33 = tpu.matmul %32, %0, %cst_13 {dimension_numbers = #tpu.dot_dimension_numbers<[2], [1], [1], [2], [0, 0, 0, 1, 1, 2], [0], [0]>} : vector<8x8x128xf32>, vector<8x128x64xf32>, vector<8x8x64xf32> -> vector<8x8x64xf32>
    "tpu.trace_stop"() : () -> ()
    %cst_14 = arith.constant dense<0.000000e+00> : vector<8x8xf32>
    %34 = vector.multi_reduction <add>, %33, %cst_14 [2] : vector<8x8x64xf32> to vector<8x8xf32>
    %35 = vector.shape_cast %34 : vector<8x8xf32> to vector<8x8x1xf32>
    %cst_15 = arith.constant 6.400000e+01 : f32
    %36 = vector.broadcast %cst_15 : f32 to vector<8x8x1xf32>
    %37 = arith.divf %35, %36 : vector<8x8x1xf32>
    %cst_16 = arith.constant dense<0xFF800000> : vector<8x8xf32>
    %38 = vector.multi_reduction <maximumf>, %33, %cst_16 [2] : vector<8x8x64xf32> to vector<8x8xf32>
    %39 = vector.shape_cast %38 : vector<8x8xf32> to vector<8x8x1xf32>
    %40 = arith.maximumf %39, %37 : vector<8x8x1xf32>
    %41 = arith.subf %37, %40 : vector<8x8x1xf32>
    %42 = math.exp %41 : vector<8x8x1xf32>
    %43 = vector.broadcast %40 : vector<8x8x1xf32> to vector<8x8x64xf32>
    %44 = arith.subf %33, %43 : vector<8x8x64xf32>
    %45 = math.exp %44 : vector<8x8x64xf32>
    %cst_17 = arith.constant dense<0.000000e+00> : vector<8x8xf32>
    %46 = vector.multi_reduction <add>, %45, %cst_17 [2] : vector<8x8x64xf32> to vector<8x8xf32>
    %47 = vector.shape_cast %46 : vector<8x8xf32> to vector<8x8x1xf32>
    %48 = arith.addf %42, %47 : vector<8x8x1xf32>
    %cst_18 = arith.constant 1.000000e+00 : f32
    %49 = vector.broadcast %cst_18 : f32 to vector<8x8x1xf32>
    %50 = arith.divf %49, %48 : vector<8x8x1xf32>
    %51 = arith.mulf %42, %50 : vector<8x8x1xf32>
    %52 = vector.broadcast %50 : vector<8x8x1xf32> to vector<8x8x64xf32>
    %53 = arith.mulf %45, %52 : vector<8x8x64xf32>
    %cst_19 = arith.constant 1.562500e-02 : f32
    %54 = vector.broadcast %cst_19 : f32 to vector<8x8x1xf32>
    %55 = arith.mulf %51, %54 : vector<8x8x1xf32>
    %56 = vector.broadcast %55 : vector<8x8x1xf32> to vector<8x8x64xf32>
    %57 = arith.addf %53, %56 : vector<8x8x64xf32>
    "tpu.trace_start"() <{level = 10 : i32, message = "nhl,ncl->nhc"}> : () -> ()
    %cst_20 = arith.constant dense<0.000000e+00> : vector<8x8x128xf32>
    %58 = tpu.matmul %57, %0, %cst_20 {dimension_numbers = #tpu.dot_dimension_numbers<[2], [2], [1], [1], [0, 0, 0, 1, 1, 1], [0], [0]>} : vector<8x8x64xf32>, vector<8x128x64xf32>, vector<8x8x128xf32> -> vector<8x8x128xf32>
    "tpu.trace_stop"() : () -> ()
    %59 = vector.shape_cast %58 : vector<8x8x128xf32> to vector<64x128xf32>
    %c0_21 = arith.constant 0 : index
    %c0_22 = arith.constant 0 : index
    %60 = vector.load %arg4[%c0_21, %c0_22] : memref<128x128xf32, #tpu.memory_space<vmem>>, vector<128x128xf32>
    %cst_23 = arith.constant dense<0.000000e+00> : vector<64x128xf32>
    %61 = tpu.matmul %59, %60, %cst_23 {dimension_numbers = #tpu.dot_dimension_numbers<[1], [0], [0], [1], [0, 0, 1, 1], [], []>} : vector<64x128xf32>, vector<128x128xf32>, vector<64x128xf32> -> vector<64x128xf32>
    %62 = vector.shape_cast %61 : vector<64x128xf32> to vector<8x8x128xf32>
    %63 = vector.shape_cast %23 : vector<8x128xf32> to vector<1x8x128xf32>
    %64 = vector.broadcast %63 : vector<1x8x128xf32> to vector<8x8x128xf32>
    %65 = arith.mulf %62, %64 : vector<8x8x128xf32>
    %cst_24 = arith.constant dense<0.000000e+00> : vector<8x128xf32>
    %66 = vector.multi_reduction <add>, %65, %cst_24 [1] : vector<8x8x128xf32> to vector<8x128xf32>
    %c0_25 = arith.constant 0 : index
    %c0_26 = arith.constant 0 : index
    %67 = vector.load %arg7[%c0_25, %c0_26] : memref<1x128xf32, #tpu.memory_space<vmem>>, vector<1x128xf32>
    %68 = vector.broadcast %67 : vector<1x128xf32> to vector<8x128xf32>
    %69 = arith.addf %66, %68 : vector<8x128xf32>
    %c0_27 = arith.constant 0 : index
    %c0_28 = arith.constant 0 : index
    %70 = vector.load %arg5[%c0_27, %c0_28] : memref<128x128xf32, #tpu.memory_space<vmem>>, vector<128x128xf32>
    %cst_29 = arith.constant dense<0.000000e+00> : vector<8x128xf32>
    %71 = tpu.matmul %69, %70, %cst_29 {dimension_numbers = #tpu.dot_dimension_numbers<[1], [0], [0], [1], [0, 0, 1, 1], [], []>} : vector<8x128xf32>, vector<128x128xf32>, vector<8x128xf32> -> vector<8x128xf32>
    %c0_30 = arith.constant 0 : index
    %c0_31 = arith.constant 0 : index
    %72 = vector.load %arg8[%c0_30, %c0_31] : memref<1x128xf32, #tpu.memory_space<vmem>>, vector<1x128xf32>
    %73 = vector.broadcast %72 : vector<1x128xf32> to vector<8x128xf32>
    %74 = arith.addf %71, %73 : vector<8x128xf32>
    %c0_32 = arith.constant 0 : index
    %c0_33 = arith.constant 0 : index
    %75 = vector.load %arg9[%c0_32, %c0_33] : memref<8x128xf32, #tpu.memory_space<vmem>>, vector<8x128xf32>
    tpu.vector_store %arg9[%c0_32, %c0_33], %74 {strides = array<i32>} : memref<8x128xf32, #tpu.memory_space<vmem>>, vector<8x128xf32>,
    return
  }
  func.func @transform_0(%arg0: i32) -> (i32, i32, i32) {
    %c0_i32 = arith.constant 0 : i32
    %c0_i32_0 = arith.constant 0 : i32
    %c0_i32_1 = arith.constant 0 : i32
    return %arg0, %c0_i32, %c0_i32_0 : i32, i32, i32
  }
  func.func @transform_1(%arg0: i32) -> (i32, i32) {
    %c0_i32 = arith.constant 0 : i32
    %c0_i32_0 = arith.constant 0 : i32
    %c0_i32_1 = arith.constant 0 : i32
    return %c0_i32, %c0_i32_0 : i32, i32
  }
  func.func @transform_2(%arg0: i32) -> (i32, i32) {
    %c0_i32 = arith.constant 0 : i32
    %c0_i32_0 = arith.constant 0 : i32
    %c0_i32_1 = arith.constant 0 : i32
    return %c0_i32, %c0_i32_0 : i32, i32
  }
  func.func @transform_3(%arg0: i32) -> (i32, i32) {
    %c0_i32 = arith.constant 0 : i32
    %c0_i32_0 = arith.constant 0 : i32
    %c0_i32_1 = arith.constant 0 : i32
    return %c0_i32, %c0_i32_0 : i32, i32
  }
  func.func @transform_4(%arg0: i32) -> (i32, i32) {
    %c0_i32 = arith.constant 0 : i32
    %c0_i32_0 = arith.constant 0 : i32
    %c0_i32_1 = arith.constant 0 : i32
    return %c0_i32, %c0_i32_0 : i32, i32
  }
  func.func @transform_5(%arg0: i32) -> (i32, i32) {
    %c0_i32 = arith.constant 0 : i32
    %c0_i32_0 = arith.constant 0 : i32
    %c0_i32_1 = arith.constant 0 : i32
    return %c0_i32, %c0_i32_0 : i32, i32
  }
  func.func @transform_6(%arg0: i32) -> (i32, i32) {
    %c0_i32 = arith.constant 0 : i32
    %c0_i32_0 = arith.constant 0 : i32
    %c0_i32_1 = arith.constant 0 : i32
    return %c0_i32, %c0_i32_0 : i32, i32
  }
  func.func @transform_7(%arg0: i32) -> (i32, i32) {
    %c0_i32 = arith.constant 0 : i32
    %c0_i32_0 = arith.constant 0 : i32
    %c0_i32_1 = arith.constant 0 : i32
    return %c0_i32, %c0_i32_0 : i32, i32
  }
  func.func @transform_8(%arg0: i32) -> (i32, i32) {
    %c0_i32 = arith.constant 0 : i32
    %c0_i32_0 = arith.constant 0 : i32
    return %arg0, %c0_i32 : i32, i32
  }
}

</mosaic_0001>

<bundles_post_ra>
// kernel: tpu_custom_call.1
= control target key start
LH: loop header
LB: loop body
LE: loop exit
PB: predicated region body
PF: predicated region fallthrough
CT: control target
= control target key end

     0   :  { %13 = vsyncpa [#allocation3], 0  ;;  %s8041_s0 = inlined_call_operand.vmem [shape: f32[16,128,64], index: 0, kind: input, shape index: {}]   ;;  %s8042_s1 = inlined_call_operand.vmem [shape: f32[128,128], index: 1, kind: input, shape index: {}]   ;;  %s8043_s2 = inlined_call_operand.vmem [shape: f32[128,128], index: 2, kind: input, shape index: {}]   ;;  %s8044_s3 = inlined_call_operand.vmem [shape: f32[128,128], index: 3, kind: input, shape index: {}]   ;;  %s8045_s4 = inlined_call_operand.vmem [shape: f32[128,128], index: 4, kind: input, shape index: {}]   ;;  %s8046_s5 = inlined_call_operand.vmem [shape: f32[1,128], index: 5, kind: input, shape index: {}]   ;;  %s8047_s6 = inlined_call_operand.vmem [shape: f32[1,128], index: 6, kind: input, shape index: {}]   ;;  %s8048_s7 = inlined_call_operand.vmem [shape: f32[1,128], index: 7, kind: input, shape index: {}]   ;;  %s8049_s8 = inlined_call_operand.hbm [shape: f32[16,128], index: 8, kind: output, shape index: {}]  }
   0x1   :  { %15 = vsyncpa [#allocation3 + $0x1], 0  ;;  %s5737_s27 = smov 0   ;;  %s5739_s28 = smov 0  }
   0x2   :  { %s5741_s29 = smov 0   ;;  %s5743_s30 = smov 0  }
   0x3 LB: > { %s5758_s9 = sadd.s32 4294967295, %s5686_s30   ;;  %s4183_s10 = sadd.s32 4294967294, %s5686_s30   ;;  %s5686_s30 = sphi %s5743_s30, %s8260_s30   ;;  %s5682_s29 = sphi %s5741_s29, %s8259_s29   ;;  %s5678_s28 = sphi %s5739_s28, %s8258_s28   ;;  %s5674_s27 = sphi %s5737_s27, %s8257_s27  }
   0x4   : > { %s5762_s11 = sadd.s32 1, %s5686_s30   ;;  %s201_s12 = sadd.s32 1, %s5682_s29 }
   0x5   : > { %s198_s13 = ssub.s32 %s5686_s30, %s5762_s11  ;;  %p211_p0 = scmp.ne.s32.totalorder %s5682_s29, %s5678_s28 }
   0x6   : > { %p199_p1 = scmp.eq.s32.totalorder %s198_s13, 0  ;;  %p212_p2 = scmp.eq.s32.totalorder %s5758_s9, 1 }
   0x7   : > { %p217_p3 = scmp.ne.s32.totalorder %s5678_s28, %s5674_s27  ;;  %p218_p4 = scmp.eq.s32.totalorder %s4183_s10, 1 }
   0x8   : > { %s5773_s14 = scalar_select %p199_p1, %s5682_s29, %s201_s12  }
   0x9   : > { %p5775_p5 = por %p212_p2, %p211_p0  ;;  %p5779_p6 = por %p218_p4, %p217_p3 }
   0xa   : > { %p4186_p7 = scmp.ge.s32.totalorder %s5686_s30, 1  ;;  %p267_p8 = scmp.lt.s32.totalorder %s5686_s30, 3 }
   0xc   : > { %p268_p9 = pnand %p4186_p7, %p267_p8 }
   0xe   : > { %271 = sbr.rel (%p268_p9) target bundleno = 2192 (0x890), region = 52 }
  0x13   : > { %s4188_s17 = sshll.u32 %s5758_s9, 3  ;;  %vm437_vm0 = vcmask 523264   ;;  %vm1113_vm1 = vcmask 130112   ;;  %vm1120_vm2 = vcmask 195712   ;;  %vm1127_vm3 = vcmask 261312   ;;  %s299_s12 = sand.u32 1, %s5678_s28  }
  0x14   : > { %p303_p10 = scmp.lt.s32.totalorder %s4188_s17, 15  ;;  %vm1134_vm4 = vcmask 326912   ;;  %vm1141_vm5 = vcmask 392512   ;;  %vm1148_vm6 = vcmask 458112   ;;  %vm1155_vm7 = vcmask 523712   ;;  %s4187_s13 = sshll.u32 %s299_s12, 3 }
  0x15   : > { %vm1162_vm8 = vcmask 589312   ;;  %vm1169_vm9 = vcmask 654912   ;;  %vm1176_vm10 = vcmask 720512   ;;  %vm5689_vm11 = vmmov 0   ;;  %s4332_s19 = sshll.u32 %s5758_s9, 7  ;;  %s301_s20 = scalar_lea.vmem [#allocation2], %s4187_s13 }
  0x16   : > { %s8262_s17 = smov (!%p303_p10, %s4188_s17), 15  ;;  %vm1183_vm12 = vcmask 786112   ;;  %vm1190_vm13 = vcmask 851712   ;;  %vm1197_vm14 = vcmask 917312   ;;  %vm1204_vm15 = vcmask 982912   ;;  %s4124_s22 = sshll.u32 %s301_s20, 4  ;;  %s4125_s22 = int_to_ptr.vmem [resolvable:$true] %s4124_s22 }
  0x17   : > { %s4335_s18 = sshll.u32 %s8262_s17, 7  ;;  %s8006_s25 = scalar_lea.hbm %s8049_s8, %s4332_s19 }
  0x18   : > { %s5789_s21 = scalar_lea.vmem %s8041_s0, %s4335_s18  ;;  %s4111_s26 = scalar_lea.sflag [#allocation3], %s299_s12 }
  0x19   : > { %v325_v0 = vld [vmem:[%s5789_s21 + $0x80] sm:$0xff]  ;;  %v326_v2 = vld [vmem:[%s5789_s21 + $0x88] sm:$0xff]  ;;  %v327_v8 = vld [vmem:[%s5789_s21 + $0x90] sm:$0xff]  ;;  %s5626_s10 = scalar_lea.vmem %s4125_s22, 128 }
  0x1a   : > { %v309_v1 = vld [vmem:[%s5789_s21] sm:$0xff]  ;;  %v486_v3 = vsel %vm437_vm0, %v325_v0, 0.0  ;;  %v310_v5 = vld [vmem:[%s5789_s21 + $0x8] sm:$0xff]  ;;  %v489_v6 = vsel %vm437_vm0, %v326_v2, 0.0  ;;  %v311_v9 = vld [vmem:[%s5789_s21 + $0x10] sm:$0xff]  ;;  %v492_v10 = vsel %vm437_vm0, %v327_v8, 0.0  ;;  %p5627_p11 = scmp.ne.s32.totalorder %s4125_s22, %s5626_s10 }
  0x1b   : > { %v438_v4 = vsel %vm437_vm0, %v309_v1, 0.0  ;;  %487 = vadd.xlane.f32.xlu1 %v486_v3  ;;  %v441_v7 = vsel %vm437_vm0, %v310_v5, 0.0  ;;  %v444_v11 = vsel %vm437_vm0, %v311_v9, 0.0  ;;  %v342_v12 = vld [vmem:[%s5789_s21 + $0x108] sm:$0xff]  ;;  %v341_v13 = vld [vmem:[%s5789_s21 + $0x100] sm:$0xff]  ;;  %v328_v16 = vld [vmem:[%s5789_s21 + $0x98] sm:$0xff] }
  0x1c   : > { %439 = vadd.xlane.f32.xlu0 %v438_v4  ;;  %v537_v14 = vsel %vm437_vm0, %v342_v12, 0.0  ;;  %v534_v15 = vsel %vm437_vm0, %v341_v13, 0.0  ;;  %v312_v17 = vld [vmem:[%s5789_s21 + $0x18] sm:$0xff]  ;;  %v495_v18 = vsel %vm437_vm0, %v328_v16, 0.0  ;;  %v357_v20 = vld [vmem:[%s5789_s21 + $0x180] sm:$0xff]  ;;  %v343_v21 = vld [vmem:[%s5789_s21 + $0x110] sm:$0xff]  ;;  %p5628_p12 = pnand %p5627_p11, %p5775_p5 }
  0x1d   : > { %v447_v19 = vsel %vm437_vm0, %v312_v17, 0.0  ;;  %v582_v22 = vsel %vm437_vm0, %v357_v20, 0.0  ;;  %v540_v23 = vsel %vm437_vm0, %v343_v21, 0.0  ;;  %v313_v24 = vld [vmem:[%s5789_s21 + $0x20] sm:$0xff]  ;;  %v358_v25 = vld [vmem:[%s5789_s21 + $0x188] sm:$0xff]  ;;  %v344_v28 = vld [vmem:[%s5789_s21 + $0x118] sm:$0xff] }
  0x1e   : > { %v450_v26 = vsel %vm437_vm0, %v313_v24, 0.0  ;;  %v585_v27 = vsel %vm437_vm0, %v358_v25, 0.0  ;;  %v329_v29 = vld [vmem:[%s5789_s21 + $0xa0] sm:$0xff]  ;;  %v543_v30 = vsel %vm437_vm0, %v344_v28, 0.0  ;;  %v359_v33 = vld [vmem:[%s5789_s21 + $0x190] sm:$0xff]  ;;  %v314_v36 = vld [vmem:[%s5789_s21 + $0x28] sm:$0xff]  ;;  %p5629_p13 = pneg %p5628_p12 }
  0x1f   : > { %490 = vadd.xlane.f32.xlu1 %v489_v6  ;;  %v498_v31 = vsel %vm437_vm0, %v329_v29, 0.0  ;;  %v373_v32 = vld [vmem:[%s5789_s21 + $0x200] sm:$0xff]  ;;  %v588_v35 = vsel %vm437_vm0, %v359_v33, 0.0  ;;  %v374_v37 = vld [vmem:[%s5789_s21 + $0x208] sm:$0xff]  ;;  %v453_v38 = vsel %vm437_vm0, %v314_v36, 0.0  ;;  %v375_v44 = vld [vmem:[%s5789_s21 + $0x210] sm:$0xff] }
  0x20   : > { %442 = vadd.xlane.f32.xlu0 %v441_v7  ;;  %v630_v34 = vsel %vm437_vm0, %v373_v32, 0.0  ;;  %v633_v39 = vsel %vm437_vm0, %v374_v37, 0.0  ;;  %v345_v40 = vld [vmem:[%s5789_s21 + $0x120] sm:$0xff]  ;;  %v330_v41 = vld [vmem:[%s5789_s21 + $0xa8] sm:$0xff]  ;;  %v360_v45 = vld [vmem:[%s5789_s21 + $0x198] sm:$0xff]  ;;  %v636_v46 = vsel %vm437_vm0, %v375_v44, 0.0 }
  0x21   : > { %v546_v42 = vsel %vm437_vm0, %v345_v40, 0.0  ;;  %v501_v43 = vsel %vm437_vm0, %v330_v41, 0.0  ;;  %v591_v47 = vsel %vm437_vm0, %v360_v45, 0.0  ;;  %v390_v48 = vld [vmem:[%s5789_s21 + $0x288] sm:$0xff]  ;;  %v389_v49 = vld [vmem:[%s5789_s21 + $0x280] sm:$0xff]  ;;  %v331_v52 = vld [vmem:[%s5789_s21 + $0xb0] sm:$0xff] }
  0x22   : > { %v681_v50 = vsel %vm437_vm0, %v390_v48, 0.0  ;;  %v678_v51 = vsel %vm437_vm0, %v389_v49, 0.0  ;;  %v315_v53 = vld [vmem:[%s5789_s21 + $0x30] sm:$0xff]  ;;  %v504_v54 = vsel %vm437_vm0, %v331_v52, 0.0  ;;  %v361_v56 = vld [vmem:[%s5789_s21 + $0x1a0] sm:$0xff]  ;;  %v346_v57 = vld [vmem:[%s5789_s21 + $0x128] sm:$0xff] }
  0x23   : > { %493 = vadd.xlane.f32.xlu1 %v492_v10  ;;  %v456_v55 = vsel %vm437_vm0, %v315_v53, 0.0  ;;  %v594_v58 = vsel %vm437_vm0, %v361_v56, 0.0  ;;  %v549_v59 = vsel %vm437_vm0, %v346_v57, 0.0  ;;  %v391_v60 = vld [vmem:[%s5789_s21 + $0x290] sm:$0xff]  ;;  %v376_v61 = vld [vmem:[%s5789_s21 + $0x218] sm:$0xff]  ;;  %v406_v0 = vld [vmem:[%s5789_s21 + $0x308] sm:$0xff] }
  0x24   : > { %445 = vadd.xlane.f32.xlu0 %v444_v11  ;;  %v684_v62 = vsel %vm437_vm0, %v391_v60, 0.0  ;;  %v639_v63 = vsel %vm437_vm0, %v376_v61, 0.0  ;;  %v405_v1 = vld [vmem:[%s5789_s21 + $0x300] sm:$0xff]  ;;  %v729_v2 = vsel %vm437_vm0, %v406_v0, 0.0  ;;  %v332_v4 = vld [vmem:[%s5789_s21 + $0xb8] sm:$0xff]  ;;  %v362_v8 = vld [vmem:[%s5789_s21 + $0x1a8] sm:$0xff] }
  0x25   : > { %v726_v3 = vsel %vm437_vm0, %v405_v1, 0.0  ;;  %v316_v5 = vld [vmem:[%s5789_s21 + $0x38] sm:$0xff]  ;;  %v507_v6 = vsel %vm437_vm0, %v332_v4, 0.0  ;;  %v347_v9 = vld [vmem:[%s5789_s21 + $0x130] sm:$0xff]  ;;  %v597_v10 = vsel %vm437_vm0, %v362_v8, 0.0  ;;  %v377_v13 = vld [vmem:[%s5789_s21 + $0x220] sm:$0xff] }
  0x26   : > { %v459_v7 = vsel %vm437_vm0, %v316_v5, 0.0  ;;  %v552_v11 = vsel %vm437_vm0, %v347_v9, 0.0  ;;  %v392_v12 = vld [vmem:[%s5789_s21 + $0x298] sm:$0xff]  ;;  %v421_v16 = vld [vmem:[%s5789_s21 + $0x380] sm:$0xff]  ;;  %v407_v17 = vld [vmem:[%s5789_s21 + $0x310] sm:$0xff] }
  0x27   : > { %538 = vadd.xlane.f32.xlu1 %v537_v14  ;;  %v687_v14 = vsel %vm437_vm0, %v392_v12, 0.0  ;;  %v317_v20 = vld [vmem:[%s5789_s21 + $0x40] sm:$0xff]  ;;  %v422_v21 = vld [vmem:[%s5789_s21 + $0x388] sm:$0xff]  ;;  %v348_v24 = vld [vmem:[%s5789_s21 + $0x138] sm:$0xff] }
  0x28   : > { %535 = vadd.xlane.f32.xlu0 %v534_v15  ;;  %v642_v15 = vsel %vm437_vm0, %v377_v13, 0.0  ;;  %v333_v25 = vld [vmem:[%s5789_s21 + $0xc0] sm:$0xff]  ;;  %v378_v28 = vld [vmem:[%s5789_s21 + $0x228] sm:$0xff]  ;;  %v363_v29 = vld [vmem:[%s5789_s21 + $0x1b0] sm:$0xff] }
  0x29   : > { %v408_v32 = vld [vmem:[%s5789_s21 + $0x318] sm:$0xff]  ;;  %v393_v33 = vld [vmem:[%s5789_s21 + $0x2a0] sm:$0xff]  ;;  %v318_v36 = vld [vmem:[%s5789_s21 + $0x48] sm:$0xff] }
  0x2a   : > { %v423_v37 = vld [vmem:[%s5789_s21 + $0x390] sm:$0xff]  ;;  %v349_v40 = vld [vmem:[%s5789_s21 + $0x140] sm:$0xff]  ;;  %v334_v41 = vld [vmem:[%s5789_s21 + $0xc8] sm:$0xff] }
  0x2b   : > { %496 = vadd.xlane.f32.xlu1 %v495_v18  ;;  %v774_v18 = vsel %vm437_vm0, %v421_v16, 0.0  ;;  %v379_v44 = vld [vmem:[%s5789_s21 + $0x230] sm:$0xff]  ;;  %v364_v45 = vld [vmem:[%s5789_s21 + $0x1b8] sm:$0xff]  ;;  %v409_v48 = vld [vmem:[%s5789_s21 + $0x320] sm:$0xff] }
  0x2c   : > { %448 = vadd.xlane.f32.xlu0 %v447_v19  ;;  %v732_v19 = vsel %vm437_vm0, %v407_v17, 0.0  ;;  %v394_v49 = vld [vmem:[%s5789_s21 + $0x2a8] sm:$0xff]  ;;  %v319_v52 = vld [vmem:[%s5789_s21 + $0x50] sm:$0xff]  ;;  %v424_v53 = vld [vmem:[%s5789_s21 + $0x398] sm:$0xff] }
  0x2d   : > { %v350_v56 = vld [vmem:[%s5789_s21 + $0x148] sm:$0xff]  ;;  %v335_v57 = vld [vmem:[%s5789_s21 + $0xd0] sm:$0xff]  ;;  %v380_v60 = vld [vmem:[%s5789_s21 + $0x238] sm:$0xff] }
  0x2e   : > { %v365_v61 = vld [vmem:[%s5789_s21 + $0x1c0] sm:$0xff]  ;;  %v410_v0 = vld [vmem:[%s5789_s21 + $0x328] sm:$0xff]  ;;  %v395_v1 = vld [vmem:[%s5789_s21 + $0x2b0] sm:$0xff] }
  0x2f   : > { %583 = vadd.xlane.f32.xlu1 %v582_v22  ;;  %v462_v22 = vsel %vm437_vm0, %v317_v20, 0.0  ;;  %v320_v4 = vld [vmem:[%s5789_s21 + $0x58] sm:$0xff]  ;;  %v425_v5 = vld [vmem:[%s5789_s21 + $0x3a0] sm:$0xff]  ;;  %v351_v8 = vld [vmem:[%s5789_s21 + $0x150] sm:$0xff] }
  0x30   : > { %541 = vadd.xlane.f32.xlu0 %v540_v23  ;;  %v777_v23 = vsel %vm437_vm0, %v422_v21, 0.0  ;;  %v336_v9 = vld [vmem:[%s5789_s21 + $0xd8] sm:$0xff] }
  0x31   : > { %v519_v12 = vsel %vm437_vm0, %v336_v9, 0.0 }
  0x33   : > { %451 = vadd.xlane.f32.xlu1 %v450_v26  ;;  %v555_v26 = vsel %vm437_vm0, %v348_v24, 0.0 }
  0x34   : > { %586 = vadd.xlane.f32.xlu0 %v585_v27  ;;  %v510_v27 = vsel %vm437_vm0, %v333_v25, 0.0 }
  0x37   : > { %544 = vadd.xlane.f32.xlu1 %v543_v30  ;;  %v645_v30 = vsel %vm437_vm0, %v378_v28, 0.0 }
  0x38   : > { %499 = vadd.xlane.f32.xlu0 %v498_v31  ;;  %v600_v31 = vsel %vm437_vm0, %v363_v29, 0.0 }
  0x3b   : > { %631 = vadd.xlane.f32.xlu1 %v630_v34  ;;  %v735_v34 = vsel %vm437_vm0, %v408_v32, 0.0 }
  0x3c   : > { %589 = vadd.xlane.f32.xlu0 %v588_v35  ;;  %v690_v35 = vsel %vm437_vm0, %v393_v33, 0.0 }
  0x3f   : > { %454 = vadd.xlane.f32.xlu1 %v453_v38  ;;  %v465_v38 = vsel %vm437_vm0, %v318_v36, 0.0  ;;  %v426_v36 = vld [vmem:[%s5789_s21 + $0x3a8] sm:$0xff] }
  0x40   : > { %634 = vadd.xlane.f32.xlu0 %v633_v39  ;;  %v780_v39 = vsel %vm437_vm0, %v423_v37, 0.0 }
  0x43   : > { %547 = vadd.xlane.f32.xlu1 %v546_v42  ;;  %v558_v42 = vsel %vm437_vm0, %v349_v40, 0.0 }
  0x44   : > { %502 = vadd.xlane.f32.xlu0 %v501_v43  ;;  %v513_v43 = vsel %vm437_vm0, %v334_v41, 0.0 }
  0x47   : > { %637 = vadd.xlane.f32.xlu1 %v636_v46  ;;  %v648_v46 = vsel %vm437_vm0, %v379_v44, 0.0 }
  0x48   : > { %592 = vadd.xlane.f32.xlu0 %v591_v47  ;;  %v603_v47 = vsel %vm437_vm0, %v364_v45, 0.0  ;;  %v789_v45 = vsel %vm437_vm0, %v426_v36, 0.0 }
  0x4b   : > { %682 = vadd.xlane.f32.xlu1 %v681_v50  ;;  %v738_v50 = vsel %vm437_vm0, %v409_v48, 0.0 }
  0x4c   : > { %679 = vadd.xlane.f32.xlu0 %v678_v51  ;;  %v693_v51 = vsel %vm437_vm0, %v394_v49, 0.0 }
  0x4f   : > { %505 = vadd.xlane.f32.xlu1 %v504_v54  ;;  %v468_v54 = vsel %vm437_vm0, %v319_v52, 0.0 }
  0x50   : > { %457 = vadd.xlane.f32.xlu0 %v456_v55  ;;  %v783_v55 = vsel %vm437_vm0, %v424_v53, 0.0 }
  0x53   : > { %595 = vadd.xlane.f32.xlu1 %v594_v58  ;;  %v561_v58 = vsel %vm437_vm0, %v350_v56, 0.0 }
  0x54   : > { %550 = vadd.xlane.f32.xlu0 %v549_v59  ;;  %v516_v59 = vsel %vm437_vm0, %v335_v57, 0.0 }
  0x57   : > { %685 = vadd.xlane.f32.xlu1 %v684_v62  ;;  %v651_v62 = vsel %vm437_vm0, %v380_v60, 0.0 }
  0x58   : > { %640 = vadd.xlane.f32.xlu0 %v639_v63  ;;  %v606_v63 = vsel %vm437_vm0, %v365_v61, 0.0 }
  0x5b   : > { %730 = vadd.xlane.f32.xlu1 %v729_v2  ;;  %v741_v2 = vsel %vm437_vm0, %v410_v0, 0.0  ;;  %v367_v0 = vld [vmem:[%s5789_s21 + $0x1d0] sm:$0xff] }
  0x5c   : > { %727 = vadd.xlane.f32.xlu0 %v726_v3  ;;  %v696_v3 = vsel %vm437_vm0, %v395_v1, 0.0 }
  0x5f   : > { %508 = vadd.xlane.f32.xlu1 %v507_v6  ;;  %v471_v6 = vsel %vm437_vm0, %v320_v4, 0.0 }
  0x60   : > { %460 = vadd.xlane.f32.xlu0 %v459_v7  ;;  %v786_v7 = vsel %vm437_vm0, %v425_v5, 0.0 }
  0x63   : > { %598 = vadd.xlane.f32.xlu1 %v597_v10  ;;  %v1102_v10 = vlaneseq }
  0x64   : > { %553 = vadd.xlane.f32.xlu0 %v552_v11  ;;  %v564_v11 = vsel %vm437_vm0, %v351_v8, 0.0 }
  0x65   : > { %v5931_v13 = vand.u32 127, %v1102_v10  ;;  %v5935_v16 = vshrl.u32 %v1102_v10, 7 }
  0x67   : > { %688 = vadd.xlane.f32.xlu1 %v687_v14  ;;  %v381_v14 = vld [vmem:[%s5789_s21 + $0x240] sm:$0xff]  ;;  %v1108_v17 = vadd.s32 4294967288, %v5931_v13  ;;  %v5944_v24 = vsub.s32 %v5931_v13, %v5935_v16 }
  0x68   : > { %643 = vadd.xlane.f32.xlu0 %v642_v15  ;;  %v366_v15 = vld [vmem:[%s5789_s21 + $0x1c8] sm:$0xff]  ;;  %v654_v20 = vsel %vm437_vm0, %v381_v14, 0.0 }
  0x69   : > { %v609_v21 = vsel %vm437_vm0, %v366_v15, 0.0  ;;  %v5948_v28 = vsub.s32 %v1108_v17, %v5935_v16  ;;  %v1129_v17 = vadd.s32 4294967264, %v5931_v13 }
  0x6b   : > { %775 = vadd.xlane.f32.xlu1 %v774_v18 }
  0x6c   : > { %733 = vadd.xlane.f32.xlu0 %v732_v19 }
  0x6f   : > { %463 = vadd.xlane.f32.xlu1 %v462_v22  ;;  %v411_v22 = vld [vmem:[%s5789_s21 + $0x330] sm:$0xff] }
  0x70   : > { %778 = vadd.xlane.f32.xlu0 %v777_v23  ;;  %v396_v23 = vld [vmem:[%s5789_s21 + $0x2b8] sm:$0xff] }
  0x71   : > { %v699_v32 = vsel %vm437_vm0, %v396_v23, 0.0 }
  0x73   : > { %556 = vadd.xlane.f32.xlu1 %v555_v26  ;;  %v1115_v26 = vadd.s32 4294967280, %v5931_v13 }
  0x74   : > { %511 = vadd.xlane.f32.xlu0 %v510_v27 }
  0x77   : > { %646 = vadd.xlane.f32.xlu1 %v645_v30 }
  0x78   : > { %601 = vadd.xlane.f32.xlu0 %v600_v31  ;;  %v744_v31 = vsel %vm437_vm0, %v411_v22, 0.0 }
  0x7b   : > { %736 = vadd.xlane.f32.xlu1 %v735_v34 }
  0x7c   : > { %691 = vadd.xlane.f32.xlu0 %v690_v35  ;;  %v321_v35 = vld [vmem:[%s5789_s21 + $0x60] sm:$0xff] }
  0x7d   : > { %v474_v44 = vsel %vm437_vm0, %v321_v35, 0.0 }
  0x7f   : > { %466 = vadd.xlane.f32.xlu1 %v465_v38  ;;  %v5956_v38 = vsub.s32 %v1115_v26, %v5935_v16  ;;  %v322_v26 = vld [vmem:[%s5789_s21 + $0x68] sm:$0xff] }
  0x80   : > { %781 = vadd.xlane.f32.xlu0 %v780_v39 }
  0x83   : > { %559 = vadd.xlane.f32.xlu1 %v558_v42 }
  0x84   : > { %514 = vadd.xlane.f32.xlu0 %v513_v43 }
  0x87   : > { %649 = vadd.xlane.f32.xlu1 %v648_v46 }
  0x88   : > { %604 = vadd.xlane.f32.xlu0 %v603_v47 }
  0x8b   : > { %739 = vadd.xlane.f32.xlu1 %v738_v50  ;;  %v352_v50 = vld [vmem:[%s5789_s21 + $0x158] sm:$0xff] }
  0x8c   : > { %694 = vadd.xlane.f32.xlu0 %v693_v51  ;;  %v337_v51 = vld [vmem:[%s5789_s21 + $0xe0] sm:$0xff]  ;;  %v567_v57 = vsel %vm437_vm0, %v352_v50, 0.0 }
  0x8f   : > { %469 = vadd.xlane.f32.xlu1 %v468_v54  ;;  %v1122_v54 = vadd.s32 4294967272, %v5931_v13 }
  0x90   : > { %784 = vadd.xlane.f32.xlu0 %v783_v55 }
  0x93   : > { %562 = vadd.xlane.f32.xlu1 %v561_v58  ;;  %v522_v58 = vsel %vm437_vm0, %v337_v51, 0.0 }
  0x94   : > { %517 = vadd.xlane.f32.xlu0 %v516_v59 }
  0x97   : > { %652 = vadd.xlane.f32.xlu1 %v651_v62 }
  0x98   : > { %607 = vadd.xlane.f32.xlu0 %v606_v63  ;;  %v382_v63 = vld [vmem:[%s5789_s21 + $0x248] sm:$0xff] }
  0x9b   : > { %742 = vadd.xlane.f32.xlu1 %v741_v2 }
  0x9c   : > { %697 = vadd.xlane.f32.xlu0 %v696_v3  ;;  %v5979_v3 = vsub.s32 %v1122_v54, %v5935_v16  ;;  %v368_v54 = vld [vmem:[%s5789_s21 + $0x1d8] sm:$0xff] }
  0x9f   : > { %472 = vadd.xlane.f32.xlu1 %v471_v6  ;;  %v657_v6 = vsel %vm437_vm0, %v382_v63, 0.0 }
  0xa0   : > { %787 = vadd.xlane.f32.xlu0 %v786_v7  ;;  %v612_v7 = vsel %vm437_vm0, %v367_v0, 0.0 }
  0xa3   : > { %565 = vadd.xlane.f32.xlu1 %v564_v11  ;;  %v412_v11 = vld [vmem:[%s5789_s21 + $0x338] sm:$0xff] }
  0xa4   : > { %520 = vadd.xlane.f32.xlu0 %v519_v12  ;;  %v488_v18 = vpop.xlane.xlu1 %487  ;;  %v397_v12 = vld [vmem:[%s5789_s21 + $0x2c0] sm:$0xff] }
  0xa5   : > { %v440_v19 = vpop.xlane.xlu0 %439  ;;  %v839_v25 = vmul.f32 0.015625, %v488_v18 }
  0xa6   : > { %v823_v27 = vmul.f32 0.015625, %v440_v19 }
  0xa7   : > { %655 = vadd.xlane.f32.xlu1 %v654_v20  ;;  %v1216_v37 = vrot.slane %v839_v25, %v5944_v24  ;;  %v747_v20 = vsel %vm437_vm0, %v412_v11, 0.0 }
  0xa8   : > { %610 = vadd.xlane.f32.xlu0 %v609_v21  ;;  %v491_v29 = vpop.xlane.xlu1 %490  ;;  %v1107_v39 = vrot.slane %v823_v27, %v5944_v24  ;;  %v702_v21 = vsel %vm437_vm0, %v397_v12, 0.0  ;;  %v427_v27 = vld [vmem:[%s5789_s21 + $0x3b0] sm:$0xff] }
  0xa9   : > { %v443_v30 = vpop.xlane.xlu0 %442  ;;  %v840_v33 = vmul.f32 0.015625, %v491_v29  ;;  %v792_v35 = vsel %vm437_vm0, %v427_v27, 0.0 }
  0xaa   : > { %v824_v34 = vmul.f32 0.015625, %v443_v30 }
  0xab   : > { %v1220_v40 = vrot.slane %v840_v33, %v5948_v28  ;;  %745 = vadd.xlane.f32.xlu1 %v744_v31  ;;  %v5997_v31 = vsub.s32 %v1129_v17, %v5935_v16  ;;  %v428_v17 = vld [vmem:[%s5789_s21 + $0x3b8] sm:$0xff] }
  0xac   : > { %v1112_v41 = vrot.slane %v824_v34, %v5948_v28  ;;  %700 = vadd.xlane.f32.xlu0 %v699_v32  ;;  %v494_v42 = vpop.xlane.xlu1 %493  ;;  %v477_v34 = vsel %vm437_vm0, %v322_v26, 0.0 }
  0xad   : > { %v446_v43 = vpop.xlane.xlu0 %445  ;;  %v1221_v46 = vsel %vm1113_vm1, %v1220_v40, %v1216_v37  ;;  %v841_v48 = vmul.f32 0.015625, %v494_v42  ;;  %v353_v40 = vld [vmem:[%s5789_s21 + $0x160] sm:$0xff] }
  0xae   : > { %v1114_v47 = vsel %vm1113_vm1, %v1112_v41, %v1107_v39  ;;  %v825_v49 = vmul.f32 0.015625, %v446_v43  ;;  %v338_v41 = vld [vmem:[%s5789_s21 + $0xe8] sm:$0xff] }
  0xaf   : > { %v1225_v52 = vrot.slane %v841_v48, %v5956_v38  ;;  %475 = vadd.xlane.f32.xlu1 %v474_v44  ;;  %v525_v48 = vsel %vm437_vm0, %v338_v41, 0.0 }
  0xb0   : > { %v1119_v53 = vrot.slane %v825_v49, %v5956_v38  ;;  %790 = vadd.xlane.f32.xlu0 %v789_v45  ;;  %v539_v55 = vpop.xlane.xlu1 %538 }
  0xb1   : > { %v536_v56 = vpop.xlane.xlu0 %535  ;;  %v1226_v59 = vsel %vm1120_vm2, %v1225_v52, %v1221_v46  ;;  %v856_v61 = vmul.f32 0.015625, %v539_v55 }
  0xb2   : > { %v1121_v60 = vsel %vm1120_vm2, %v1119_v53, %v1114_v47  ;;  %v855_v62 = vmul.f32 0.015625, %v536_v56  ;;  %v570_v47 = vsel %vm437_vm0, %v353_v40, 0.0  ;;  %v383_v53 = vld [vmem:[%s5789_s21 + $0x250] sm:$0xff] }
  0xb3   : > { %v1299_v1 = vrot.slane %v856_v61, %v5948_v28  ;;  %568 = vadd.xlane.f32.xlu1 %v567_v57  ;;  %v1136_v57 = vadd.s32 4294967256, %v5931_v13  ;;  %v615_v61 = vsel %vm437_vm0, %v368_v54, 0.0 }
  0xb4   : > { %v1295_v2 = vrot.slane %v855_v62, %v5944_v24  ;;  %523 = vadd.xlane.f32.xlu0 %v522_v58  ;;  %v497_v4 = vpop.xlane.xlu1 %496 }
  0xb5   : > { %v449_v5 = vpop.xlane.xlu0 %448  ;;  %v842_v9 = vmul.f32 0.015625, %v497_v4 }
  0xb6   : > { %v1300_v8 = vsel %vm1113_vm1, %v1299_v1, %v1295_v2  ;;  %v826_v10 = vmul.f32 0.015625, %v449_v5  ;;  %v413_v1 = vld [vmem:[%s5789_s21 + $0x340] sm:$0xff]  ;;  %v398_v2 = vld [vmem:[%s5789_s21 + $0x2c8] sm:$0xff] }
  0xb7   : > { %v1230_v14 = vrot.slane %v842_v9, %v5979_v3  ;;  %658 = vadd.xlane.f32.xlu1 %v657_v6  ;;  %v6024_v6 = vsub.s32 %v1136_v57, %v5935_v16  ;;  %v750_v9 = vsel %vm437_vm0, %v413_v1, 0.0 }
  0xb8   : > { %v1126_v15 = vrot.slane %v826_v10, %v5979_v3  ;;  %613 = vadd.xlane.f32.xlu0 %v612_v7  ;;  %v584_v18 = vpop.xlane.xlu1 %583  ;;  %v705_v10 = vsel %vm437_vm0, %v398_v2, 0.0 }
  0xb9   : > { %v542_v19 = vpop.xlane.xlu0 %541  ;;  %v1231_v22 = vsel %vm1127_vm3, %v1230_v14, %v1226_v59  ;;  %v871_v29 = vmul.f32 0.015625, %v584_v18 }
  0xba   : > { %v1128_v23 = vsel %vm1127_vm3, %v1126_v15, %v1121_v60  ;;  %v857_v25 = vmul.f32 0.015625, %v542_v19  ;;  %v660_v60 = vsel %vm437_vm0, %v383_v53, 0.0  ;;  %v323_v15 = vld [vmem:[%s5789_s21 + $0x70] sm:$0xff] }
  0xbb   : > { %748 = vadd.xlane.f32.xlu1 %v747_v20  ;;  %v1374_v42 = vrot.slane %v871_v29, %v5944_v24 }
  0xbc   : > { %v1304_v30 = vrot.slane %v857_v25, %v5956_v38  ;;  %703 = vadd.xlane.f32.xlu0 %v702_v21  ;;  %v452_v32 = vpop.xlane.xlu1 %451  ;;  %v795_v25 = vsel %vm437_vm0, %v428_v17, 0.0 }
  0xbd   : > { %v587_v33 = vpop.xlane.xlu0 %586  ;;  %v827_v37 = vmul.f32 0.015625, %v452_v32  ;;  %v354_v32 = vld [vmem:[%s5789_s21 + $0x168] sm:$0xff] }
  0xbe   : > { %v1305_v36 = vsel %vm1120_vm2, %v1304_v30, %v1300_v8  ;;  %v872_v39 = vmul.f32 0.015625, %v587_v33  ;;  %v339_v33 = vld [vmem:[%s5789_s21 + $0xf0] sm:$0xff] }
  0xbf   : > { %v1133_v43 = vrot.slane %v827_v37, %v5997_v31  ;;  %478 = vadd.xlane.f32.xlu1 %v477_v34  ;;  %v528_v40 = vsel %vm437_vm0, %v339_v33, 0.0 }
  0xc0   : > { %v1378_v44 = vrot.slane %v872_v39, %v5948_v28  ;;  %793 = vadd.xlane.f32.xlu0 %v792_v35  ;;  %v545_v45 = vpop.xlane.xlu1 %544  ;;  %v573_v39 = vsel %vm437_vm0, %v354_v32, 0.0 }
  0xc1   : > { %v500_v46 = vpop.xlane.xlu0 %499  ;;  %v1135_v49 = vsel %vm1134_vm4, %v1133_v43, %v1128_v23  ;;  %v858_v51 = vmul.f32 0.015625, %v545_v45  ;;  %v480_v23 = vsel %vm437_vm0, %v323_v15, 0.0  ;;  %v384_v45 = vld [vmem:[%s5789_s21 + $0x258] sm:$0xff] }
  0xc2   : > { %v1379_v50 = vsel %vm1113_vm1, %v1378_v44, %v1374_v42  ;;  %v843_v52 = vmul.f32 0.015625, %v500_v46  ;;  %v369_v46 = vld [vmem:[%s5789_s21 + $0x1e0] sm:$0xff] }
  0xc3   : > { %v1309_v55 = vrot.slane %v858_v51, %v5979_v3  ;;  %571 = vadd.xlane.f32.xlu1 %v570_v47  ;;  %v618_v53 = vsel %vm437_vm0, %v369_v46, 0.0 }
  0xc4   : > { %v1235_v56 = vrot.slane %v843_v52, %v5997_v31  ;;  %526 = vadd.xlane.f32.xlu0 %v525_v48  ;;  %v632_v58 = vpop.xlane.xlu1 %631  ;;  %v663_v52 = vsel %vm437_vm0, %v384_v45, 0.0 }
  0xc5   : > { %v590_v59 = vpop.xlane.xlu0 %589  ;;  %v1310_v62 = vsel %vm1127_vm3, %v1309_v55, %v1305_v36  ;;  %v887_v4 = vmul.f32 0.015625, %v632_v58  ;;  %v414_v58 = vld [vmem:[%s5789_s21 + $0x348] sm:$0xff] }
  0xc6   : > { %v1236_v63 = vsel %vm1134_vm4, %v1235_v56, %v1231_v22  ;;  %v873_v0 = vmul.f32 0.015625, %v590_v59  ;;  %v399_v59 = vld [vmem:[%s5789_s21 + $0x2d0] sm:$0xff]  ;;  %v753_v1 = vsel %vm437_vm0, %v414_v58, 0.0 }
  0xc7   : > { %661 = vadd.xlane.f32.xlu1 %v660_v60  ;;  %v1453_v18 = vrot.slane %v887_v4, %v5944_v24  ;;  %v708_v2 = vsel %vm437_vm0, %v399_v59, 0.0 }
  0xc8   : > { %v1383_v5 = vrot.slane %v873_v0, %v5956_v38  ;;  %616 = vadd.xlane.f32.xlu0 %v615_v61  ;;  %v455_v7 = vpop.xlane.xlu1 %454 }
  0xc9   : > { %v635_v8 = vpop.xlane.xlu0 %634  ;;  %v828_v12 = vmul.f32 0.015625, %v455_v7 }
  0xca   : > { %v1384_v11 = vsel %vm1120_vm2, %v1383_v5, %v1379_v50  ;;  %v888_v14 = vmul.f32 0.015625, %v635_v8  ;;  %v324_v8 = vld [vmem:[%s5789_s21 + $0x78] sm:$0xff] }
  0xcb   : > { %v1140_v19 = vrot.slane %v828_v12, %v6024_v6  ;;  %751 = vadd.xlane.f32.xlu1 %v750_v9  ;;  %v429_v9 = vld [vmem:[%s5789_s21 + $0x3c0] sm:$0xff]  ;;  %v483_v15 = vsel %vm437_vm0, %v324_v8, 0.0  ;;  %v431_v8 = vld [vmem:[%s5789_s21 + $0x3d0] sm:$0xff] }
  0xcc   : > { %v1457_v20 = vrot.slane %v888_v14, %v5948_v28  ;;  %706 = vadd.xlane.f32.xlu0 %v705_v10  ;;  %v548_v21 = vpop.xlane.xlu1 %547  ;;  %v798_v17 = vsel %vm437_vm0, %v429_v9, 0.0 }
  0xcd   : > { %v503_v22 = vpop.xlane.xlu0 %502  ;;  %v1142_v26 = vsel %vm1141_vm5, %v1140_v19, %v1135_v49  ;;  %v859_v29 = vmul.f32 0.015625, %v548_v21  ;;  %v1143_v49 = vadd.s32 4294967248, %v5931_v13 }
  0xce   : > { %v1458_v27 = vsel %vm1113_vm1, %v1457_v20, %v1453_v18  ;;  %v844_v30 = vmul.f32 0.015625, %v503_v22  ;;  %v355_v22 = vld [vmem:[%s5789_s21 + $0x170] sm:$0xff] }
  0xcf   : > { %v1314_v34 = vrot.slane %v859_v29, %v5997_v31  ;;  %481 = vadd.xlane.f32.xlu1 %v480_v23  ;;  %v340_v23 = vld [vmem:[%s5789_s21 + $0xf8] sm:$0xff] }
  0xd0   : > { %v1240_v35 = vrot.slane %v844_v30, %v6024_v6  ;;  %796 = vadd.xlane.f32.xlu0 %v795_v25  ;;  %v638_v36 = vpop.xlane.xlu1 %637  ;;  %v531_v32 = vsel %vm437_vm0, %v340_v23, 0.0  ;;  %v432_v23 = vld [vmem:[%s5789_s21 + $0x3d8] sm:$0xff] }
  0xd1   : > { %v593_v37 = vpop.xlane.xlu0 %592  ;;  %v1315_v41 = vsel %vm1134_vm4, %v1314_v34, %v1310_v62  ;;  %v889_v43 = vmul.f32 0.015625, %v638_v36  ;;  %v6062_v62 = vsub.s32 %v1143_v49, %v5935_v16  ;;  %v370_v36 = vld [vmem:[%s5789_s21 + $0x1e8] sm:$0xff] }
  0xd2   : > { %v1241_v42 = vsel %vm1141_vm5, %v1240_v35, %v1236_v63  ;;  %v874_v44 = vmul.f32 0.015625, %v593_v37  ;;  %v385_v35 = vld [vmem:[%s5789_s21 + $0x260] sm:$0xff]  ;;  %v430_v49 = vld [vmem:[%s5789_s21 + $0x3c8] sm:$0xff] }
  0xd3   : > { %v1462_v47 = vrot.slane %v889_v43, %v5956_v38  ;;  %574 = vadd.xlane.f32.xlu1 %v573_v39  ;;  %v415_v43 = vld [vmem:[%s5789_s21 + $0x350] sm:$0xff] }
  0xd4   : > { %v1388_v48 = vrot.slane %v874_v44, %v5979_v3  ;;  %529 = vadd.xlane.f32.xlu0 %v528_v40  ;;  %v683_v50 = vpop.xlane.xlu1 %682  ;;  %v666_v40 = vsel %vm437_vm0, %v385_v35, 0.0  ;;  %v400_v44 = vld [vmem:[%s5789_s21 + $0x2d8] sm:$0xff]  ;;  %v756_v46 = vsel %vm437_vm0, %v415_v43, 0.0 }
  0xd5   : > { %v680_v51 = vpop.xlane.xlu0 %679  ;;  %v6054_v54 = vsel %vm1120_vm2, %v1462_v47, %v1458_v27  ;;  %v904_v56 = vmul.f32 0.015625, %v683_v50  ;;  %v711_v47 = vsel %vm437_vm0, %v400_v44, 0.0 }
  0xd6   : > { %v1389_v55 = vsel %vm1127_vm3, %v1388_v48, %v1384_v11  ;;  %v903_v57 = vmul.f32 0.015625, %v680_v51  ;;  %v356_v48 = vld [vmem:[%s5789_s21 + $0x178] sm:$0xff] }
  0xd7   : > { %v1536_v60 = vrot.slane %v904_v56, %v5948_v28  ;;  %664 = vadd.xlane.f32.xlu1 %v663_v52  ;;  %v579_v52 = vsel %vm437_vm0, %v356_v48, 0.0  ;;  %v371_v56 = vld [vmem:[%s5789_s21 + $0x1f0] sm:$0xff]  ;;  %v418_v48 = vld [vmem:[%s5789_s21 + $0x368] sm:$0xff] }
  0xd8   : > { %v1532_v61 = vrot.slane %v903_v57, %v5944_v24  ;;  %619 = vadd.xlane.f32.xlu0 %v618_v53  ;;  %v506_v63 = vpop.xlane.xlu1 %505  ;;  %v801_v53 = vsel %vm437_vm0, %v430_v49, 0.0  ;;  %v1150_v49 = vadd.s32 4294967240, %v5931_v13 }
  0xd9   : > { %v458_v0 = vpop.xlane.xlu0 %457  ;;  %v845_v5 = vmul.f32 0.015625, %v506_v63  ;;  %v401_v63 = vld [vmem:[%s5789_s21 + $0x2e0] sm:$0xff] }
  0xda   : > { %v6067_v4 = vsel %vm1113_vm1, %v1536_v60, %v1532_v61  ;;  %v829_v7 = vmul.f32 0.015625, %v458_v0  ;;  %v624_v60 = vsel %vm437_vm0, %v371_v56, 0.0  ;;  %v416_v61 = vld [vmem:[%s5789_s21 + $0x358] sm:$0xff]  ;;  %v765_v56 = vsel %vm437_vm0, %v418_v48, 0.0 }
  0xdb   : > { %v1245_v10 = vrot.slane %v845_v5, %v6062_v62  ;;  %754 = vadd.xlane.f32.xlu1 %v753_v1  ;;  %v714_v5 = vsel %vm437_vm0, %v401_v63, 0.0  ;;  %v1157_v63 = vadd.s32 4294967232, %v5931_v13 }
  0xdc   : > { %v1147_v11 = vrot.slane %v829_v7, %v6062_v62  ;;  %709 = vadd.xlane.f32.xlu0 %v708_v2  ;;  %v596_v12 = vpop.xlane.xlu1 %595  ;;  %v759_v2 = vsel %vm437_vm0, %v416_v61, 0.0  ;;  %v372_v7 = vld [vmem:[%s5789_s21 + $0x1f8] sm:$0xff] }
  0xdd   : > { %v551_v14 = vpop.xlane.xlu0 %550  ;;  %v6076_v18 = vsel %vm1148_vm6, %v1245_v10, %v1241_v42  ;;  %v875_v20 = vmul.f32 0.015625, %v596_v12  ;;  %v621_v42 = vsel %vm437_vm0, %v370_v36, 0.0  ;;  %v804_v12 = vsel %vm437_vm0, %v431_v8, 0.0  ;;  %v403_v36 = vld [vmem:[%s5789_s21 + $0x2f0] sm:$0xff]  ;;  %v966_v61 = vld [vmem:[%s8042_s1 + $0x78] sm:$0xff] }
  0xde   : > { %v6079_v19 = vsel %vm1148_vm6, %v1147_v11, %v1142_v26  ;;  %v860_v21 = vmul.f32 0.015625, %v551_v14  ;;  %v576_v26 = vsel %vm437_vm0, %v355_v22, 0.0  ;;  %v627_v11 = vsel %vm437_vm0, %v372_v7, 0.0  ;;  %v402_v14 = vld [vmem:[%s5789_s21 + $0x2e8] sm:$0xff] }
  0xdf   : > { %v1393_v25 = vrot.slane %v875_v20, %v5997_v31  ;;  %484 = vadd.xlane.f32.xlu1 %v483_v15  ;;  %v387_v15 = vld [vmem:[%s5789_s21 + $0x270] sm:$0xff]  ;;  %v720_v44 = vsel %vm437_vm0, %v403_v36, 0.0  ;;  %v1164_v8 = vadd.s32 4294967224, %v5931_v13 }
  0xe0   : > { %v1319_v27 = vrot.slane %v860_v21, %v6024_v6  ;;  %799 = vadd.xlane.f32.xlu0 %v798_v17  ;;  %v6085_v29 = vpop.xlane.xlu1 %685  ;;  %v717_v21 = vsel %vm437_vm0, %v402_v14, 0.0  ;;  %v672_v22 = vsel %vm437_vm0, %v387_v15, 0.0  ;;  %v6190_v15 = vsub.s32 %v1150_v49, %v5935_v16 }
  0xe1   : > { %v6087_v30 = vpop.xlane.xlu0 %640  ;;  %v6092_v33 = vsel %vm1134_vm4, %v1393_v25, %v1389_v55  ;;  %v386_v55 = vld [vmem:[%s5789_s21 + $0x268] sm:$0xff]  ;;  %v417_v25 = vld [vmem:[%s5789_s21 + $0x360] sm:$0xff]  ;;  %v905_v36 = vmul.f32 0.015625, %v6085_v29  ;;  %v6213_v48 = vsub.s32 %v1164_v8, %v5935_v16 }
  0xe2   : > { %v6095_v34 = vsel %vm1141_vm5, %v1319_v27, %v1315_v41  ;;  %v669_v59 = vsel %vm437_vm0, %v386_v55, 0.0  ;;  %v762_v35 = vsel %vm437_vm0, %v417_v25, 0.0  ;;  %v963_v29 = vld [vmem:[%s8042_s1 + $0x60] sm:$0xff] }
  0xe3   : > { %577 = vadd.xlane.f32.xlu1 %v576_v26  ;;  %v1541_v8 = vrot.slane %v905_v36, %v5956_v38 }
  0xe4   : > { %532 = vadd.xlane.f32.xlu0 %v531_v32  ;;  %v6099_v37 = vpop.xlane.xlu1 %730  ;;  %v807_v32 = vsel %vm437_vm0, %v432_v23, 0.0 }
  0xe5   : > { %v6101_v39 = vpop.xlane.xlu0 %727 }
  0xe7   : > { %667 = vadd.xlane.f32.xlu1 %v666_v40  ;;  %v388_v40 = vld [vmem:[%s5789_s21 + $0x278] sm:$0xff] }
  0xe8   : > { %622 = vadd.xlane.f32.xlu0 %v621_v42  ;;  %v6107_v41 = vpop.xlane.xlu1 %508 }
  0xe9   : > { %v6109_v45 = vpop.xlane.xlu0 %460 }
  0xeb   : > { %757 = vadd.xlane.f32.xlu1 %v756_v46  ;;  %v675_v46 = vsel %vm437_vm0, %v388_v40, 0.0  ;;  %v6204_v40 = vsub.s32 %v1157_v63, %v5935_v16 }
  0xec   : > { %712 = vadd.xlane.f32.xlu0 %v711_v47  ;;  %v6115_v50 = vpop.xlane.xlu1 %598  ;;  %v433_v47 = vld [vmem:[%s5789_s21 + $0x3e0] sm:$0xff] }
  0xed   : > { %v6117_v51 = vpop.xlane.xlu0 %553  ;;  %v810_v55 = vsel %vm437_vm0, %v433_v47, 0.0  ;;  %v876_v7 = vmul.f32 0.015625, %v6115_v50 }
  0xef   : > { %580 = vadd.xlane.f32.xlu1 %v579_v52 }
  0xf0   : > { %802 = vadd.xlane.f32.xlu0 %v801_v53  ;;  %v6123_v57 = vpop.xlane.xlu1 %688 }
  0xf1   : > { %v6125_v58 = vpop.xlane.xlu0 %643  ;;  %v906_v47 = vmul.f32 0.015625, %v6123_v57 }
  0xf3   : > { %670 = vadd.xlane.f32.xlu1 %v669_v59  ;;  %v419_v59 = vld [vmem:[%s5789_s21 + $0x370] sm:$0xff] }
  0xf4   : > { %625 = vadd.xlane.f32.xlu0 %v624_v60  ;;  %v6131_v0 = vpop.xlane.xlu1 %775  ;;  %v5688_v60 = vmov 0.0   ;;  %v768_v14 = vsel %vm437_vm0, %v419_v59, 0.0 }
  0xf5   : > { %v6133_v1 = vpop.xlane.xlu0 %733  ;;  %4690 = vmatprep.subr.mxu0 %v5688_v60  ;;  %4722 = vmatprep.mubr.msk.f32.mxu0 %vm5689_vm11, %v5688_v60 }
  0xf6   : > { %4691 = vmatpush3.msra.mxu0 %v966_v61 }
  0xf7   : > { %760 = vadd.xlane.f32.xlu1 %v759_v2  ;;  %v404_v2 = vld [vmem:[%s5789_s21 + $0x2f8] sm:$0xff]  ;;  %4692 = vmatprep.subr.mxu0 %v5688_v60 }
  0xf8   : > { %715 = vadd.xlane.f32.xlu0 %v714_v5  ;;  %v6139_v9 = vpop.xlane.xlu1 %463  ;;  %v890_v5 = vmul.f32 0.015625, %v6087_v30  ;;  %v420_v30 = vld [vmem:[%s5789_s21 + $0x378] sm:$0xff]  ;;  %v723_v25 = vsel %vm437_vm0, %v404_v2, 0.0 }
  0xf9   : > { %v6141_v10 = vpop.xlane.xlu0 %778 }
  0xfb   : > { %628 = vadd.xlane.f32.xlu1 %v627_v11  ;;  %v965_v11 = vld [vmem:[%s8042_s1 + $0x70] sm:$0xff] }
  0xfc   : > { %805 = vadd.xlane.f32.xlu0 %v804_v12  ;;  %v6147_v17 = vpop.xlane.xlu1 %556  ;;  %v891_v12 = vmul.f32 0.015625, %v6125_v58  ;;  %4693 = vmatpush3.msra.mxu0 %v965_v11  ;;  %v964_v58 = vld [vmem:[%s8042_s1 + $0x68] sm:$0xff] }
  0xfd   : > { %v6149_v20 = vpop.xlane.xlu0 %511  ;;  %4694 = vmatprep.subr.mxu0 %v5688_v60 }
  0xfe   : > { %4695 = vmatpush3.msra.mxu0 %v964_v58  ;;  %v1472_v49 = vrot.slane %v891_v12, %v5997_v31 }
  0xff   : > { %718 = vadd.xlane.f32.xlu1 %v717_v21  ;;  %4696 = vmatprep.subr.mxu0 %v5688_v60 }
 0x100   : > { %673 = vadd.xlane.f32.xlu0 %v672_v22  ;;  %v647_v27 = vpop.xlane.xlu1 %646  ;;  %4697 = vmatpush3.msra.mxu0 %v963_v29 }
 0x101   : > { %v602_v26 = vpop.xlane.xlu0 %601  ;;  %v892_v50 = vmul.f32 0.015625, %v647_v27  ;;  %v436_v27 = vld [vmem:[%s5789_s21 + $0x3f8] sm:$0xff]  ;;  %4698 = vmatprep.subr.mxu0 %v5688_v60 }
 0x102   : > { %v877_v21 = vmul.f32 0.015625, %v602_v26  ;;  %v1171_v26 = vadd.s32 4294967216, %v5931_v13 }
 0x103   : > { %808 = vadd.xlane.f32.xlu1 %v807_v32  ;;  %v434_v32 = vld [vmem:[%s5789_s21 + $0x3e8] sm:$0xff]  ;;  %v1477_v57 = vrot.slane %v892_v50, %v6024_v6  ;;  %v830_v50 = vmul.f32 0.015625, %v6109_v45 }
 0x104   : > { %763 = vadd.xlane.f32.xlu0 %v762_v35  ;;  %v6159_v42 = vpop.xlane.xlu1 %736  ;;  %v435_v35 = vld [vmem:[%s5789_s21 + $0x3f0] sm:$0xff]  ;;  %v1403_v61 = vrot.slane %v877_v21, %v6062_v62 }
 0x105   : > { %v692_v43 = vpop.xlane.xlu0 %691  ;;  %v816_v59 = vsel %vm437_vm0, %v435_v35, 0.0  ;;  %v831_v35 = vmul.f32 0.015625, %v6139_v9 }
 0x106   : > { %v907_v63 = vmul.f32 0.015625, %v692_v43 }
 0x107   : > { %721 = vadd.xlane.f32.xlu1 %v720_v44  ;;  %v1467_v44 = vrot.slane %v890_v5, %v5979_v3 }
 0x108   : > { %676 = vadd.xlane.f32.xlu0 %v675_v46  ;;  %v6166_v52 = vpop.xlane.xlu1 %466  ;;  %v1398_v46 = vrot.slane %v876_v7, %v6024_v6  ;;  %v819_v7 = vsel %vm437_vm0, %v436_v27, 0.0  ;;  %v1551_v27 = vrot.slane %v907_v63, %v5997_v31  ;;  %v862_v63 = vmul.f32 0.015625, %v6147_v17  ;;  %v959_v17 = vld [vmem:[%s8042_s1 + $0x40] sm:$0xff] }
 0x109   : > { %v6168_v53 = vpop.xlane.xlu0 %781  ;;  %v1468_v43 = vsel %vm1127_vm3, %v1467_v44, %v6054_v54  ;;  %v961_v54 = vld [vmem:[%s8042_s1 + $0x50] sm:$0xff] }
 0x10a   : > { %v1399_v21 = vsel %vm1141_vm5, %v1398_v46, %v6092_v33  ;;  %v1542_v46 = vsel %vm1120_vm2, %v1541_v8, %v6067_v4  ;;  %v960_v4 = vld [vmem:[%s8042_s1 + $0x48] sm:$0xff] }
 0x10b   : > { %811 = vadd.xlane.f32.xlu1 %v810_v55  ;;  %v771_v55 = vsel %vm437_vm0, %v420_v30, 0.0  ;;  %v962_v30 = vld [vmem:[%s8042_s1 + $0x58] sm:$0xff]  ;;  %v1404_v45 = vsel %vm1148_vm6, %v1403_v61, %v1399_v21  ;;  %v1161_v61 = vrot.slane %v831_v35, %v6204_v40  ;;  %v1329_v21 = vrot.slane %v862_v63, %v6190_v15 }
 0x10c   : > { %766 = vadd.xlane.f32.xlu0 %v765_v56  ;;  %v6192_v22 = vpop.xlane.xlu1 %559  ;;  %v813_v56 = vsel %vm437_vm0, %v434_v32, 0.0  ;;  %v1473_v32 = vsel %vm1134_vm4, %v1472_v49, %v1468_v43  ;;  %4699 = vmatpush3.msra.mxu0 %v962_v30 }
 0x10d   : > { %v6194_v23 = vpop.xlane.xlu0 %514  ;;  %v1478_v33 = vsel %vm1141_vm5, %v1477_v57, %v1473_v32  ;;  %4700 = vmatprep.subr.mxu0 %v5688_v60  ;;  %v863_v8 = vmul.f32 0.015625, %v6192_v22 }
 0x10e   : > { %4701 = vmatpush3.msra.mxu0 %v961_v54 }
 0x10f   : > { %769 = vadd.xlane.f32.xlu1 %v768_v14  ;;  %v6228_v14 = vsub.s32 %v1171_v26, %v5935_v16  ;;  %v832_v26 = vmul.f32 0.015625, %v6166_v52  ;;  %v1154_v52 = vrot.slane %v830_v50, %v6190_v15  ;;  %4702 = vmatprep.subr.mxu0 %v5688_v60 }
 0x110   : > { %724 = vadd.xlane.f32.xlu0 %v723_v25  ;;  %v650_v2 = vpop.xlane.xlu1 %649  ;;  %v1546_v25 = vrot.slane %v906_v47, %v5979_v3  ;;  %4703 = vmatpush3.msra.mxu0 %v960_v4 }
 0x111   : > { %v605_v5 = vpop.xlane.xlu0 %604  ;;  %v893_v11 = vmul.f32 0.015625, %v650_v2  ;;  %v847_v2 = vmul.f32 0.015625, %v6149_v20  ;;  %v6284_v20 = vmul.f32 0.015625, %v6099_v37  ;;  %4704 = vmatprep.subr.mxu0 %v5688_v60  ;;  %v958_v37 = vld [vmem:[%s8042_s1 + $0x38] sm:$0xff] }
 0x112   : > { %v878_v12 = vmul.f32 0.015625, %v605_v5  ;;  %v1547_v57 = vsel %vm1127_vm3, %v1546_v25, %v1542_v46  ;;  %4705 = vmatpush3.msra.mxu0 %v959_v17 }
 0x113   : > { %v1482_v58 = vrot.slane %v893_v11, %v6062_v62  ;;  %772 = vadd.xlane.f32.xlu1 %v771_v55  ;;  %v846_v55 = vmul.f32 0.015625, %v6107_v41  ;;  %v1552_v41 = vsel %vm1134_vm4, %v1551_v27, %v1547_v57  ;;  %v848_v11 = vmul.f32 0.015625, %v6194_v23  ;;  %4706 = vmatprep.subr.mxu0 %v5688_v60 }
 0x114   : > { %v1408_v36 = vrot.slane %v878_v12, %v6190_v15  ;;  %814 = vadd.xlane.f32.xlu0 %v813_v56  ;;  %v6251_v44 = vpop.xlane.xlu1 %739  ;;  %v861_v56 = vmul.f32 0.015625, %v6117_v51  ;;  %v1168_v51 = vrot.slane %v832_v26, %v6213_v48  ;;  %v1156_v23 = vsel %vm1155_vm7, %v1154_v52, %v6079_v19  ;;  %4707 = vmatpush3.msra.mxu0 %v958_v37 }
 0x115   : > { %v695_v9 = vpop.xlane.xlu0 %694  ;;  %v6256_v47 = vsel %vm1148_vm6, %v1482_v58, %v1478_v33  ;;  %v1250_v22 = vrot.slane %v846_v55, %v6190_v15  ;;  %v1163_v50 = vsel %vm1162_vm8, %v1161_v61, %v1156_v23  ;;  %v1255_v25 = vrot.slane %v847_v2, %v6204_v40  ;;  %4708 = vmatprep.subr.mxu0 %v5688_v60 }
 0x116   : > { %v6259_v29 = vsel %vm1155_vm7, %v1408_v36, %v1404_v45  ;;  %v908_v49 = vmul.f32 0.015625, %v695_v9  ;;  %v1324_v43 = vrot.slane %v861_v56, %v6062_v62  ;;  %v919_v19 = vmul.f32 0.015625, %v6101_v39  ;;  %v957_v45 = vld [vmem:[%s8042_s1 + $0x30] sm:$0xff]  ;;  %v956_v56 = vld [vmem:[%s8042_s1 + $0x28] sm:$0xff] }
 0x117   : > { %820 = vadd.xlane.f32.xlu1 %v819_v7  ;;  %v1170_v35 = vsel %vm1169_vm9, %v1168_v51, %v1163_v50  ;;  %v1334_v58 = vrot.slane %v863_v8, %v6204_v40  ;;  %v1260_v36 = vrot.slane %v848_v11, %v6213_v48  ;;  %v1615_v27 = vrot.slane %v6284_v20, %v5948_v28 }
 0x118   : > { %v1556_v5 = vrot.slane %v908_v49, %v6024_v6  ;;  %817 = vadd.xlane.f32.xlu0 %v816_v59  ;;  %v470_v12 = vpop.xlane.xlu1 %469  ;;  %v1251_v46 = vsel %vm1155_vm7, %v1250_v22, %v6076_v18  ;;  %v1325_v49 = vsel %vm1148_vm6, %v1324_v43, %v6095_v34  ;;  %v921_v55 = vmul.f32 0.015625, %v6133_v1  ;;  %4709 = vmatpush3.msra.mxu0 %v957_v45  ;;  %v954_v22 = vld [vmem:[%s8042_s1 + $0x18] sm:$0xff] }
 0x119   : > { %v6277_v30 = vpop.xlane.xlu0 %784  ;;  %v833_v7 = vmul.f32 0.015625, %v470_v12  ;;  %v922_v52 = vmul.f32 0.015625, %v6159_v42  ;;  %v1330_v57 = vsel %vm1155_vm7, %v1329_v21, %v1325_v49  ;;  %v1256_v4 = vsel %vm1162_vm8, %v1255_v25, %v1251_v46  ;;  %4710 = vmatprep.subr.mxu0 %v5688_v60 }
 0x11a   : > { %v6287_v59 = vsel %vm1141_vm5, %v1556_v5, %v1552_v41  ;;  %v1611_v34 = vrot.slane %v919_v19, %v5944_v24  ;;  %v1335_v1 = vsel %vm1162_vm8, %v1334_v58, %v1330_v57  ;;  %v1261_v42 = vsel %vm1169_vm9, %v1260_v36, %v1256_v4  ;;  %v955_v41 = vld [vmem:[%s8042_s1 + $0x20] sm:$0xff]  ;;  %4711 = vmatpush3.msra.mxu0 %v956_v56 }
 0x11b   : > { %v1175_v32 = vrot.slane %v833_v7, %v6228_v14  ;;  %v923_v63 = vmul.f32 0.015625, %v6251_v44  ;;  %v1620_v17 = vrot.slane %v921_v55, %v5956_v38  ;;  %v936_v44 = vmul.f32 0.015625, %v6141_v10  ;;  %4712 = vmatprep.subr.mxu0 %v5688_v60 }
 0x11c   : > { %v563_v54 = vpop.xlane.xlu1 %562  ;;  %v1625_v20 = vrot.slane %v922_v52, %v5979_v3  ;;  %v1178_v7 = vadd.s32 4294967208, %v5931_v13  ;;  %v937_v23 = vmul.f32 0.015625, %v6168_v53  ;;  %4713 = vmatpush3.msra.mxu0 %v955_v41  ;;  %v1616_v50 = vsel %vm1113_vm1, %v1615_v27, %v1611_v34  ;;  %v953_v53 = vld [vmem:[%s8042_s1 + $0x10] sm:$0xff]  ;;  %v951_v52 = vld [vmem:[%s8042_s1] sm:$0xff] }
 0x11d   : > { %v518_v33 = vpop.xlane.xlu0 %517  ;;  %v6312_v26 = vsel %vm1176_vm10, %v1175_v32, %v1170_v35  ;;  %v864_v39 = vmul.f32 0.015625, %v563_v54  ;;  %v935_v10 = vmul.f32 0.015625, %v6131_v0  ;;  %v1630_v21 = vrot.slane %v923_v63, %v5997_v31  ;;  %4714 = vmatprep.subr.mxu0 %v5688_v60 }
 0x11e   : > { %v849_v9 = vmul.f32 0.015625, %v518_v33  ;;  %v938_v25 = vmul.f32 0.015625, %v6277_v30  ;;  %4715 = vmatpush3.msra.mxu0 %v954_v22  ;;  %v1621_v36 = vsel %vm1120_vm2, %v1620_v17, %v1616_v50  ;;  %v1694_v54 = vrot.slane %v936_v44, %v5948_v28  ;;  %v1971_v17 = vld [vmem:[%s8043_s2 + $0x58] sm:$0xff] }
 0x11f   : > { %v1339_v61 = vrot.slane %v864_v39, %v6213_v48  ;;  %v6374_v33 = vsub.s32 %v1178_v7, %v5935_v16  ;;  %4716 = vmatprep.subr.mxu0 %v5688_v60  ;;  %v1626_v45 = vsel %vm1127_vm3, %v1625_v20, %v1621_v36  ;;  %v1690_v28 = vrot.slane %v935_v10, %v5944_v24  ;;  %v1974_v24 = vld [vmem:[%s8043_s2 + $0x70] sm:$0xff]  ;;  %v1969_v10 = vld [vmem:[%s8043_s2 + $0x48] sm:$0xff] }
 0x120   : > { %v1265_v18 = vrot.slane %v849_v9, %v6228_v14  ;;  %v653_v2 = vpop.xlane.xlu1 %652  ;;  %4717 = vmatpush3.msra.mxu0 %v953_v53  ;;  %v1631_v9 = vsel %vm1134_vm4, %v1630_v21, %v1626_v45  ;;  %v1704_v46 = vrot.slane %v938_v25, %v5979_v3 }
 0x121   : > { %v608_v5 = vpop.xlane.xlu0 %607  ;;  %v6337_v51 = vsel %vm1169_vm9, %v1339_v61, %v1335_v1  ;;  %v894_v11 = vmul.f32 0.015625, %v653_v2  ;;  %4718 = vmatprep.subr.mxu0 %v5688_v60  ;;  %v1695_v61 = vsel %vm1113_vm1, %v1694_v54, %v1690_v28  ;;  %v1967_v54 = vld [vmem:[%s8043_s2 + $0x38] sm:$0xff]  ;;  %vm1211_vm1 = vcmask 1048512  }
 0x122   : > { %v6340_v8 = vsel %vm1176_vm10, %v1265_v18, %v1261_v42  ;;  %v879_v12 = vmul.f32 0.015625, %v608_v5  ;;  %v1973_v18 = vld [vmem:[%s8043_s2 + $0x68] sm:$0xff]  ;;  %v1972_v5 = vld [vmem:[%s8043_s2 + $0x60] sm:$0xff] }
 0x123   : > { %v1487_v43 = vrot.slane %v894_v11, %v6190_v15 }
 0x124   : > { %v1413_v37 = vrot.slane %v879_v12, %v6204_v40  ;;  %v743_v32 = vpop.xlane.xlu1 %742 }
 0x125   : > { %v698_v19 = vpop.xlane.xlu0 %697  ;;  %v6365_v35 = vsel %vm1155_vm7, %v1487_v43, %v6256_v47  ;;  %v924_v30 = vmul.f32 0.015625, %v743_v32  ;;  %v952_v47 = vld [vmem:[%s8042_s1 + $0x8] sm:$0xff]  ;;  %v1185_v32 = vadd.s32 4294967200, %v5931_v13 }
 0x126   : > { %v6369_v0 = vsel %vm1162_vm8, %v1413_v37, %v6259_v29  ;;  %v909_v58 = vmul.f32 0.015625, %v698_v19  ;;  %v1699_v29 = vrot.slane %v937_v23, %v5956_v38  ;;  %v1975_v38 = vld [vmem:[%s8043_s2 + $0x78] sm:$0xff]  ;;  %4719 = vmatpush3.msra.mxu0 %v952_v47 }
 0x127   : > { %v1635_v27 = vrot.slane %v924_v30, %v6024_v6  ;;  %4725 = vmatprep.subr.mxu1 %v1975_v38  ;;  %4720 = vmatprep.subr.mxu0 %v5688_v60 }
 0x128   : > { %v1561_v39 = vrot.slane %v909_v58, %v6062_v62  ;;  %v473_v49 = vpop.xlane.xlu1 %472  ;;  %4726 = vmatpush3.msra.mxu1 %v1975_v38  ;;  %v1700_v34 = vsel %vm1120_vm2, %v1699_v29, %v1695_v61  ;;  %4721 = vmatpush3.msra.mxu0 %v951_v52  ;;  %v6451_v29 = vsub.s32 %v1185_v32, %v5935_v16  ;;  %vm1766_vm2 = vcmask 1041409  }
 0x129   : > { %v788_v55 = vpop.xlane.xlu0 %787  ;;  %v6398_v56 = vsel %vm1141_vm5, %v1635_v27, %v1631_v9  ;;  %v834_v57 = vmul.f32 0.015625, %v473_v49  ;;  %4727 = vmatprep.subr.mxu1 %v1974_v24  ;;  %v1705_v42 = vsel %vm1127_vm3, %v1704_v46, %v1700_v34  ;;  %4769 = vmatprep.subr.mxu0 %v5688_v60  ;;  %vm1768_vm3 = vcmask 1042434  }
 0x12a   : > { %v6402_v3 = vsel %vm1148_vm6, %v1561_v39, %v6287_v59  ;;  %v939_v4 = vmul.f32 0.015625, %v788_v55  ;;  %4728 = vmatpush3.msra.mxu1 %v1974_v24 }
 0x12b   : > { %v1182_v1 = vrot.slane %v834_v57, %v6374_v33  ;;  %4729 = vmatprep.subr.mxu1 %v1973_v18 }
 0x12c   : > { %v1709_v59 = vrot.slane %v939_v4, %v5997_v31  ;;  %v566_v63 = vpop.xlane.xlu1 %565  ;;  %4730 = vmatpush3.msra.mxu1 %v1973_v18 }
 0x12d   : > { %v521_v2 = vpop.xlane.xlu0 %520  ;;  %v1184_v41 = vsel %vm1183_vm12, %v1182_v1, %v6312_v26  ;;  %v865_v12 = vmul.f32 0.015625, %v566_v63  ;;  %4731 = vmatprep.subr.mxu1 %v1972_v5  ;;  %v1970_v26 = vld [vmem:[%s8043_s2 + $0x50] sm:$0xff] }
 0x12e   : > { %v1710_v11 = vsel %vm1134_vm4, %v1709_v59, %v1705_v42  ;;  %v850_v31 = vmul.f32 0.015625, %v521_v2  ;;  %4732 = vmatpush3.msra.mxu1 %v1972_v5  ;;  %v1192_v2 = vadd.s32 4294967192, %v5931_v13  ;;  %vm1770_vm4 = vcmask 1043459  }
 0x12f   : > { %v1344_v44 = vrot.slane %v865_v12, %v6228_v14  ;;  %4733 = vmatprep.subr.mxu1 %v1971_v17 }
 0x130   : > { %v1270_v20 = vrot.slane %v850_v31, %v6374_v33  ;;  %v656_v7 = vpop.xlane.xlu1 %655  ;;  %4734 = vmatpush3.msra.mxu1 %v1971_v17 }
 0x131   : > { %v611_v22 = vpop.xlane.xlu0 %610  ;;  %v1345_v23 = vsel %vm1176_vm10, %v1344_v44, %v6337_v51  ;;  %v895_v37 = vmul.f32 0.015625, %v656_v7  ;;  %4735 = vmatprep.subr.mxu1 %v1970_v26  ;;  %v6473_v7 = vsub.s32 %v1192_v2, %v5935_v16 }
 0x132   : > { %v1271_v43 = vsel %vm1183_vm12, %v1270_v20, %v6340_v8  ;;  %v880_v50 = vmul.f32 0.015625, %v611_v22  ;;  %4736 = vmatpush3.msra.mxu1 %v1970_v26  ;;  %v1968_v8 = vld [vmem:[%s8043_s2 + $0x40] sm:$0xff] }
 0x133   : > { %v1492_v21 = vrot.slane %v895_v37, %v6204_v40  ;;  %4737 = vmatprep.subr.mxu1 %v1969_v10 }
 0x134   : > { %v1418_v25 = vrot.slane %v880_v50, %v6213_v48  ;;  %v746_v19 = vpop.xlane.xlu1 %745  ;;  %4738 = vmatpush3.msra.mxu1 %v1969_v10 }
 0x135   : > { %v701_v51 = vpop.xlane.xlu0 %700  ;;  %v1493_v53 = vsel %vm1162_vm8, %v1492_v21, %v6365_v35  ;;  %v925_v58 = vmul.f32 0.015625, %v746_v19  ;;  %4739 = vmatprep.subr.mxu1 %v1968_v8 }
 0x136   : > { %v1419_v30 = vsel %vm1169_vm9, %v1418_v25, %v6369_v0  ;;  %v910_v36 = vmul.f32 0.015625, %v701_v51  ;;  %4740 = vmatpush3.msra.mxu1 %v1968_v8 }
 0x137   : > { %v1640_v47 = vrot.slane %v925_v58, %v6062_v62  ;;  %4741 = vmatprep.subr.mxu1 %v1967_v54 }
 0x138   : > { %v1566_v45 = vrot.slane %v910_v36, %v6190_v15  ;;  %v476_v35 = vpop.xlane.xlu1 %475  ;;  %4742 = vmatpush3.msra.mxu1 %v1967_v54 }
 0x139   : > { %v791_v27 = vpop.xlane.xlu0 %790  ;;  %v1641_v0 = vsel %vm1148_vm6, %v1640_v47, %v6398_v56  ;;  %v835_v28 = vmul.f32 0.015625, %v476_v35 }
 0x13a   : > { %v1567_v39 = vsel %vm1155_vm7, %v1566_v45, %v6402_v3  ;;  %v940_v9 = vmul.f32 0.015625, %v791_v27 }
 0x13b   : > { %v1189_v46 = vrot.slane %v835_v28, %v6451_v29 }
 0x13c   : > { %v1714_v49 = vrot.slane %v940_v9, %v6024_v6  ;;  %v569_v55 = vpop.xlane.xlu1 %568 }
 0x13d   : > { %v524_v52 = vpop.xlane.xlu0 %523  ;;  %v1191_v38 = vsel %vm1190_vm13, %v1189_v46, %v1184_v41  ;;  %v866_v57 = vmul.f32 0.015625, %v569_v55 }
 0x13e   : > { %v1715_v24 = vsel %vm1141_vm5, %v1714_v49, %v1710_v11  ;;  %v851_v56 = vmul.f32 0.015625, %v524_v52  ;;  %vm1772_vm5 = vcmask 1044484  }
 0x13f   : > { %v1349_v4 = vrot.slane %v866_v57, %v6374_v33 }
 0x140   : > { %v1275_v3 = vrot.slane %v851_v56, %v6451_v29  ;;  %v659_v61 = vpop.xlane.xlu1 %658 }
 0x141   : > { %v614_v18 = vpop.xlane.xlu0 %613  ;;  %v1350_v34 = vsel %vm1183_vm12, %v1349_v4, %v1345_v23  ;;  %v896_v59 = vmul.f32 0.015625, %v659_v61 }
 0x142   : > { %v1276_v1 = vsel %vm1190_vm13, %v1275_v3, %v1271_v43  ;;  %v881_v6 = vmul.f32 0.015625, %v614_v18 }
 0x143   : > { %v1497_v42 = vrot.slane %v896_v59, %v6213_v48 }
 0x144   : > { %v1423_v63 = vrot.slane %v881_v6, %v6228_v14  ;;  %v749_v5 = vpop.xlane.xlu1 %748 }
 0x145   : > { %v704_v41 = vpop.xlane.xlu0 %703  ;;  %v1498_v11 = vsel %vm1169_vm9, %v1497_v42, %v1493_v53  ;;  %v926_v31 = vmul.f32 0.015625, %v749_v5 }
 0x146   : > { %v1424_v12 = vsel %vm1176_vm10, %v1423_v63, %v1419_v30  ;;  %v911_v17 = vmul.f32 0.015625, %v704_v41 }
 0x147   : > { %v1645_v44 = vrot.slane %v926_v31, %v6190_v15  ;;  %v1206_v31 = vadd.s32 4294967176, %v5931_v13 }
 0x148   : > { %v1571_v20 = vrot.slane %v911_v17, %v6204_v40  ;;  %v479_v22 = vpop.xlane.xlu1 %478 }
 0x149   : > { %v794_v26 = vpop.xlane.xlu0 %793  ;;  %v1646_v23 = vsel %vm1155_vm7, %v1645_v44, %v1641_v0  ;;  %v836_v37 = vmul.f32 0.015625, %v479_v22 }
 0x14a   : > { %v1572_v43 = vsel %vm1162_vm8, %v1571_v20, %v1567_v39  ;;  %v941_v50 = vmul.f32 0.015625, %v794_v26  ;;  %v1199_v39 = vadd.s32 4294967184, %v5931_v13 }
 0x14b   : > { %v1196_v10 = vrot.slane %v836_v37, %v6473_v7 }
 0x14c   : > { %v1719_v21 = vrot.slane %v941_v50, %v6062_v62  ;;  %v572_v25 = vpop.xlane.xlu1 %571  ;;  %v6499_v57 = vsub.s32 %v1199_v39, %v5935_v16 }
 0x14d   : > { %v527_v32 = vpop.xlane.xlu0 %526  ;;  %v1198_v19 = vsel %vm1197_vm14, %v1196_v10, %v1191_v38  ;;  %v867_v8 = vmul.f32 0.015625, %v572_v25 }
 0x14e   : > { %v1720_v51 = vsel %vm1148_vm6, %v1719_v21, %v1715_v24  ;;  %v852_v53 = vmul.f32 0.015625, %v527_v32  ;;  %vm1774_vm6 = vcmask 1045509  }
 0x14f   : > { %v1354_v30 = vrot.slane %v867_v8, %v6451_v29 }
 0x150   : > { %v1280_v58 = vrot.slane %v852_v53, %v6473_v7  ;;  %v662_v36 = vpop.xlane.xlu1 %661 }
 0x151   : > { %v617_v54 = vpop.xlane.xlu0 %616  ;;  %v6484_v47 = vsel %vm1190_vm13, %v1354_v30, %v1350_v34  ;;  %v897_v62 = vmul.f32 0.015625, %v662_v36 }
 0x152   : > { %v1281_v45 = vsel %vm1197_vm14, %v1280_v58, %v1276_v1  ;;  %v882_v35 = vmul.f32 0.015625, %v617_v54 }
 0x153   : > { %v1502_v27 = vrot.slane %v897_v62, %v6228_v14 }
 0x154   : > { %v1428_v0 = vrot.slane %v882_v35, %v6374_v33  ;;  %v752_v28 = vpop.xlane.xlu1 %751 }
 0x155   : > { %v707_v9 = vpop.xlane.xlu0 %706  ;;  %v6491_v46 = vsel %vm1176_vm10, %v1502_v27, %v1498_v11  ;;  %v927_v55 = vmul.f32 0.015625, %v752_v28 }
 0x156   : > { %v6494_v49 = vsel %vm1183_vm12, %v1428_v0, %v1424_v12  ;;  %v912_v52 = vmul.f32 0.015625, %v707_v9 }
 0x157   : > { %v1650_v38 = vrot.slane %v927_v55, %v6204_v40 }
 0x158   : > { %v1576_v24 = vrot.slane %v912_v52, %v6213_v48  ;;  %v482_v56 = vpop.xlane.xlu1 %481 }
 0x159   : > { %v797_v4 = vpop.xlane.xlu0 %796  ;;  %v6502_v3 = vsel %vm1162_vm8, %v1650_v38, %v1646_v23  ;;  %v837_v18 = vmul.f32 0.015625, %v482_v56 }
 0x15a   : > { %v6505_v61 = vsel %vm1169_vm9, %v1576_v24, %v1572_v43  ;;  %v942_v34 = vmul.f32 0.015625, %v797_v4 }
 0x15b   : > { %v1203_v1 = vrot.slane %v837_v18, %v6499_v57 }
 0x15c   : > { %v1724_v59 = vrot.slane %v942_v34, %v6190_v15  ;;  %v575_v6 = vpop.xlane.xlu1 %574  ;;  %v6521_v15 = vsub.s32 %v1206_v31, %v5935_v16 }
 0x15d   : > { %v530_v42 = vpop.xlane.xlu0 %529  ;;  %v1205_v63 = vsel %vm1204_vm15, %v1203_v1, %v1198_v19  ;;  %v868_v53 = vmul.f32 0.015625, %v575_v6 }
 0x15e   : > { %v6511_v2 = vsel %vm1155_vm7, %v1724_v59, %v1720_v51  ;;  %v853_v17 = vmul.f32 0.015625, %v530_v42  ;;  %vm1776_vm7 = vcmask 1046534  }
 0x15f   : > { %v1359_v54 = vrot.slane %v868_v53, %v6473_v7 }
 0x160   : > { %v665_v5 = vpop.xlane.xlu1 %664  ;;  %v1285_v26 = vrot.slane %v853_v17, %v6499_v57 }
 0x161   : > { %v620_v41 = vpop.xlane.xlu0 %619  ;;  %v1360_v0 = vsel %vm1197_vm14, %v1359_v54, %v6484_v47 }
 0x162   : > { %v1286_v21 = vsel %vm1204_vm15, %v1285_v26, %v1281_v45  ;;  %v883_v38 = vmul.f32 0.015625, %v620_v41 }
 0x164   : > { %v6513_v11 = vpop.xlane.xlu1 %754  ;;  %v1433_v1 = vrot.slane %v883_v38, %v6451_v29 }
 0x165   : > { %v6515_v12 = vpop.xlane.xlu0 %709 }
 0x166   : > { %v1434_v31 = vsel %vm1190_vm13, %v1433_v1, %v6494_v49  ;;  %v913_v53 = vmul.f32 0.015625, %v6515_v12 }
 0x168   : > { %v485_v44 = vpop.xlane.xlu1 %484  ;;  %v1581_v12 = vrot.slane %v913_v53, %v6228_v14 }
 0x169   : > { %v6518_v20 = vpop.xlane.xlu0 %799  ;;  %v838_v22 = vmul.f32 0.015625, %v485_v44 }
 0x16a   : > { %v943_v38 = vmul.f32 0.015625, %v6518_v20 }
 0x16b   : > { %v1210_v37 = vrot.slane %v838_v22, %v6521_v15 }
 0x16c   : > { %v578_v23 = vpop.xlane.xlu1 %577 }
 0x16d   : > { %v533_v43 = vpop.xlane.xlu0 %532  ;;  %v1212_v19 = vsel %vm1211_vm1, %v1210_v37, %v1205_v63  ;;  %v869_v30 = vmul.f32 0.015625, %v578_v23  ;;  %v898_v23 = vmul.f32 0.015625, %v665_v5 }
 0x16e   : > { %v854_v50 = vmul.f32 0.015625, %v533_v43 }
 0x16f   : > { %v1364_v62 = vrot.slane %v869_v30, %v6499_v57  ;;  %v1507_v49 = vrot.slane %v898_v23, %v6374_v33 }
 0x170   : > { %v1290_v10 = vrot.slane %v854_v50, %v6521_v15  ;;  %v668_v25 = vpop.xlane.xlu1 %667 }
 0x171   : > { %v623_v32 = vpop.xlane.xlu0 %622  ;;  %v1365_v28 = vsel %vm1204_vm15, %v1364_v62, %v1360_v0  ;;  %v899_v37 = vmul.f32 0.015625, %v668_v25  ;;  %v1508_v62 = vsel %vm1183_vm12, %v1507_v49, %v6491_v46 }
 0x172   : > { %v1291_v51 = vsel %vm1211_vm1, %v1290_v10, %v1286_v21  ;;  %v884_v56 = vmul.f32 0.015625, %v623_v32 }
 0x173   : > { %v1767_v8 = vsel %vm1766_vm2, %v1291_v51, %v1212_v19  ;;  %v928_v51 = vmul.f32 0.015625, %v6513_v11 }
 0x174   : > { %v758_v58 = vpop.xlane.xlu1 %757  ;;  %v1438_v47 = vrot.slane %v884_v56, %v6473_v7 }
 0x175   : > { %v713_v36 = vpop.xlane.xlu0 %712  ;;  %v1655_v0 = vrot.slane %v928_v51, %v6213_v48 }
 0x176   : > { %v1439_v41 = vsel %vm1197_vm14, %v1438_v47, %v1434_v31 }
 0x177   : > { %v1656_v20 = vsel %vm1169_vm9, %v1655_v0, %v6502_v3 }
 0x178   : > { %v581_v35 = vpop.xlane.xlu1 %580 }
 0x179   : > { %v6532_v27 = vpop.xlane.xlu0 %802  ;;  %v870_v45 = vmul.f32 0.015625, %v581_v35  ;;  %v914_v35 = vmul.f32 0.015625, %v713_v36 }
 0x17b   : > { %v1369_v39 = vrot.slane %v870_v45, %v6521_v15  ;;  %v1586_v1 = vrot.slane %v914_v35, %v6374_v33 }
 0x17c   : > { %v671_v9 = vpop.xlane.xlu1 %670 }
 0x17d   : > { %v626_v55 = vpop.xlane.xlu0 %625  ;;  %v1370_v52 = vsel %vm1211_vm1, %v1369_v39, %v1365_v28  ;;  %v900_v10 = vmul.f32 0.015625, %v671_v9  ;;  %v929_v39 = vmul.f32 0.015625, %v758_v58 }
 0x17e   : > { %v1769_v24 = vsel %vm1768_vm3, %v1370_v52, %v1767_v8  ;;  %v885_v4 = vmul.f32 0.015625, %v626_v55  ;;  %v1512_v8 = vrot.slane %v899_v37, %v6451_v29 }
 0x17f   : > { %v1517_v30 = vrot.slane %v900_v10, %v6473_v7 }
 0x180   : > { %v761_v18 = vpop.xlane.xlu1 %760  ;;  %v1443_v59 = vrot.slane %v885_v4, %v6499_v57  ;;  %v1513_v11 = vsel %vm1190_vm13, %v1512_v8, %v1508_v62 }
 0x181   : > { %v716_v34 = vpop.xlane.xlu0 %715  ;;  %v1518_v9 = vsel %vm1197_vm14, %v1517_v30, %v1513_v11 }
 0x182   : > { %v1444_v44 = vsel %vm1204_vm15, %v1443_v59, %v1439_v41  ;;  %v915_v28 = vmul.f32 0.015625, %v716_v34  ;;  %v1660_v34 = vrot.slane %v929_v39, %v6228_v14  ;;  %v1729_v41 = vrot.slane %v943_v38, %v6204_v40 }
 0x184   : > { %v629_v6 = vpop.xlane.xlu1 %628  ;;  %v1591_v47 = vrot.slane %v915_v28, %v6451_v29  ;;  %v1730_v11 = vsel %vm1162_vm8, %v1729_v41, %v6511_v2  ;;  %vm1778_vm8 = vcmask 1047559   ;;  %v6657_v41 = vld [vmem:[%s5789_s21 + $0x38] sm:$0xff] }
 0x185   : > { %v806_v42 = vpop.xlane.xlu0 %805  ;;  %v886_v63 = vmul.f32 0.015625, %v629_v6 }
 0x186   : > { %v945_v37 = vmul.f32 0.015625, %v806_v42 }
 0x187   : > { %v1448_v17 = vrot.slane %v886_v63, %v6521_v15 }
 0x188   : > { %v719_v22 = vpop.xlane.xlu1 %718 }
 0x189   : > { %v674_v26 = vpop.xlane.xlu0 %673  ;;  %v1449_v43 = vsel %vm1211_vm1, %v1448_v17, %v1444_v44  ;;  %v916_v55 = vmul.f32 0.015625, %v719_v22  ;;  %v944_v17 = vmul.f32 0.015625, %v6532_v27 }
 0x18a   : > { %v1771_v50 = vsel %vm1770_vm4, %v1449_v43, %v1769_v24  ;;  %v901_v21 = vmul.f32 0.015625, %v674_v26  ;;  %v930_v24 = vmul.f32 0.015625, %v761_v18  ;;  %v1582_v18 = vsel %vm1176_vm10, %v1581_v12, %v6505_v61 }
 0x18b   : > { %v1596_v63 = vrot.slane %v916_v55, %v6473_v7  ;;  %v1587_v43 = vsel %vm1183_vm12, %v1586_v1, %v1582_v18  ;;  %v1661_v61 = vsel %vm1176_vm10, %v1660_v34, %v1656_v20  ;;  %v1734_v8 = vrot.slane %v944_v17, %v6213_v48  ;;  %v6637_v20 = vld [vmem:[%s5789_s21 + $0x58] sm:$0xff]  ;;  %v6642_v18 = vld [vmem:[%s5789_s21 + $0x50] sm:$0xff] }
 0x18c   : > { %v809_v32 = vpop.xlane.xlu1 %808  ;;  %v1522_v5 = vrot.slane %v901_v21, %v6499_v57  ;;  %v1665_v44 = vrot.slane %v930_v24, %v6374_v33  ;;  %v1592_v10 = vsel %vm1190_vm13, %v1591_v47, %v1587_v43  ;;  %v6662_v17 = vld [vmem:[%s5789_s21 + $0x30] sm:$0xff]  ;;  %v6687_v43 = vld [vmem:[%s5789_s21 + $0x8] sm:$0xff] }
 0x18d   : > { %v764_v19 = vpop.xlane.xlu0 %763  ;;  %v946_v21 = vmul.f32 0.015625, %v809_v32  ;;  %v1597_v27 = vsel %vm1197_vm14, %v1596_v63, %v1592_v10  ;;  %v1739_v32 = vrot.slane %v945_v37, %v6228_v14  ;;  %v1735_v12 = vsel %vm1169_vm9, %v1734_v8, %v1730_v11  ;;  %v6647_v63 = vld [vmem:[%s5789_s21 + $0x48] sm:$0xff]  ;;  %v6692_v37 = vld [vmem:[%s5789_s21] sm:$0xff]  ;;  %v1963_v10 = vld [vmem:[%s8043_s2 + $0x18] sm:$0xff] }
 0x18e   : > { %v1523_v46 = vsel %vm1204_vm15, %v1522_v5, %v1518_v9  ;;  %v931_v59 = vmul.f32 0.015625, %v764_v19  ;;  %v1666_v42 = vsel %vm1183_vm12, %v1665_v44, %v1661_v61  ;;  %v6667_v44 = vld [vmem:[%s5789_s21 + $0x28] sm:$0xff]  ;;  %v1964_v61 = vld [vmem:[%s8043_s2 + $0x20] sm:$0xff] }
 0x18f   : > { %v1740_v38 = vsel %vm1176_vm10, %v1739_v32, %v1735_v12 }
 0x190   : > { %v722_v54 = vpop.xlane.xlu1 %721  ;;  %v1670_v40 = vrot.slane %v931_v59, %v6451_v29  ;;  %v6615_v59 = vld [vmem:[%s5789_s21 + $0x78] sm:$0xff] }
 0x191   : > { %v677_v25 = vpop.xlane.xlu0 %676  ;;  %v917_v36 = vmul.f32 0.015625, %v722_v54 }
 0x192   : > { %v902_v45 = vmul.f32 0.015625, %v677_v25  ;;  %v1671_v0 = vsel %vm1190_vm13, %v1670_v40, %v1666_v42  ;;  %v1961_v40 = vld [vmem:[%s8043_s2 + $0x8] sm:$0xff]  ;;  %v4191_v42 = vld [vmem:[%s8046_s5] ss:$0 sm:$0xff] }
 0x193   : > { %v1601_v22 = vrot.slane %v917_v36, %v6499_v57 }
 0x194   : > { %v1527_v52 = vrot.slane %v902_v45, %v6521_v15  ;;  %v812_v56 = vpop.xlane.xlu1 %811  ;;  %v1744_v45 = vrot.slane %v946_v21, %v6374_v33  ;;  %v1962_v21 = vld [vmem:[%s8043_s2 + $0x10] sm:$0xff] }
 0x195   : > { %v767_v4 = vpop.xlane.xlu0 %766  ;;  %v947_v19 = vmul.f32 0.015625, %v812_v56  ;;  %v1602_v53 = vsel %vm1204_vm15, %v1601_v22, %v1597_v27  ;;  %v6672_v22 = vld [vmem:[%s5789_s21 + $0x20] sm:$0xff] }
 0x196   : > { %v1528_v58 = vsel %vm1211_vm1, %v1527_v52, %v1523_v46  ;;  %v932_v31 = vmul.f32 0.015625, %v767_v4  ;;  %v1960_v27 = vld [vmem:[%s8043_s2] sm:$0xff] }
 0x197   : > { %v1773_v6 = vsel %vm1772_vm5, %v1528_v58, %v1771_v50  ;;  %v1749_v39 = vrot.slane %v947_v19, %v6451_v29  ;;  %v1745_v29 = vsel %vm1183_vm12, %v1744_v45, %v1740_v38  ;;  %v5690_v19 = vmov 1966171168  }
 0x198   : > { %v770_v26 = vpop.xlane.xlu1 %769  ;;  %v1675_v49 = vrot.slane %v932_v31, %v6473_v7  ;;  %v6652_v31 = vld [vmem:[%s5789_s21 + $0x40] sm:$0xff] }
 0x199   : > { %v725_v23 = vpop.xlane.xlu0 %724  ;;  %v933_v3 = vmul.f32 0.015625, %v770_v26  ;;  %v1750_v56 = vsel %vm1190_vm13, %v1749_v39, %v1745_v29  ;;  %v6677_v26 = vld [vmem:[%s5789_s21 + $0x18] sm:$0xff] }
 0x19a   : > { %v918_v50 = vmul.f32 0.015625, %v725_v23  ;;  %v1676_v28 = vsel %vm1197_vm14, %v1675_v49, %v1671_v0  ;;  %v6682_v23 = vld [vmem:[%s5789_s21 + $0x10] sm:$0xff]  ;;  %v1865_v49 = vunpack.c.l.s4 %v5690_v19  ;;  %v1914_v0 = vsub.s32 0, %v5935_v16 }
 0x19b   : > { %v1680_v30 = vrot.slane %v933_v3, %v6499_v57  ;;  %v1966_v3 = vld [vmem:[%s8043_s2 + $0x30] sm:$0xff] }
 0x19c   : > { %v1606_v51 = vrot.slane %v918_v50, %v6521_v15  ;;  %v773_v5 = vpop.xlane.xlu1 %772  ;;  %4743 = vmatprep.subr.mxu1 %v1966_v3  ;;  %v1965_v50 = vld [vmem:[%s8043_s2 + $0x28] sm:$0xff]  ;;  %v1866_v8 = vunpack.c.0.s8 %v1865_v49  ;;  %v6764_v49 = vld [vmem:[%s5789_s21 + $0xd0] sm:$0xff] }
 0x19d   : > { %v815_v54 = vpop.xlane.xlu0 %814  ;;  %v934_v62 = vmul.f32 0.015625, %v773_v5  ;;  %v1681_v9 = vsel %vm1204_vm15, %v1680_v30, %v1676_v28  ;;  %4744 = vmatpush3.msra.mxu1 %v1966_v3  ;;  %v6741_v3 = vld [vmem:[%s5789_s21 + $0xf0] sm:$0xff] }
 0x19e   : > { %v1607_v25 = vsel %vm1211_vm1, %v1606_v51, %v1602_v53  ;;  %v948_v35 = vmul.f32 0.015625, %v815_v54  ;;  %4745 = vmatprep.subr.mxu1 %v1965_v50  ;;  %v1856_v51 = vadd.s32 1, %v5935_v16  ;;  %v1854_v53 = vmul.u32 16, %v5935_v16 }
 0x19f   : > { %v1775_v48 = vsel %vm1774_vm6, %v1607_v25, %v1773_v6  ;;  %v1685_v14 = vrot.slane %v934_v62, %v6521_v15  ;;  %v6632_v6 = vld [vmem:[%s5789_s21 + $0x60] sm:$0xff]  ;;  %4746 = vmatpush3.msra.mxu1 %v1965_v50  ;;  %v1869_v32 = vsub.s32 %v1866_v8, %v5935_v16  ;;  %v6746_v50 = vld [vmem:[%s5789_s21 + $0xe8] sm:$0xff] }
 0x1a0   : > { %v1754_v33 = vrot.slane %v948_v35, %v6473_v7  ;;  %v821_v52 = vpop.xlane.xlu1 %820  ;;  %4747 = vmatprep.subr.mxu1 %v1964_v61  ;;  %v1857_v30 = vmul.u32 16, %v1856_v51  ;;  %vm1855_vm9 = vcmp.ge.s32.totalorder %v5931_v13, %v1854_v53  ;;  %v6769_v51 = vld [vmem:[%s5789_s21 + $0xc8] sm:$0xff]  ;;  %v6776_v8 = vld [vmem:[%s5789_s21 + $0xc0] sm:$0xff]  ;;  %v6786_v53 = vld [vmem:[%s5789_s21 + $0xb0] sm:$0xff] }
 0x1a1   : > { %v818_v55 = vpop.xlane.xlu0 %817  ;;  %v950_v46 = vmul.f32 0.015625, %v821_v52  ;;  %v1686_v2 = vsel %vm1211_vm1, %v1685_v14, %v1681_v9  ;;  %4748 = vmatpush3.msra.mxu1 %v1964_v61 }
 0x1a2   : > { %v949_v24 = vmul.f32 0.015625, %v818_v55  ;;  %v1777_v36 = vsel %vm1776_vm7, %v1686_v2, %v1775_v48  ;;  %v1755_v1 = vsel %vm1197_vm14, %v1754_v33, %v1750_v56  ;;  %4749 = vmatprep.subr.mxu1 %v1963_v10  ;;  %vm1858_vm10 = vcmp.lt.s32.totalorder %v5931_v13, %v1857_v30  ;;  %v6791_v30 = vld [vmem:[%s5789_s21 + $0xa8] sm:$0xff] }
 0x1a3   : > { %v1764_v7 = vrot.slane %v950_v46, %v6521_v15  ;;  %v6627_v15 = vld [vmem:[%s5789_s21 + $0x68] sm:$0xff]  ;;  %4750 = vmatpush3.msra.mxu1 %v1963_v10  ;;  %vm1859_vm12 = vmand %vm1855_vm9, %vm1858_vm10 }
 0x1a4   : > { %v1759_v4 = vrot.slane %v949_v24, %v6499_v57  ;;  %v6622_v57 = vld [vmem:[%s5789_s21 + $0x70] sm:$0xff]  ;;  %4751 = vmatprep.subr.mxu1 %v1962_v21  ;;  %v6728_v12 = vsel %vm1859_vm12, 1.0, %v5688_v60 }
 0x1a5   : > { %4752 = vmatpush3.msra.mxu1 %v1962_v21  ;;  %8121 = vst [vmem:[#allocation5_spill] sm:$0xff] %v6728_v12 }
 0x1a6   : > { %v1760_v58 = vsel %vm1204_vm15, %v1759_v4, %v1755_v1  ;;  %4753 = vmatprep.subr.mxu1 %v1961_v40  ;;  %v6734_v4 = vld [vmem:[%s5789_s21 + $0xf8] sm:$0xff] }
 0x1a7   : > { %v1765_v34 = vsel %vm1211_vm1, %v1764_v7, %v1760_v58  ;;  %4754 = vmatpush3.msra.mxu1 %v1961_v40  ;;  %v6753_v40 = vld [vmem:[%s5789_s21 + $0xe0] sm:$0xff] }
 0x1a8   : > { %v1779_v47 = vsel %vm1778_vm8, %v1765_v34, %v1777_v36  ;;  %4755 = vmatprep.subr.mxu1 %v1960_v27 }
 0x1a9   : > { %4723 = vmatmul.mubr.f32.vlgmr.msra.gmra.mxu0 %v1779_v47  ;;  %4756 = vmatpush3.msra.mxu1 %v1960_v27  ;;  %v6758_v27 = vld [vmem:[%s5789_s21 + $0xd8] sm:$0xff] }
 0x1aa   : > { %4770 = vmatpush3.msra.mxu0 %v6615_v59  ;;  %4801 = vmatprep.mubr.msk.f32.mxu0 %vm5689_vm11, %v5688_v60 }
 0x1ab   : > { %4771 = vmatprep.subr.mxu0 %v5688_v60  ;;  %4804 = vmatprep.subr.mxu1 %v5688_v60 }
 0x1ac   : > { %4772 = vmatpush3.msra.mxu0 %v6622_v57 }
 0x1ad   : > { %4773 = vmatprep.subr.mxu0 %v5688_v60 }
 0x1ae   : > { %4774 = vmatpush3.msra.mxu0 %v6627_v15 }
 0x1af   : > { %4775 = vmatprep.subr.mxu0 %v5688_v60 }
 0x1b0   : > { %4776 = vmatpush3.msra.mxu0 %v6632_v6 }
 0x1b1   : > { %4777 = vmatprep.subr.mxu0 %v5688_v60 }
 0x1b2   : > { %4778 = vmatpush3.msra.mxu0 %v6637_v20 }
 0x1b3   : > { %4779 = vmatprep.subr.mxu0 %v5688_v60 }
 0x1b4   : > { %4780 = vmatpush3.msra.mxu0 %v6642_v18 }
 0x1b5   : > { %4781 = vmatprep.subr.mxu0 %v5688_v60 }
 0x1b6   : > { %4782 = vmatpush3.msra.mxu0 %v6647_v63 }
 0x1b7   : > { %4783 = vmatprep.subr.mxu0 %v5688_v60 }
 0x1b8   : > { %4784 = vmatpush3.msra.mxu0 %v6652_v31 }
 0x1b9   : > { %4785 = vmatprep.subr.mxu0 %v5688_v60 }
 0x1ba   : > { %4786 = vmatpush3.msra.mxu0 %v6657_v41 }
 0x1bb   : > { %4787 = vmatprep.subr.mxu0 %v5688_v60 }
 0x1bc   : > { %4788 = vmatpush3.msra.mxu0 %v6662_v17 }
 0x1bd   : > { %4789 = vmatprep.subr.mxu0 %v5688_v60 }
 0x1be   : > { %4790 = vmatpush3.msra.mxu0 %v6667_v44 }
 0x1bf   : > { %4791 = vmatprep.subr.mxu0 %v5688_v60 }
 0x1c0   : > { %4792 = vmatpush3.msra.mxu0 %v6672_v22 }
 0x1c1   : > { %4793 = vmatprep.subr.mxu0 %v5688_v60 }
 0x1c2   : > { %4794 = vmatpush3.msra.mxu0 %v6677_v26 }
 0x1c3   : > { %4795 = vmatprep.subr.mxu0 %v5688_v60 }
 0x1c4   : > { %4796 = vmatpush3.msra.mxu0 %v6682_v23 }
 0x1c5   : > { %4797 = vmatprep.subr.mxu0 %v5688_v60 }
 0x1c6   : > { %4798 = vmatpush3.msra.mxu0 %v6687_v43 }
 0x1c7   : > { %4799 = vmatprep.subr.mxu0 %v5688_v60 }
 0x1c8   : > { %4800 = vmatpush3.msra.mxu0 %v6692_v37 }
 0x1c9   : > { %4839 = vmatprep.subr.mxu0 %v5688_v60 }
 0x269   : > { %v1847_v5 = vpop.f32.mrf.mxu0 }
 0x26a   : > { %v1848_v54 = vadd.f32 %v4191_v42, %v1847_v5  ;;  %v6781_v42 = vld [vmem:[%s5789_s21 + $0xb8] sm:$0xff]  ;;  %v6796_v5 = vld [vmem:[%s5789_s21 + $0xa0] sm:$0xff] }
 0x26b   : > { %v4724_v25 = vpop.f32.mrf.mxu0 }
 0x26c   : > { %v1851_v62 = vmul.f32 0.25, %v1848_v54  ;;  %v6801_v54 = vld [vmem:[%s5789_s21 + $0x98] sm:$0xff]  ;;  %v6811_v25 = vld [vmem:[%s5789_s21 + $0x88] sm:$0xff] }
 0x26e   : > { %v1863_v35 = vcombine.high %v1851_v62, %v1851_v62  ;;  %v1870_v45 = vrot.slane %v1851_v62, %v1869_v32  ;;  %v6816_v62 = vld [vmem:[%s5789_s21 + $0x80] sm:$0xff] }
 0x270   : > { %v1877_v48 = vrot.slane %v1863_v35, %v1869_v32  ;;  %v1878_v11 = vcombine.high %v1870_v45, %v1870_v45  ;;  %v1886_v39 = vrot.slane %v1870_v45, %v1869_v32  ;;  %v6821_v45 = vld [vmem:[%s5789_s21 + $0x1f8] sm:$0xff] }
 0x272   : > { %v1879_v28 = vcombine.high %v1877_v48, %v1877_v48  ;;  %v1900_v14 = vrot.slane %v1878_v11, %v1869_v32  ;;  %v1908_v9 = vcombine.high %v1886_v39, %v1886_v39  ;;  %v1893_v33 = vrot.slane %v1877_v48, %v1869_v32  ;;  %v6828_v48 = vld [vmem:[%s5789_s21 + $0x178] sm:$0xff]  ;;  %v6832_v11 = vld [vmem:[%s5789_s21 + $0x1f0] sm:$0xff] }
 0x273   : > { %v1915_v55 = vrot.slane %v1886_v39, %v1914_v0  ;;  %v6838_v39 = vld [vmem:[%s5789_s21 + $0x170] sm:$0xff] }
 0x274   : > { %v1919_v52 = vrot.slane %v1900_v14, %v1914_v0  ;;  %v1923_v38 = vrot.slane %v1908_v9, %v1914_v0  ;;  %v1910_v13 = vcombine.high %v1900_v14, %v1900_v14  ;;  %v1907_v29 = vrot.slane %v1879_v28, %v1869_v32  ;;  %v6806_v32 = vld [vmem:[%s5789_s21 + $0x90] sm:$0xff]  ;;  %v6842_v28 = vld [vmem:[%s5789_s21 + $0x1e8] sm:$0xff]  ;;  %v6852_v9 = vld [vmem:[%s5789_s21 + $0x1e0] sm:$0xff] }
 0x275   : > { %v1952_v24 = vmul.f32 %v6728_v12, %v1915_v55  ;;  %v1931_v36 = vrot.slane %v1893_v33, %v1914_v0  ;;  %v1909_v56 = vcombine.high %v1893_v33, %v1893_v33  ;;  %v6848_v14 = vld [vmem:[%s5789_s21 + $0x168] sm:$0xff]  ;;  %v6858_v33 = vld [vmem:[%s5789_s21 + $0x160] sm:$0xff]  ;;  %v6862_v55 = vld [vmem:[%s5789_s21 + $0x1d8] sm:$0xff] }
 0x276   : > { %v1953_v46 = vmul.f32 %v6728_v12, %v1919_v52  ;;  %v1954_v16 = vmul.f32 %v6728_v12, %v1923_v38  ;;  %v1927_v2 = vrot.slane %v1910_v13, %v1914_v0  ;;  %v1935_v1 = vrot.slane %v1907_v29, %v1914_v0  ;;  %v6868_v52 = vld [vmem:[%s5789_s21 + $0x158] sm:$0xff]  ;;  %v6872_v38 = vld [vmem:[%s5789_s21 + $0x1d0] sm:$0xff] }
 0x277   : > { %4757 = vmatprep.mubr.f32.mxu1 %v1952_v24  ;;  %v1911_v58 = vcombine.high %v1907_v29, %v1907_v29  ;;  %v1956_v34 = vmul.f32 %v6728_v12, %v1931_v36  ;;  %v1939_v47 = vrot.slane %v1909_v56, %v1914_v0  ;;  %v6878_v13 = vld [vmem:[%s5789_s21 + $0x150] sm:$0xff]  ;;  %v6882_v24 = vld [vmem:[%s5789_s21 + $0x1c8] sm:$0xff]  ;;  %v6902_v29 = vld [vmem:[%s5789_s21 + $0x1b8] sm:$0xff] }
 0x278   : > { %4758 = vmatmul.mubr.f32.vlgmr.msra.gmra.mxu1 %v1953_v46  ;;  %v1955_v7 = vmul.f32 %v6728_v12, %v1927_v2  ;;  %v1957_v61 = vmul.f32 %v6728_v12, %v1935_v1  ;;  %v6888_v46 = vld [vmem:[%s5789_s21 + $0x148] sm:$0xff]  ;;  %v6898_v2 = vld [vmem:[%s5789_s21 + $0x140] sm:$0xff]  ;;  %v6908_v36 = vld [vmem:[%s5789_s21 + $0x138] sm:$0xff] }
 0x279   : > { %4760 = vmatprep.mubr.f32.mxu1 %v1954_v16  ;;  %4805 = vmatpush3.msra.mxu1 %v6734_v4  ;;  %v1943_v10 = vrot.slane %v1911_v58, %v1914_v0  ;;  %v1958_v21 = vmul.f32 %v6728_v12, %v1939_v47  ;;  %v6892_v16 = vld [vmem:[%s5789_s21 + $0x1c0] sm:$0xff]  ;;  %v6912_v56 = vld [vmem:[%s5789_s21 + $0x1b0] sm:$0xff]  ;;  %v6922_v1 = vld [vmem:[%s5789_s21 + $0x1a8] sm:$0xff] }
 0x27a   : > { %4806 = vmatprep.subr.mxu1 %v5688_v60  ;;  %v6928_v58 = vld [vmem:[%s5789_s21 + $0x128] sm:$0xff]  ;;  %v6938_v47 = vld [vmem:[%s5789_s21 + $0x120] sm:$0xff] }
 0x27b   : > { %4807 = vmatpush3.msra.mxu1 %v6741_v3  ;;  %v1959_v19 = vmul.f32 %v6728_v12, %v1943_v10  ;;  %v6948_v10 = vld [vmem:[%s5789_s21 + $0x118] sm:$0xff]  ;;  %v6968_v12 = vld [vmem:[%s5789_s21 + $0x108] sm:$0xff] }
 0x27c   : > { %4761 = vmatmul.mubr.f32.gmra.mxu1 %v1955_v7  ;;  %4808 = vmatprep.subr.mxu1 %v5688_v60  ;;  %v6918_v7 = vld [vmem:[%s5789_s21 + $0x130] sm:$0xff]  ;;  %8125 = vst [vmem:[#allocation9_spill] sm:$0xff] %v6968_v12 }
 0x27d   : > { %4763 = vmatprep.mubr.f32.mxu1 %v1956_v34  ;;  %4809 = vmatpush3.msra.mxu1 %v6746_v50  ;;  %v6932_v34 = vld [vmem:[%s5789_s21 + $0x1a0] sm:$0xff] }
 0x27e   : > { %4810 = vmatprep.subr.mxu1 %v5688_v60 }
 0x27f   : > { %4811 = vmatpush3.msra.mxu1 %v6753_v40 }
 0x280   : > { %4764 = vmatmul.mubr.f32.gmra.mxu1 %v1957_v61  ;;  %4812 = vmatprep.subr.mxu1 %v5688_v60  ;;  %v6942_v61 = vld [vmem:[%s5789_s21 + $0x198] sm:$0xff] }
 0x281   : > { %4766 = vmatprep.mubr.f32.mxu1 %v1958_v21  ;;  %4813 = vmatpush3.msra.mxu1 %v6758_v27  ;;  %v6952_v21 = vld [vmem:[%s5789_s21 + $0x190] sm:$0xff] }
 0x282   : > { %4814 = vmatprep.subr.mxu1 %v5688_v60  ;;  %8122 = vst [vmem:[#allocation6_spill] sm:$0xff] %v6952_v21 }
 0x283   : > { %4815 = vmatpush3.msra.mxu1 %v6764_v49 }
 0x284   : > { %4767 = vmatmul.mubr.f32.gmra.mxu1 %v1959_v19  ;;  %4816 = vmatprep.subr.mxu1 %v5688_v60  ;;  %v6958_v19 = vld [vmem:[%s5789_s21 + $0x110] sm:$0xff] }
 0x285   : > { %4817 = vmatpush3.msra.mxu1 %v6769_v51  ;;  %4836 = vmatprep.mubr.msk.f32.mxu1 %vm5689_vm11, %v5688_v60  ;;  %8123 = vst [vmem:[#allocation7_spill] sm:$0xff] %v6958_v19 }
 0x286   : > { %4818 = vmatprep.subr.mxu1 %v5688_v60 }
 0x287   : > { %4819 = vmatpush3.msra.mxu1 %v6776_v8 }
 0x288   : > { %4820 = vmatprep.subr.mxu1 %v5688_v60 }
 0x289   : > { %4821 = vmatpush3.msra.mxu1 %v6781_v42 }
 0x28a   : > { %4822 = vmatprep.subr.mxu1 %v5688_v60 }
 0x28b   : > { %4823 = vmatpush3.msra.mxu1 %v6786_v53 }
 0x28c   : > { %4824 = vmatprep.subr.mxu1 %v5688_v60 }
 0x28d   : > { %4825 = vmatpush3.msra.mxu1 %v6791_v30 }
 0x28e   : > { %4826 = vmatprep.subr.mxu1 %v5688_v60 }
 0x28f   : > { %4827 = vmatpush3.msra.mxu1 %v6796_v5 }
 0x290   : > { %4828 = vmatprep.subr.mxu1 %v5688_v60 }
 0x291   : > { %4829 = vmatpush3.msra.mxu1 %v6801_v54 }
 0x292   : > { %4830 = vmatprep.subr.mxu1 %v5688_v60 }
 0x293   : > { %4831 = vmatpush3.msra.mxu1 %v6806_v32 }
 0x294   : > { %4832 = vmatprep.subr.mxu1 %v5688_v60 }
 0x295   : > { %4833 = vmatpush3.msra.mxu1 %v6811_v25 }
 0x296   : > { %4834 = vmatprep.subr.mxu1 %v5688_v60 }
 0x297   : > { %4835 = vmatpush3.msra.mxu1 %v6816_v62 }
 0x298   : > { %4874 = vmatprep.subr.mxu1 %v5688_v60 }
 0x338   : > { %v4759_v35 = vpop.f32.mrf.mxu1 }
 0x339   : > { %4837 = vmatmul.mubr.f32.vlgmr.msra.gmra.mxu1 %v4759_v35  ;;  %v6962_v35 = vld [vmem:[%s5789_s21 + $0x188] sm:$0xff] }
 0x33a   : > { %4875 = vmatpush3.msra.mxu1 %v6821_v45  ;;  %v2042_v0 = vpop.f32.mrf.mxu1  ;;  %4906 = vmatprep.mubr.msk.f32.mxu1 %vm5689_vm11, %v5688_v60  ;;  %8124 = vst [vmem:[#allocation8_spill] sm:$0xff] %v6962_v35 }
 0x33b   : > { %4876 = vmatprep.subr.mxu1 %v5688_v60  ;;  %4802 = vmatmul.mubr.f32.vlgmr.msra.gmra.mxu0 %v2042_v0 }
 0x33c   : > { %4840 = vmatpush3.msra.mxu0 %v6828_v48  ;;  %4877 = vmatpush3.msra.mxu1 %v6832_v11  ;;  %v4762_v0 = vpop.f32.mrf.mxu1 }
 0x33d   : > { %4841 = vmatprep.subr.mxu0 %v5688_v60  ;;  %4878 = vmatprep.subr.mxu1 %v5688_v60 }
 0x33e   : > { %4842 = vmatpush3.msra.mxu0 %v6838_v39  ;;  %4879 = vmatpush3.msra.mxu1 %v6842_v28 }
 0x33f   : > { %4843 = vmatprep.subr.mxu0 %v5688_v60  ;;  %4880 = vmatprep.subr.mxu1 %v5688_v60 }
 0x340   : > { %4844 = vmatpush3.msra.mxu0 %v6848_v14  ;;  %4881 = vmatpush3.msra.mxu1 %v6852_v9 }
 0x341   : > { %4845 = vmatprep.subr.mxu0 %v5688_v60  ;;  %4882 = vmatprep.subr.mxu1 %v5688_v60 }
 0x342   : > { %4846 = vmatpush3.msra.mxu0 %v6858_v33  ;;  %4883 = vmatpush3.msra.mxu1 %v6862_v55 }
 0x343   : > { %4847 = vmatprep.subr.mxu0 %v5688_v60  ;;  %4884 = vmatprep.subr.mxu1 %v5688_v60 }
 0x344   : > { %4848 = vmatpush3.msra.mxu0 %v6868_v52  ;;  %4885 = vmatpush3.msra.mxu1 %v6872_v38 }
 0x345   : > { %4849 = vmatprep.subr.mxu0 %v5688_v60  ;;  %4886 = vmatprep.subr.mxu1 %v5688_v60 }
 0x346   : > { %4850 = vmatpush3.msra.mxu0 %v6878_v13  ;;  %4887 = vmatpush3.msra.mxu1 %v6882_v24 }
 0x347   : > { %4851 = vmatprep.subr.mxu0 %v5688_v60  ;;  %4888 = vmatprep.subr.mxu1 %v5688_v60 }
 0x348   : > { %4852 = vmatpush3.msra.mxu0 %v6888_v46  ;;  %4889 = vmatpush3.msra.mxu1 %v6892_v16 }
 0x349   : > { %4853 = vmatprep.subr.mxu0 %v5688_v60  ;;  %4890 = vmatprep.subr.mxu1 %v5688_v60 }
 0x34a   : > { %4854 = vmatpush3.msra.mxu0 %v6898_v2  ;;  %4891 = vmatpush3.msra.mxu1 %v6902_v29 }
 0x34b   : > { %4855 = vmatprep.subr.mxu0 %v5688_v60  ;;  %4892 = vmatprep.subr.mxu1 %v5688_v60 }
 0x34c   : > { %4856 = vmatpush3.msra.mxu0 %v6908_v36  ;;  %4893 = vmatpush3.msra.mxu1 %v6912_v56 }
 0x34d   : > { %4857 = vmatprep.subr.mxu0 %v5688_v60  ;;  %4894 = vmatprep.subr.mxu1 %v5688_v60 }
 0x34e   : > { %4858 = vmatpush3.msra.mxu0 %v6918_v7  ;;  %4895 = vmatpush3.msra.mxu1 %v6922_v1 }
 0x34f   : > { %4859 = vmatprep.subr.mxu0 %v5688_v60  ;;  %4896 = vmatprep.subr.mxu1 %v5688_v60 }
 0x350   : > { %4860 = vmatpush3.msra.mxu0 %v6928_v58  ;;  %4897 = vmatpush3.msra.mxu1 %v6932_v34 }
 0x351   : > { %4861 = vmatprep.subr.mxu0 %v5688_v60  ;;  %4898 = vmatprep.subr.mxu1 %v5688_v60 }
 0x352   : > { %4862 = vmatpush3.msra.mxu0 %v6938_v47  ;;  %4899 = vmatpush3.msra.mxu1 %v6942_v61 }
 0x353   : > { %4863 = vmatprep.subr.mxu0 %v5688_v60  ;;  %4900 = vmatprep.subr.mxu1 %v5688_v60 }
 0x354   : > { %4864 = vmatpush3.msra.mxu0 %v6948_v10  ;;  %4901 = vmatpush3.msra.mxu1 %v6952_v21  ;;  %v6972_v21 = vld [vmem:[%s5789_s21 + $0x180] sm:$0xff] }
 0x355   : > { %4865 = vmatprep.subr.mxu0 %v5688_v60  ;;  %4902 = vmatprep.subr.mxu1 %v5688_v60  ;;  %8126 = vst [vmem:[#allocation10_spill] sm:$0xff] %v6972_v21 }
 0x356   : > { %4866 = vmatpush3.msra.mxu0 %v6958_v19  ;;  %4903 = vmatpush3.msra.mxu1 %v6962_v35  ;;  %v6978_v35 = vld [vmem:[%s5789_s21 + $0x100] sm:$0xff]  ;;  %v2052_v19 = vpop.f32.mrf.mxu1 }
 0x357   : > { %4867 = vmatprep.subr.mxu0 %v5688_v60  ;;  %4904 = vmatprep.subr.mxu1 %v5688_v60  ;;  %8127 = vst [vmem:[#allocation11_spill] sm:$0xff] %v6978_v35 }
 0x358   : > { %4868 = vmatpush3.msra.mxu0 %v6968_v12  ;;  %4905 = vmatpush3.msra.mxu1 %v6972_v21  ;;  %v6984_v12 = vld [vmem:[%s5789_s21 + $0x2f8] sm:$0xff]  ;;  %v7134_v21 = vld [vmem:[%s5789_s21 + $0x280] sm:$0xff] }
 0x359   : > { %4869 = vmatprep.subr.mxu0 %v5688_v60  ;;  %4907 = vmatmul.mubr.f32.vlgmr.msra.gmra.mxu1 %v4762_v0  ;;  %8128 = vst [vmem:[#allocation12_spill] sm:$0xff] %v6984_v12  ;;  %v6990_v0 = vld [vmem:[%s5789_s21 + $0x278] sm:$0xff]  ;;  %8158 = vst [vmem:[#allocation42_spill] sm:$0xff] %v7134_v21 }
 0x35a   : > { %4944 = vmatprep.subr.mxu1 %v5688_v60  ;;  %4870 = vmatpush3.msra.mxu0 %v6978_v35  ;;  %8129 = vst [vmem:[#allocation13_spill] sm:$0xff] %v6990_v0  ;;  %v6994_v35 = vld [vmem:[%s5789_s21 + $0x2f0] sm:$0xff] }
 0x35b   : > { %4871 = vmatprep.mubr.msk.f32.mxu0 %vm5689_vm11, %v5688_v60  ;;  %4945 = vmatpush3.msra.mxu1 %v6984_v12  ;;  %8130 = vst [vmem:[#allocation14_spill] sm:$0xff] %v6994_v35  ;;  %v7004_v12 = vld [vmem:[%s5789_s21 + $0x2e8] sm:$0xff] }
 0x35c   : > { %4872 = vmatmul.mubr.f32.vlgmr.msra.gmra.mxu0 %v2052_v19  ;;  %4909 = vmatprep.subr.mxu0 %v5688_v60  ;;  %v7000_v19 = vld [vmem:[%s5789_s21 + $0x270] sm:$0xff]  ;;  %8132 = vst [vmem:[#allocation16_spill] sm:$0xff] %v7004_v12 }
 0x35d   : > { %4946 = vmatprep.subr.mxu1 %v5688_v60  ;;  %4910 = vmatpush3.msra.mxu0 %v6990_v0  ;;  %8131 = vst [vmem:[#allocation15_spill] sm:$0xff] %v7000_v19  ;;  %v7014_v0 = vld [vmem:[%s5789_s21 + $0x2e0] sm:$0xff] }
 0x35e   : > { %4947 = vmatpush3.msra.mxu1 %v6994_v35  ;;  %4911 = vmatprep.subr.mxu0 %v5688_v60  ;;  %v7010_v35 = vld [vmem:[%s5789_s21 + $0x268] sm:$0xff]  ;;  %8134 = vst [vmem:[#allocation18_spill] sm:$0xff] %v7014_v0 }
 0x35f   : > { %4948 = vmatprep.subr.mxu1 %v5688_v60  ;;  %4912 = vmatpush3.msra.mxu0 %v7000_v19  ;;  %8133 = vst [vmem:[#allocation17_spill] sm:$0xff] %v7010_v35  ;;  %v7024_v19 = vld [vmem:[%s5789_s21 + $0x2d8] sm:$0xff] }
 0x360   : > { %4949 = vmatpush3.msra.mxu1 %v7004_v12  ;;  %4913 = vmatprep.subr.mxu0 %v5688_v60  ;;  %v7020_v12 = vld [vmem:[%s5789_s21 + $0x260] sm:$0xff]  ;;  %8136 = vst [vmem:[#allocation20_spill] sm:$0xff] %v7024_v19 }
 0x361   : > { %4950 = vmatprep.subr.mxu1 %v5688_v60  ;;  %4914 = vmatpush3.msra.mxu0 %v7010_v35  ;;  %8135 = vst [vmem:[#allocation19_spill] sm:$0xff] %v7020_v12  ;;  %v7034_v35 = vld [vmem:[%s5789_s21 + $0x2d0] sm:$0xff] }
 0x362   : > { %4951 = vmatpush3.msra.mxu1 %v7014_v0  ;;  %4915 = vmatprep.subr.mxu0 %v5688_v60  ;;  %v7030_v0 = vld [vmem:[%s5789_s21 + $0x258] sm:$0xff]  ;;  %8138 = vst [vmem:[#allocation22_spill] sm:$0xff] %v7034_v35 }
 0x363   : > { %4952 = vmatprep.subr.mxu1 %v5688_v60  ;;  %4916 = vmatpush3.msra.mxu0 %v7020_v12  ;;  %8137 = vst [vmem:[#allocation21_spill] sm:$0xff] %v7030_v0  ;;  %v7044_v12 = vld [vmem:[%s5789_s21 + $0x2c8] sm:$0xff] }
 0x364   : > { %4953 = vmatpush3.msra.mxu1 %v7024_v19  ;;  %4917 = vmatprep.subr.mxu0 %v5688_v60  ;;  %v7040_v19 = vld [vmem:[%s5789_s21 + $0x250] sm:$0xff]  ;;  %8140 = vst [vmem:[#allocation24_spill] sm:$0xff] %v7044_v12 }
 0x365   : > { %4954 = vmatprep.subr.mxu1 %v5688_v60  ;;  %4918 = vmatpush3.msra.mxu0 %v7030_v0  ;;  %8139 = vst [vmem:[#allocation23_spill] sm:$0xff] %v7040_v19  ;;  %v7054_v0 = vld [vmem:[%s5789_s21 + $0x2c0] sm:$0xff] }
 0x366   : > { %4955 = vmatpush3.msra.mxu1 %v7034_v35  ;;  %4919 = vmatprep.subr.mxu0 %v5688_v60  ;;  %v7050_v35 = vld [vmem:[%s5789_s21 + $0x248] sm:$0xff]  ;;  %8142 = vst [vmem:[#allocation26_spill] sm:$0xff] %v7054_v0 }
 0x367   : > { %4956 = vmatprep.subr.mxu1 %v5688_v60  ;;  %4920 = vmatpush3.msra.mxu0 %v7040_v19  ;;  %8141 = vst [vmem:[#allocation25_spill] sm:$0xff] %v7050_v35  ;;  %v7064_v19 = vld [vmem:[%s5789_s21 + $0x2b8] sm:$0xff] }
 0x368   : > { %4957 = vmatpush3.msra.mxu1 %v7044_v12  ;;  %4921 = vmatprep.subr.mxu0 %v5688_v60  ;;  %v7060_v12 = vld [vmem:[%s5789_s21 + $0x240] sm:$0xff]  ;;  %8144 = vst [vmem:[#allocation28_spill] sm:$0xff] %v7064_v19 }
 0x369   : > { %4958 = vmatprep.subr.mxu1 %v5688_v60  ;;  %4922 = vmatpush3.msra.mxu0 %v7050_v35  ;;  %8143 = vst [vmem:[#allocation27_spill] sm:$0xff] %v7060_v12  ;;  %v7074_v35 = vld [vmem:[%s5789_s21 + $0x2b0] sm:$0xff] }
 0x36a   : > { %4959 = vmatpush3.msra.mxu1 %v7054_v0  ;;  %4923 = vmatprep.subr.mxu0 %v5688_v60  ;;  %v7070_v0 = vld [vmem:[%s5789_s21 + $0x238] sm:$0xff]  ;;  %8146 = vst [vmem:[#allocation30_spill] sm:$0xff] %v7074_v35 }
 0x36b   : > { %4960 = vmatprep.subr.mxu1 %v5688_v60  ;;  %4924 = vmatpush3.msra.mxu0 %v7060_v12  ;;  %8145 = vst [vmem:[#allocation29_spill] sm:$0xff] %v7070_v0  ;;  %v7084_v12 = vld [vmem:[%s5789_s21 + $0x2a8] sm:$0xff] }
 0x36c   : > { %4961 = vmatpush3.msra.mxu1 %v7064_v19  ;;  %4925 = vmatprep.subr.mxu0 %v5688_v60  ;;  %v7080_v19 = vld [vmem:[%s5789_s21 + $0x230] sm:$0xff]  ;;  %8148 = vst [vmem:[#allocation32_spill] sm:$0xff] %v7084_v12 }
 0x36d   : > { %4962 = vmatprep.subr.mxu1 %v5688_v60  ;;  %4926 = vmatpush3.msra.mxu0 %v7070_v0  ;;  %8147 = vst [vmem:[#allocation31_spill] sm:$0xff] %v7080_v19  ;;  %v7094_v0 = vld [vmem:[%s5789_s21 + $0x2a0] sm:$0xff] }
 0x36e   : > { %4963 = vmatpush3.msra.mxu1 %v7074_v35  ;;  %4927 = vmatprep.subr.mxu0 %v5688_v60  ;;  %v7090_v35 = vld [vmem:[%s5789_s21 + $0x228] sm:$0xff]  ;;  %8150 = vst [vmem:[#allocation34_spill] sm:$0xff] %v7094_v0 }
 0x36f   : > { %4964 = vmatprep.subr.mxu1 %v5688_v60  ;;  %4928 = vmatpush3.msra.mxu0 %v7080_v19  ;;  %8149 = vst [vmem:[#allocation33_spill] sm:$0xff] %v7090_v35  ;;  %v7104_v19 = vld [vmem:[%s5789_s21 + $0x298] sm:$0xff] }
 0x370   : > { %4965 = vmatpush3.msra.mxu1 %v7084_v12  ;;  %4929 = vmatprep.subr.mxu0 %v5688_v60  ;;  %v7100_v12 = vld [vmem:[%s5789_s21 + $0x220] sm:$0xff]  ;;  %8152 = vst [vmem:[#allocation36_spill] sm:$0xff] %v7104_v19 }
 0x371   : > { %4966 = vmatprep.subr.mxu1 %v5688_v60  ;;  %4930 = vmatpush3.msra.mxu0 %v7090_v35  ;;  %8151 = vst [vmem:[#allocation35_spill] sm:$0xff] %v7100_v12  ;;  %v7114_v35 = vld [vmem:[%s5789_s21 + $0x290] sm:$0xff] }
 0x372   : > { %4967 = vmatpush3.msra.mxu1 %v7094_v0  ;;  %4931 = vmatprep.subr.mxu0 %v5688_v60  ;;  %v7110_v0 = vld [vmem:[%s5789_s21 + $0x218] sm:$0xff]  ;;  %8154 = vst [vmem:[#allocation38_spill] sm:$0xff] %v7114_v35 }
 0x373   : > { %4968 = vmatprep.subr.mxu1 %v5688_v60  ;;  %4932 = vmatpush3.msra.mxu0 %v7100_v12  ;;  %8153 = vst [vmem:[#allocation37_spill] sm:$0xff] %v7110_v0  ;;  %v7124_v12 = vld [vmem:[%s5789_s21 + $0x288] sm:$0xff] }
 0x374   : > { %4969 = vmatpush3.msra.mxu1 %v7104_v19  ;;  %4933 = vmatprep.subr.mxu0 %v5688_v60  ;;  %v7120_v19 = vld [vmem:[%s5789_s21 + $0x210] sm:$0xff]  ;;  %8156 = vst [vmem:[#allocation40_spill] sm:$0xff] %v7124_v12 }
 0x375   : > { %4970 = vmatprep.subr.mxu1 %v5688_v60  ;;  %4934 = vmatpush3.msra.mxu0 %v7110_v0  ;;  %8155 = vst [vmem:[#allocation39_spill] sm:$0xff] %v7120_v19  ;;  %v4765_v0 = vpop.f32.mrf.mxu1 }
 0x376   : > { %4971 = vmatpush3.msra.mxu1 %v7114_v35  ;;  %4935 = vmatprep.subr.mxu0 %v5688_v60  ;;  %v7130_v35 = vld [vmem:[%s5789_s21 + $0x208] sm:$0xff] }
 0x377   : > { %4972 = vmatprep.subr.mxu1 %v5688_v60  ;;  %4936 = vmatpush3.msra.mxu0 %v7120_v19  ;;  %8157 = vst [vmem:[#allocation41_spill] sm:$0xff] %v7130_v35  ;;  %v7288_v19 = vld [vmem:[%s5789_s21 + $0x388] sm:$0xff] }
 0x378   : > { %4973 = vmatpush3.msra.mxu1 %v7124_v12  ;;  %4937 = vmatprep.subr.mxu0 %v5688_v60  ;;  %v7142_v12 = vld [vmem:[%s5789_s21 + $0x200] sm:$0xff]  ;;  %8188 = vst [vmem:[#allocation72_spill] sm:$0xff] %v7288_v19 }
 0x379   : > { %4974 = vmatprep.subr.mxu1 %v5688_v60  ;;  %4938 = vmatpush3.msra.mxu0 %v7130_v35  ;;  %8159 = vst [vmem:[#allocation43_spill] sm:$0xff] %v7142_v12  ;;  %v2062_v35 = vpop.f32.mrf.mxu1 }
 0x37a   : > { %4975 = vmatpush3.msra.mxu1 %v7134_v21  ;;  %4976 = vmatprep.mubr.msk.f32.mxu1 %vm5689_vm11, %v5688_v60  ;;  %v7148_v21 = vld [vmem:[%s5789_s21 + $0x3f8] sm:$0xff] }
 0x37b   : > { %4939 = vmatprep.subr.mxu0 %v5688_v60  ;;  %4977 = vmatmul.mubr.f32.vlgmr.msra.gmra.mxu1 %v4765_v0  ;;  %8160 = vst [vmem:[#allocation44_spill] sm:$0xff] %v7148_v21  ;;  %v7154_v0 = vld [vmem:[%s5789_s21 + $0x378] sm:$0xff] }
 0x37c   : > { %5014 = vmatprep.subr.mxu1 %v5688_v60  ;;  %4940 = vmatpush3.msra.mxu0 %v7142_v12  ;;  %8161 = vst [vmem:[#allocation45_spill] sm:$0xff] %v7154_v0  ;;  %v7158_v12 = vld [vmem:[%s5789_s21 + $0x3f0] sm:$0xff] }
 0x37d   : > { %4941 = vmatprep.mubr.msk.f32.mxu0 %vm5689_vm11, %v5688_v60  ;;  %5015 = vmatpush3.msra.mxu1 %v7148_v21  ;;  %8162 = vst [vmem:[#allocation46_spill] sm:$0xff] %v7158_v12  ;;  %v7168_v21 = vld [vmem:[%s5789_s21 + $0x3e8] sm:$0xff] }
 0x37e   : > { %4942 = vmatmul.mubr.f32.vlgmr.msra.gmra.mxu0 %v2062_v35  ;;  %4979 = vmatprep.subr.mxu0 %v5688_v60  ;;  %v7164_v35 = vld [vmem:[%s5789_s21 + $0x370] sm:$0xff]  ;;  %8164 = vst [vmem:[#allocation48_spill] sm:$0xff] %v7168_v21 }
 0x37f   : > { %5016 = vmatprep.subr.mxu1 %v5688_v60  ;;  %4980 = vmatpush3.msra.mxu0 %v7154_v0  ;;  %8163 = vst [vmem:[#allocation47_spill] sm:$0xff] %v7164_v35  ;;  %v7178_v0 = vld [vmem:[%s5789_s21 + $0x3e0] sm:$0xff] }
 0x380   : > { %5017 = vmatpush3.msra.mxu1 %v7158_v12  ;;  %4981 = vmatprep.subr.mxu0 %v5688_v60  ;;  %v7174_v12 = vld [vmem:[%s5789_s21 + $0x368] sm:$0xff]  ;;  %8166 = vst [vmem:[#allocation50_spill] sm:$0xff] %v7178_v0 }
 0x381   : > { %5018 = vmatprep.subr.mxu1 %v5688_v60  ;;  %4982 = vmatpush3.msra.mxu0 %v7164_v35  ;;  %8165 = vst [vmem:[#allocation49_spill] sm:$0xff] %v7174_v12  ;;  %v7188_v35 = vld [vmem:[%s5789_s21 + $0x3d8] sm:$0xff] }
 0x382   : > { %5019 = vmatpush3.msra.mxu1 %v7168_v21  ;;  %4983 = vmatprep.subr.mxu0 %v5688_v60  ;;  %v7184_v21 = vld [vmem:[%s5789_s21 + $0x360] sm:$0xff]  ;;  %8168 = vst [vmem:[#allocation52_spill] sm:$0xff] %v7188_v35 }
 0x383   : > { %5020 = vmatprep.subr.mxu1 %v5688_v60  ;;  %4984 = vmatpush3.msra.mxu0 %v7174_v12  ;;  %8167 = vst [vmem:[#allocation51_spill] sm:$0xff] %v7184_v21  ;;  %v7198_v12 = vld [vmem:[%s5789_s21 + $0x3d0] sm:$0xff] }
 0x384   : > { %5021 = vmatpush3.msra.mxu1 %v7178_v0  ;;  %4985 = vmatprep.subr.mxu0 %v5688_v60  ;;  %v7194_v0 = vld [vmem:[%s5789_s21 + $0x358] sm:$0xff]  ;;  %8170 = vst [vmem:[#allocation54_spill] sm:$0xff] %v7198_v12 }
 0x385   : > { %5022 = vmatprep.subr.mxu1 %v5688_v60  ;;  %4986 = vmatpush3.msra.mxu0 %v7184_v21  ;;  %8169 = vst [vmem:[#allocation53_spill] sm:$0xff] %v7194_v0  ;;  %v7208_v21 = vld [vmem:[%s5789_s21 + $0x3c8] sm:$0xff] }
 0x386   : > { %5023 = vmatpush3.msra.mxu1 %v7188_v35  ;;  %4987 = vmatprep.subr.mxu0 %v5688_v60  ;;  %v7204_v35 = vld [vmem:[%s5789_s21 + $0x350] sm:$0xff]  ;;  %8172 = vst [vmem:[#allocation56_spill] sm:$0xff] %v7208_v21 }
 0x387   : > { %5024 = vmatprep.subr.mxu1 %v5688_v60  ;;  %4988 = vmatpush3.msra.mxu0 %v7194_v0  ;;  %8171 = vst [vmem:[#allocation55_spill] sm:$0xff] %v7204_v35  ;;  %v7218_v0 = vld [vmem:[%s5789_s21 + $0x3c0] sm:$0xff] }
 0x388   : > { %5025 = vmatpush3.msra.mxu1 %v7198_v12  ;;  %4989 = vmatprep.subr.mxu0 %v5688_v60  ;;  %v7214_v12 = vld [vmem:[%s5789_s21 + $0x348] sm:$0xff]  ;;  %8174 = vst [vmem:[#allocation58_spill] sm:$0xff] %v7218_v0 }
 0x389   : > { %5026 = vmatprep.subr.mxu1 %v5688_v60  ;;  %4990 = vmatpush3.msra.mxu0 %v7204_v35  ;;  %8173 = vst [vmem:[#allocation57_spill] sm:$0xff] %v7214_v12  ;;  %v7228_v35 = vld [vmem:[%s5789_s21 + $0x3b8] sm:$0xff] }
 0x38a   : > { %5027 = vmatpush3.msra.mxu1 %v7208_v21  ;;  %4991 = vmatprep.subr.mxu0 %v5688_v60  ;;  %v7224_v21 = vld [vmem:[%s5789_s21 + $0x340] sm:$0xff]  ;;  %8176 = vst [vmem:[#allocation60_spill] sm:$0xff] %v7228_v35 }
 0x38b   : > { %5028 = vmatprep.subr.mxu1 %v5688_v60  ;;  %4992 = vmatpush3.msra.mxu0 %v7214_v12  ;;  %8175 = vst [vmem:[#allocation59_spill] sm:$0xff] %v7224_v21  ;;  %v7238_v12 = vld [vmem:[%s5789_s21 + $0x3b0] sm:$0xff] }
 0x38c   : > { %5029 = vmatpush3.msra.mxu1 %v7218_v0  ;;  %4993 = vmatprep.subr.mxu0 %v5688_v60  ;;  %v7234_v0 = vld [vmem:[%s5789_s21 + $0x338] sm:$0xff]  ;;  %8178 = vst [vmem:[#allocation62_spill] sm:$0xff] %v7238_v12 }
 0x38d   : > { %5030 = vmatprep.subr.mxu1 %v5688_v60  ;;  %4994 = vmatpush3.msra.mxu0 %v7224_v21  ;;  %8177 = vst [vmem:[#allocation61_spill] sm:$0xff] %v7234_v0  ;;  %v7248_v21 = vld [vmem:[%s5789_s21 + $0x3a8] sm:$0xff] }
 0x38e   : > { %5031 = vmatpush3.msra.mxu1 %v7228_v35  ;;  %4995 = vmatprep.subr.mxu0 %v5688_v60  ;;  %v7244_v35 = vld [vmem:[%s5789_s21 + $0x330] sm:$0xff]  ;;  %8180 = vst [vmem:[#allocation64_spill] sm:$0xff] %v7248_v21 }
 0x38f   : > { %5032 = vmatprep.subr.mxu1 %v5688_v60  ;;  %4996 = vmatpush3.msra.mxu0 %v7234_v0  ;;  %8179 = vst [vmem:[#allocation63_spill] sm:$0xff] %v7244_v35  ;;  %v7258_v0 = vld [vmem:[%s5789_s21 + $0x3a0] sm:$0xff] }
 0x390   : > { %5033 = vmatpush3.msra.mxu1 %v7238_v12  ;;  %4997 = vmatprep.subr.mxu0 %v5688_v60  ;;  %v7254_v12 = vld [vmem:[%s5789_s21 + $0x328] sm:$0xff]  ;;  %8182 = vst [vmem:[#allocation66_spill] sm:$0xff] %v7258_v0 }
 0x391   : > { %5034 = vmatprep.subr.mxu1 %v5688_v60  ;;  %4998 = vmatpush3.msra.mxu0 %v7244_v35  ;;  %8181 = vst [vmem:[#allocation65_spill] sm:$0xff] %v7254_v12  ;;  %v7268_v35 = vld [vmem:[%s5789_s21 + $0x398] sm:$0xff] }
 0x392   : > { %5035 = vmatpush3.msra.mxu1 %v7248_v21  ;;  %4999 = vmatprep.subr.mxu0 %v5688_v60  ;;  %v7264_v21 = vld [vmem:[%s5789_s21 + $0x320] sm:$0xff]  ;;  %8184 = vst [vmem:[#allocation68_spill] sm:$0xff] %v7268_v35 }
 0x393   : > { %5036 = vmatprep.subr.mxu1 %v5688_v60  ;;  %5000 = vmatpush3.msra.mxu0 %v7254_v12  ;;  %8183 = vst [vmem:[#allocation67_spill] sm:$0xff] %v7264_v21  ;;  %v7278_v12 = vld [vmem:[%s5789_s21 + $0x390] sm:$0xff] }
 0x394   : > { %5037 = vmatpush3.msra.mxu1 %v7258_v0  ;;  %5001 = vmatprep.subr.mxu0 %v5688_v60  ;;  %v7274_v0 = vld [vmem:[%s5789_s21 + $0x318] sm:$0xff]  ;;  %8186 = vst [vmem:[#allocation70_spill] sm:$0xff] %v7278_v12 }
 0x395   : > { %5038 = vmatprep.subr.mxu1 %v5688_v60  ;;  %5002 = vmatpush3.msra.mxu0 %v7264_v21  ;;  %8185 = vst [vmem:[#allocation69_spill] sm:$0xff] %v7274_v0  ;;  %v4768_v21 = vpop.f32.mrf.mxu1 }
 0x396   : > { %5039 = vmatpush3.msra.mxu1 %v7268_v35  ;;  %5003 = vmatprep.subr.mxu0 %v5688_v60  ;;  %v7284_v35 = vld [vmem:[%s5789_s21 + $0x310] sm:$0xff] }
 0x397   : > { %5040 = vmatprep.subr.mxu1 %v5688_v60  ;;  %5004 = vmatpush3.msra.mxu0 %v7274_v0  ;;  %8187 = vst [vmem:[#allocation71_spill] sm:$0xff] %v7284_v35  ;;  %v7294_v0 = vld [vmem:[%s5789_s21 + $0x308] sm:$0xff] }
 0x398   : > { %5041 = vmatpush3.msra.mxu1 %v7278_v12  ;;  %5005 = vmatprep.subr.mxu0 %v5688_v60  ;;  %v7298_v12 = vld [vmem:[%s5789_s21 + $0x380] sm:$0xff] }
 0x399   : > { %5042 = vmatprep.subr.mxu1 %v5688_v60  ;;  %5006 = vmatpush3.msra.mxu0 %v7284_v35  ;;  %v2072_v35 = vpop.f32.mrf.mxu1 }
 0x39a   : > { %5043 = vmatpush3.msra.mxu1 %v7288_v19  ;;  %5007 = vmatprep.subr.mxu0 %v5688_v60  ;;  %v7305_v19 = vld [vmem:[%s5789_s21 + $0x300] sm:$0xff]  ;;  %s5691_s21 = smov [#allocation2]  }
 0x39b   : > { %5044 = vmatprep.subr.mxu1 %v5688_v60  ;;  %5008 = vmatpush3.msra.mxu0 %v7294_v0  ;;  %s5630_s9 = sshll.u32 %s5691_s21, 4  ;;  %s5631_s9 = int_to_ptr.vmem [resolvable:$false] %s5630_s9 }
 0x39c   : > { %5045 = vmatpush3.msra.mxu1 %v7298_v12  ;;  %5046 = vmatprep.mubr.msk.f32.mxu1 %vm5689_vm11, %v5688_v60  ;;  %s5632_s13 = scalar_lea.vmem %s5631_s9, 256  ;;  %p5633_p0 = scmp.lt.s32.totalorder %s4125_s22, %s5631_s9 }
 0x39d   : > { %5009 = vmatprep.subr.mxu0 %v5688_v60  ;;  %5047 = vmatmul.mubr.f32.vlgmr.msra.gmra.mxu1 %v4768_v21  ;;  %p5634_p1 = scmp.lt.s32.totalorder %s5632_s13, %s5626_s10 }
 0x39e   : > { %5010 = vmatpush3.msra.mxu0 %v7305_v19  ;;  %5011 = vmatprep.mubr.msk.f32.mxu0 %vm5689_vm11, %v5688_v60 }
 0x39f   : > { %5012 = vmatmul.mubr.f32.vlgmr.msra.gmra.mxu0 %v2072_v35  ;;  %5084 = vmatprep.subr.mxu1 %v5688_v60  ;;  %p5635_p2 = por %p5634_p1, %p5633_p0 }
 0x3a0   : > { %5085 = vmatpush3.xpose.msk.msra.mxu1 %vm437_vm0, %v6734_v4  ;;  %5049 = vmatprep.subr.mxu0 %v5688_v60 }
 0x3a1   : > { %5050 = vmatpush3.xpose.msk.msra.mxu0 %vm437_vm0, %v6615_v59  ;;  %5086 = vmatprep.subr.mxu1 %v5688_v60  ;;  %p5636_p3 = pnand %p5635_p2, %p5629_p13 }
 0x3a2   : > { %5051 = vmatprep.subr.mxu0 %v5688_v60  ;;  %5116 = vmatprep.mubr.msk.f32.mxu1 %vm5689_vm11, %v5688_v60 }
 0x3a3   : > { %5081 = vmatprep.mubr.msk.f32.mxu0 %vm5689_vm11, %v5688_v60 }
 0x3a4   : > { %5087 = vmatpush3.xpose.msk.msra.mxu1 %vm437_vm0, %v6741_v3 }
 0x3a5   : > { %5052 = vmatpush3.xpose.msk.msra.mxu0 %vm437_vm0, %v6622_v57  ;;  %5088 = vmatprep.subr.mxu1 %v5688_v60 }
 0x3a6   : > { %5053 = vmatprep.subr.mxu0 %v5688_v60 }
 0x3a8   : > { %5089 = vmatpush3.xpose.msk.msra.mxu1 %vm437_vm0, %v6746_v50 }
 0x3a9   : > { %5054 = vmatpush3.xpose.msk.msra.mxu0 %vm437_vm0, %v6627_v15  ;;  %5090 = vmatprep.subr.mxu1 %v5688_v60 }
 0x3aa   : > { %5055 = vmatprep.subr.mxu0 %v5688_v60 }
 0x3ac   : > { %5091 = vmatpush3.xpose.msk.msra.mxu1 %vm437_vm0, %v6753_v40 }
 0x3ad   : > { %5056 = vmatpush3.xpose.msk.msra.mxu0 %vm437_vm0, %v6632_v6  ;;  %5092 = vmatprep.subr.mxu1 %v5688_v60 }
 0x3ae   : > { %5057 = vmatprep.subr.mxu0 %v5688_v60 }
 0x3b0   : > { %5093 = vmatpush3.xpose.msk.msra.mxu1 %vm437_vm0, %v6758_v27 }
 0x3b1   : > { %5058 = vmatpush3.xpose.msk.msra.mxu0 %vm437_vm0, %v6637_v20  ;;  %5094 = vmatprep.subr.mxu1 %v5688_v60 }
 0x3b2   : > { %5059 = vmatprep.subr.mxu0 %v5688_v60 }
 0x3b4   : > { %5095 = vmatpush3.xpose.msk.msra.mxu1 %vm437_vm0, %v6764_v49 }
 0x3b5   : > { %5060 = vmatpush3.xpose.msk.msra.mxu0 %vm437_vm0, %v6642_v18  ;;  %5096 = vmatprep.subr.mxu1 %v5688_v60 }
 0x3b6   : > { %5061 = vmatprep.subr.mxu0 %v5688_v60 }
 0x3b8   : > { %5097 = vmatpush3.xpose.msk.msra.mxu1 %vm437_vm0, %v6769_v51 }
 0x3b9   : > { %5062 = vmatpush3.xpose.msk.msra.mxu0 %vm437_vm0, %v6647_v63  ;;  %5098 = vmatprep.subr.mxu1 %v5688_v60 }
 0x3ba   : > { %5063 = vmatprep.subr.mxu0 %v5688_v60 }
 0x3bc   : > { %5099 = vmatpush3.xpose.msk.msra.mxu1 %vm437_vm0, %v6776_v8 }
 0x3bd   : > { %5064 = vmatpush3.xpose.msk.msra.mxu0 %vm437_vm0, %v6652_v31  ;;  %5100 = vmatprep.subr.mxu1 %v5688_v60 }
 0x3be   : > { %5065 = vmatprep.subr.mxu0 %v5688_v60 }
 0x3c0   : > { %5101 = vmatpush3.xpose.msk.msra.mxu1 %vm437_vm0, %v6781_v42 }
 0x3c1   : > { %5066 = vmatpush3.xpose.msk.msra.mxu0 %vm437_vm0, %v6657_v41  ;;  %5102 = vmatprep.subr.mxu1 %v5688_v60 }
 0x3c2   : > { %5067 = vmatprep.subr.mxu0 %v5688_v60 }
 0x3c4   : > { %5103 = vmatpush3.xpose.msk.msra.mxu1 %vm437_vm0, %v6786_v53 }
 0x3c5   : > { %5068 = vmatpush3.xpose.msk.msra.mxu0 %vm437_vm0, %v6662_v17  ;;  %5104 = vmatprep.subr.mxu1 %v5688_v60 }
 0x3c6   : > { %5069 = vmatprep.subr.mxu0 %v5688_v60 }
 0x3c8   : > { %5105 = vmatpush3.xpose.msk.msra.mxu1 %vm437_vm0, %v6791_v30 }
 0x3c9   : > { %5070 = vmatpush3.xpose.msk.msra.mxu0 %vm437_vm0, %v6667_v44  ;;  %5106 = vmatprep.subr.mxu1 %v5688_v60 }
 0x3ca   : > { %5071 = vmatprep.subr.mxu0 %v5688_v60 }
 0x3cc   : > { %5107 = vmatpush3.xpose.msk.msra.mxu1 %vm437_vm0, %v6796_v5 }
 0x3cd   : > { %5072 = vmatpush3.xpose.msk.msra.mxu0 %vm437_vm0, %v6672_v22  ;;  %5108 = vmatprep.subr.mxu1 %v5688_v60 }
 0x3ce   : > { %5073 = vmatprep.subr.mxu0 %v5688_v60 }
 0x3d0   : > { %5109 = vmatpush3.xpose.msk.msra.mxu1 %vm437_vm0, %v6801_v54 }
 0x3d1   : > { %5074 = vmatpush3.xpose.msk.msra.mxu0 %vm437_vm0, %v6677_v26  ;;  %5110 = vmatprep.subr.mxu1 %v5688_v60 }
 0x3d2   : > { %5075 = vmatprep.subr.mxu0 %v5688_v60 }
 0x3d4   : > { %5111 = vmatpush3.xpose.msk.msra.mxu1 %vm437_vm0, %v6806_v32 }
 0x3d5   : > { %5076 = vmatpush3.xpose.msk.msra.mxu0 %vm437_vm0, %v6682_v23  ;;  %5112 = vmatprep.subr.mxu1 %v5688_v60 }
 0x3d6   : > { %5077 = vmatprep.subr.mxu0 %v5688_v60 }
 0x3d8   : > { %5113 = vmatpush3.xpose.msk.msra.mxu1 %vm437_vm0, %v6811_v25 }
 0x3d9   : > { %5078 = vmatpush3.xpose.msk.msra.mxu0 %vm437_vm0, %v6687_v43  ;;  %5114 = vmatprep.subr.mxu1 %v5688_v60 }
 0x3da   : > { %5079 = vmatprep.subr.mxu0 %v5688_v60 }
 0x3dc   : > { %5115 = vmatpush3.xpose.msk.msra.mxu1 %vm437_vm0, %v6816_v62 }
 0x3dd   : > { %5080 = vmatpush3.xpose.msk.msra.mxu0 %vm437_vm0, %v6692_v37  ;;  %5154 = vmatprep.subr.mxu1 %v5688_v60 }
 0x3de   : > { %5119 = vmatprep.subr.mxu0 %v5688_v60 }
 0x3f9   : > { %v2217_v59 = vpop.f32.mrf.mxu1 }
 0x3fa   : > { %v2644_v57 = vsel %vm437_vm0, %v2217_v59, 0.0  ;;  %v2676_v63 = vsel %vm437_vm0, %v2217_v59, -inf }
 0x3fb   : > { %2645 = vadd.xlane.f32.xlu1 %v2644_v57  ;;  %v2147_v15 = vpop.f32.mrf.mxu0  ;;  %v4838_v6 = vpop.f32.mrf.mxu1 }
 0x3fc   : > { %v2641_v20 = vsel %vm437_vm0, %v2147_v15, 0.0  ;;  %v2673_v31 = vsel %vm437_vm0, %v2147_v15, -inf }
 0x3fd   : > { %2642 = vadd.xlane.f32.xlu0 %v2641_v20  ;;  %v4803_v18 = vpop.f32.mrf.mxu0 }
 0x3ff   : > { %2677 = vmax.xlane.f32.xlu1 %v2676_v63 }
 0x401   : > { %2674 = vmax.xlane.f32.xlu0 %v2673_v31 }
 0x419   : > { %v2357_v41 = vpop.f32.mrf.mxu1 }
 0x41a   : > { %v2650_v17 = vsel %vm437_vm0, %v2357_v41, 0.0  ;;  %v2682_v43 = vsel %vm437_vm0, %v2357_v41, -inf }
 0x41b   : > { %2651 = vadd.xlane.f32.xlu1 %v2650_v17  ;;  %v4908_v44 = vpop.f32.mrf.mxu1 }
 0x41c   : > { %v2287_v22 = vpop.f32.mrf.mxu0 }
 0x41d   : > { %v2647_v26 = vsel %vm437_vm0, %v2287_v22, 0.0  ;;  %v2679_v37 = vsel %vm437_vm0, %v2287_v22, -inf }
 0x41e   : > { %2648 = vadd.xlane.f32.xlu0 %v2647_v26  ;;  %v4873_v23 = vpop.f32.mrf.mxu0 }
 0x41f   : > { %2683 = vmax.xlane.f32.xlu1 %v2682_v43 }
 0x422   : > { %2680 = vmax.xlane.f32.xlu0 %v2679_v37 }
 0x43b   : > { %v7420_v4 = vpop.f32.mrf.mxu1 }
 0x43c   : > { %v2688_v23 = vsel %vm437_vm0, %v7420_v4, -inf }
 0x43d   : > { %v4978_v3 = vpop.f32.mrf.mxu1 }
 0x43e   : > { %v7422_v50 = vpop.f32.mrf.mxu0 }
 0x43f   : > { %v2653_v26 = vsel %vm437_vm0, %v7422_v50, 0.0 }
 0x440   : > { %v4943_v40 = vpop.f32.mrf.mxu0 }
 0x441   : > { %v2685_v40 = vsel %vm437_vm0, %v7422_v50, -inf }
 0x45d   : > { %v7424_v27 = vpop.f32.mrf.mxu1 }
 0x45f   : > { %v7426_v49 = vpop.f32.mrf.mxu0  ;;  %v5048_v51 = vpop.f32.mrf.mxu1 }
 0x461   : > { %v5013_v8 = vpop.f32.mrf.mxu0 }
 0x484   : > { %v2646_v42 = vpop.xlane.xlu1 %2645 }
 0x485   : > { %v2666_v30 = vmul.f32 0.015625, %v2646_v42 }
 0x486   : > { %v2643_v53 = vpop.xlane.xlu0 %2642 }
 0x487   : > { %v2665_v54 = vmul.f32 0.015625, %v2643_v53 }
 0x488   : > { %v2678_v5 = vpop.xlane.xlu1 %2677 }
 0x489   : > { %v2698_v32 = vmax.f32 %v2678_v5, %v2666_v30 }
 0x48a   : > { %v2675_v25 = vpop.xlane.xlu0 %2674 }
 0x48b   : > { %v2706_v62 = vsub.f32 %v2666_v30, %v2698_v32  ;;  %v2730_v21 = vsub.f32 %v2217_v59, %v2698_v32  ;;  %v2697_v35 = vmax.f32 %v2675_v25, %v2665_v54  ;;  %v2656_v59 = vsel %vm437_vm0, %v7420_v4, 0.0 }
 0x48d   : > { %v2739_v57 = vmul.f32 1.442695, %v2730_v21  ;;  %v2705_v6 = vsub.f32 %v2665_v54, %v2697_v35  ;;  %v2729_v20 = vsub.f32 %v2147_v15, %v2697_v35 }
 0x48f   : > { %v2737_v18 = vmul.f32 1.442695, %v2729_v20  ;;  %5450 = vpow2.f32 %v2739_v57 }
 0x491   : > { %5452 = vpow2.f32 %v2737_v18  ;;  %v2662_v18 = vsel %vm437_vm0, %v7424_v27, 0.0 }
 0x49c   : > { %v7428_v63 = vpop.eup %5450 }
 0x49d   : > { %v2756_v31 = vsel %vm437_vm0, %v7428_v63, 0.0 }
 0x49e   : > { %v7432_v17 = vpop.eup %5452  ;;  %2757 = vadd.xlane.f32.xlu1 %v2756_v31  ;;  %v2694_v31 = vsel %vm437_vm0, %v7424_v27, -inf }
 0x49f   : > { %v2753_v44 = vsel %vm437_vm0, %v7432_v17, 0.0 }
 0x4a0   : > { %2754 = vadd.xlane.f32.xlu0 %v2753_v44  ;;  %v2691_v44 = vsel %vm437_vm0, %v7426_v49, -inf }
 0x4a2   : > { %2657 = vadd.xlane.f32.xlu1 %v2656_v59  ;;  %v2715_v59 = vmul.f32 1.442695, %v2706_v62 }
 0x4a4   : > { %v2652_v15 = vpop.xlane.xlu1 %2651  ;;  %2654 = vadd.xlane.f32.xlu0 %v2653_v26 }
 0x4a5   : > { %v7442_v43 = vmul.f32 0.015625, %v2652_v15  ;;  %v2713_v15 = vmul.f32 1.442695, %v2705_v6 }
 0x4a6   : > { %2689 = vmax.xlane.f32.xlu1 %v2688_v23 }
 0x4a7   : > { %v2649_v37 = vpop.xlane.xlu0 %2648 }
 0x4a8   : > { %v2684_v3 = vpop.xlane.xlu1 %2683  ;;  %2686 = vmax.xlane.f32.xlu0 %v2685_v40  ;;  %v7449_v8 = vmul.f32 0.015625, %v2649_v37 }
 0x4a9   : > { %v7447_v51 = vmax.f32 %v2684_v3, %v7442_v43 }
 0x4ab   : > { %v2708_v42 = vsub.f32 %v7442_v43, %v7447_v51  ;;  %v2732_v53 = vsub.f32 %v2357_v41, %v7447_v51  ;;  %v2681_v30 = vpop.xlane.xlu0 %2680 }
 0x4ac   : > { %v7455_v5 = vmax.f32 %v2681_v30, %v7449_v8 }
 0x4ad   : > { %v2743_v54 = vmul.f32 1.442695, %v2732_v53 }
 0x4ae   : > { %v2707_v32 = vsub.f32 %v7449_v8, %v7455_v5  ;;  %v2731_v25 = vsub.f32 %v2287_v22, %v7455_v5  ;;  %v2659_v22 = vsel %vm437_vm0, %v7426_v49, 0.0 }
 0x4af   : > { %5454 = vpow2.f32 %v2743_v54 }
 0x4b0   : > { %v2741_v21 = vmul.f32 1.442695, %v2731_v25 }
 0x4b2   : > { %5456 = vpow2.f32 %v2741_v21 }
 0x4b3   : > { %5458 = vpow2.f32 %v2715_v59 }
 0x4b4   : > { %5460 = vpow2.f32 %v2713_v15 }
 0x4bc   : > { %v7460_v35 = vpop.eup %5454 }
 0x4bd   : > { %v2762_v57 = vsel %vm437_vm0, %v7460_v35, 0.0 }
 0x4be   : > { %2763 = vadd.xlane.f32.xlu1 %v2762_v57 }
 0x4bf   : > { %v7464_v41 = vpop.eup %5456 }
 0x4c0   : > { %v2759_v20 = vsel %vm437_vm0, %v7464_v41, 0.0  ;;  %v5459_v26 = vpop.eup %5458 }
 0x4c1   : > { %2760 = vadd.xlane.f32.xlu0 %v2759_v20  ;;  %v5461_v3 = vpop.eup %5460 }
 0x4c2   : > { %2663 = vadd.xlane.f32.xlu1 %v2662_v18 }
 0x4c5   : > { %2660 = vadd.xlane.f32.xlu0 %v2659_v22 }
 0x4c6   : > { %2695 = vmax.xlane.f32.xlu1 %v2694_v31 }
 0x4c9   : > { %2692 = vmax.xlane.f32.xlu0 %v2691_v44 }
 0x527   : > { %v2758_v23 = vpop.xlane.xlu1 %2757 }
 0x528   : > { %v2778_v37 = vadd.f32 %v5459_v26, %v2758_v23 }
 0x529   : > { %v2755_v40 = vpop.xlane.xlu0 %2754 }
 0x52a   : > { %5462 = vrcp.f32 %v2778_v37  ;;  %v2777_v53 = vadd.f32 %v5461_v3, %v2755_v40 }
 0x52b   : > { %v2658_v30 = vpop.xlane.xlu1 %2657 }
 0x52c   : > { %5464 = vrcp.f32 %v2777_v53  ;;  %v7476_v25 = vmul.f32 0.015625, %v2658_v30 }
 0x52d   : > { %v2655_v54 = vpop.xlane.xlu0 %2654 }
 0x52e   : > { %v7478_v57 = vmul.f32 0.015625, %v2655_v54 }
 0x52f   : > { %v2690_v21 = vpop.xlane.xlu1 %2689 }
 0x530   : > { %v7481_v62 = vmax.f32 %v2690_v21, %v7476_v25 }
 0x531   : > { %v2687_v6 = vpop.xlane.xlu0 %2686 }
 0x532   : > { %v2710_v20 = vsub.f32 %v7476_v25, %v7481_v62  ;;  %v2734_v18 = vsub.f32 %v7420_v4, %v7481_v62  ;;  %v7488_v22 = vmax.f32 %v2687_v6, %v7478_v57 }
 0x534   : > { %v2747_v31 = vmul.f32 1.442695, %v2734_v18  ;;  %v2709_v44 = vsub.f32 %v7478_v57, %v7488_v22  ;;  %v2733_v59 = vsub.f32 %v7422_v50, %v7488_v22 }
 0x536   : > { %v2745_v15 = vmul.f32 1.442695, %v2733_v59  ;;  %5466 = vpow2.f32 %v2747_v31 }
 0x537   : > { %v5463_v23 = vpop.eup %5462 }
 0x538   : > { %v2802_v37 = vmul.f32 %v5463_v23, %v5459_v26  ;;  %5468 = vpow2.f32 %v2745_v15  ;;  %v2810_v53 = vmul.f32 %v5463_v23, %v7428_v63  ;;  %v8193_v15 = vld [vmem:[#allocation10_spill] sm:$0xff] }
 0x539   : > { %v5465_v40 = vpop.eup %5464 }
 0x53a   : > { %v2818_v30 = vmul.f32 0.015625, %v2802_v37  ;;  %v2801_v4 = vmul.f32 %v5465_v40, %v5461_v3  ;;  %v2809_v21 = vmul.f32 %v5465_v40, %v7432_v17  ;;  %v8194_v40 = vld [vmem:[#allocation11_spill] sm:$0xff] }
 0x53c   : > { %v2826_v54 = vadd.f32 %v2818_v30, %v2810_v53  ;;  %v2817_v6 = vmul.f32 0.015625, %v2801_v4  ;;  %v8195_v30 = vld [vmem:[#allocation12_spill] sm:$0xff]  ;;  %v8198_v4 = vld [vmem:[#allocation15_spill] sm:$0xff] }
 0x53e   : > { %5117 = vmatmul.mubr.msk.f32.vlgmr.msra.gmra.mxu1 %vm437_vm0, %v2826_v54  ;;  %v2825_v18 = vadd.f32 %v2817_v6, %v2809_v21  ;;  %v8199_v54 = vld [vmem:[#allocation16_spill] sm:$0xff]  ;;  %v8200_v21 = vld [vmem:[#allocation17_spill] sm:$0xff]  ;;  %v8201_v6 = vld [vmem:[#allocation18_spill] sm:$0xff] }
 0x53f   : > { %5155 = vmatpush3.xpose.msk.msra.mxu1 %vm437_vm0, %v6821_v45  ;;  %5186 = vmatprep.mubr.msk.f32.mxu1 %vm5689_vm11, %v5688_v60 }
 0x540   : > { %5082 = vmatmul.mubr.msk.f32.vlgmr.msra.gmra.mxu0 %vm437_vm0, %v2825_v18  ;;  %5156 = vmatprep.subr.mxu1 %v5688_v60  ;;  %v8202_v18 = vld [vmem:[#allocation19_spill] sm:$0xff] }
 0x541   : > { %5120 = vmatpush3.xpose.msk.msra.mxu0 %vm437_vm0, %v6828_v48  ;;  %5151 = vmatprep.mubr.msk.f32.mxu0 %vm5689_vm11, %v5688_v60 }
 0x542   : > { %5121 = vmatprep.subr.mxu0 %v5688_v60 }
 0x543   : > { %5157 = vmatpush3.xpose.msk.msra.mxu1 %vm437_vm0, %v6832_v11  ;;  %v7510_v50 = vpop.eup %5466 }
 0x544   : > { %5158 = vmatprep.subr.mxu1 %v5688_v60  ;;  %v2768_v45 = vsel %vm437_vm0, %v7510_v50, 0.0 }
 0x545   : > { %5122 = vmatpush3.xpose.msk.msra.mxu0 %vm437_vm0, %v6838_v39  ;;  %v7517_v63 = vpop.eup %5468  ;;  %2769 = vadd.xlane.f32.xlu1 %v2768_v45  ;;  %v8203_v45 = vld [vmem:[#allocation20_spill] sm:$0xff] }
 0x546   : > { %5123 = vmatprep.subr.mxu0 %v5688_v60  ;;  %v2765_v11 = vsel %vm437_vm0, %v7517_v63, 0.0 }
 0x547   : > { %5159 = vmatpush3.xpose.msk.msra.mxu1 %vm437_vm0, %v6842_v28  ;;  %v2764_v48 = vpop.xlane.xlu1 %2763  ;;  %2766 = vadd.xlane.f32.xlu0 %v2765_v11  ;;  %v2719_v28 = vmul.f32 1.442695, %v2708_v42  ;;  %v8205_v11 = vld [vmem:[#allocation22_spill] sm:$0xff] }
 0x548   : > { %5160 = vmatprep.subr.mxu1 %v5688_v60 }
 0x549   : > { %5124 = vmatpush3.xpose.msk.msra.mxu0 %vm437_vm0, %v6848_v14  ;;  %5470 = vpow2.f32 %v2719_v28  ;;  %v8208_v28 = vld [vmem:[#allocation25_spill] sm:$0xff] }
 0x54a   : > { %v2761_v39 = vpop.xlane.xlu0 %2760  ;;  %5125 = vmatprep.subr.mxu0 %v5688_v60 }
 0x54b   : > { %5161 = vmatpush3.xpose.msk.msra.mxu1 %vm437_vm0, %v6852_v9  ;;  %v2664_v17 = vpop.xlane.xlu1 %2663  ;;  %v2717_v9 = vmul.f32 1.442695, %v2707_v32 }
 0x54c   : > { %5162 = vmatprep.subr.mxu1 %v5688_v60  ;;  %v7536_v26 = vmul.f32 0.015625, %v2664_v17  ;;  %v8207_v17 = vld [vmem:[#allocation24_spill] sm:$0xff] }
 0x54d   : > { %5126 = vmatpush3.xpose.msk.msra.mxu0 %vm437_vm0, %v6858_v33  ;;  %5472 = vpow2.f32 %v2717_v9  ;;  %v8211_v9 = vld [vmem:[#allocation28_spill] sm:$0xff] }
 0x54e   : > { %v2661_v3 = vpop.xlane.xlu0 %2660  ;;  %5127 = vmatprep.subr.mxu0 %v5688_v60 }
 0x54f   : > { %5163 = vmatpush3.xpose.msk.msra.mxu1 %vm437_vm0, %v6862_v55  ;;  %v2696_v14 = vpop.xlane.xlu1 %2695  ;;  %v7548_v33 = vmul.f32 0.015625, %v2661_v3  ;;  %v8209_v3 = vld [vmem:[#allocation26_spill] sm:$0xff] }
 0x550   : > { %v7545_v31 = vmax.f32 %v2696_v14, %v7536_v26  ;;  %5164 = vmatprep.subr.mxu1 %v5688_v60  ;;  %v8210_v14 = vld [vmem:[#allocation27_spill] sm:$0xff] }
 0x551   : > { %5128 = vmatpush3.xpose.msk.msra.mxu0 %vm437_vm0, %v6868_v52 }
 0x552   : > { %v2712_v43 = vsub.f32 %v7536_v26, %v7545_v31  ;;  %v2736_v55 = vsub.f32 %v7424_v27, %v7545_v31  ;;  %v2693_v51 = vpop.xlane.xlu0 %2692  ;;  %5129 = vmatprep.subr.mxu0 %v5688_v60  ;;  %v8238_v26 = vld [vmem:[#allocation55_spill] sm:$0xff] }
 0x553   : > { %v7558_v8 = vmax.f32 %v2693_v51, %v7548_v33  ;;  %5165 = vmatpush3.xpose.msk.msra.mxu1 %vm437_vm0, %v6872_v38  ;;  %v8213_v51 = vld [vmem:[#allocation30_spill] sm:$0xff] }
 0x554   : > { %v2751_v42 = vmul.f32 1.442695, %v2736_v55  ;;  %5166 = vmatprep.subr.mxu1 %v5688_v60  ;;  %v8212_v55 = vld [vmem:[#allocation29_spill] sm:$0xff] }
 0x555   : > { %v2711_v52 = vsub.f32 %v7548_v33, %v7558_v8  ;;  %v2735_v5 = vsub.f32 %v7426_v49, %v7558_v8  ;;  %5130 = vmatpush3.xpose.msk.msra.mxu0 %vm437_vm0, %v6878_v13  ;;  %v8192_v49 = vld [vmem:[#allocation9_spill] sm:$0xff]  ;;  %v8239_v33 = vld [vmem:[#allocation56_spill] sm:$0xff] }
 0x556   : > { %5131 = vmatprep.subr.mxu0 %v5688_v60  ;;  %5474 = vpow2.f32 %v2751_v42  ;;  %v5471_v38 = vpop.eup %5470  ;;  %v8214_v42 = vld [vmem:[#allocation31_spill] sm:$0xff] }
 0x557   : > { %v2749_v27 = vmul.f32 1.442695, %v2735_v5  ;;  %5167 = vmatpush3.xpose.msk.msra.mxu1 %vm437_vm0, %v6882_v24  ;;  %v2780_v13 = vadd.f32 %v5471_v38, %v2764_v48  ;;  %v8204_v48 = vld [vmem:[#allocation21_spill] sm:$0xff]  ;;  %v8215_v5 = vld [vmem:[#allocation32_spill] sm:$0xff] }
 0x558   : > { %5168 = vmatprep.subr.mxu1 %v5688_v60 }
 0x559   : > { %5132 = vmatpush3.xpose.msk.msra.mxu0 %vm437_vm0, %v6888_v46  ;;  %5476 = vpow2.f32 %v2749_v27  ;;  %v8216_v27 = vld [vmem:[#allocation33_spill] sm:$0xff] }
 0x55a   : > { %5133 = vmatprep.subr.mxu0 %v5688_v60  ;;  %v5473_v24 = vpop.eup %5472  ;;  %5478 = vrcp.f32 %v2780_v13  ;;  %v8218_v13 = vld [vmem:[#allocation35_spill] sm:$0xff] }
 0x55b   : > { %5169 = vmatpush3.xpose.msk.msra.mxu1 %vm437_vm0, %v6892_v16  ;;  %v2779_v46 = vadd.f32 %v5473_v24, %v2761_v39  ;;  %v8206_v39 = vld [vmem:[#allocation23_spill] sm:$0xff] }
 0x55c   : > { %5170 = vmatprep.subr.mxu1 %v5688_v60 }
 0x55d   : > { %5134 = vmatpush3.xpose.msk.msra.mxu0 %vm437_vm0, %v6898_v2  ;;  %5480 = vrcp.f32 %v2779_v46  ;;  %v8220_v46 = vld [vmem:[#allocation37_spill] sm:$0xff] }
 0x55e   : > { %5135 = vmatprep.subr.mxu0 %v5688_v60 }
 0x55f   : > { %5171 = vmatpush3.xpose.msk.msra.mxu1 %vm437_vm0, %v6902_v29 }
 0x560   : > { %5172 = vmatprep.subr.mxu1 %v5688_v60 }
 0x561   : > { %5136 = vmatpush3.xpose.msk.msra.mxu0 %vm437_vm0, %v6908_v36 }
 0x562   : > { %5137 = vmatprep.subr.mxu0 %v5688_v60 }
 0x563   : > { %5173 = vmatpush3.xpose.msk.msra.mxu1 %vm437_vm0, %v6912_v56  ;;  %v7590_v16 = vpop.eup %5474 }
 0x564   : > { %5174 = vmatprep.subr.mxu1 %v5688_v60  ;;  %v2774_v2 = vsel %vm437_vm0, %v7590_v16, 0.0 }
 0x565   : > { %5138 = vmatpush3.xpose.msk.msra.mxu0 %vm437_vm0, %v6918_v7  ;;  %2775 = vadd.xlane.f32.xlu1 %v2774_v2  ;;  %v8221_v2 = vld [vmem:[#allocation38_spill] sm:$0xff] }
 0x566   : > { %5139 = vmatprep.subr.mxu0 %v5688_v60  ;;  %v7598_v29 = vpop.eup %5476 }
 0x567   : > { %5175 = vmatpush3.xpose.msk.msra.mxu1 %vm437_vm0, %v6922_v1  ;;  %v2771_v36 = vsel %vm437_vm0, %v7598_v29, 0.0  ;;  %v5479_v56 = vpop.eup %5478  ;;  %v8189_v1 = vld [vmem:[#allocation6_spill] sm:$0xff] }
 0x568   : > { %5176 = vmatprep.subr.mxu1 %v5688_v60  ;;  %2772 = vadd.xlane.f32.xlu0 %v2771_v36  ;;  %v2812_v32 = vmul.f32 %v5479_v56, %v7460_v35  ;;  %v8196_v35 = vld [vmem:[#allocation13_spill] sm:$0xff]  ;;  %v8222_v36 = vld [vmem:[#allocation39_spill] sm:$0xff] }
 0x569   : > { %5140 = vmatpush3.xpose.msk.msra.mxu0 %vm437_vm0, %v6928_v58  ;;  %v2804_v58 = vmul.f32 %v5479_v56, %v5471_v38  ;;  %v8217_v38 = vld [vmem:[#allocation34_spill] sm:$0xff]  ;;  %v8223_v56 = vld [vmem:[#allocation40_spill] sm:$0xff] }
 0x56a   : > { %5141 = vmatprep.subr.mxu0 %v5688_v60  ;;  %v5481_v7 = vpop.eup %5480 }
 0x56b   : > { %5177 = vmatpush3.xpose.msk.msra.mxu1 %vm437_vm0, %v6932_v34  ;;  %v8190_v34 = vld [vmem:[#allocation7_spill] sm:$0xff]  ;;  %v2811_v37 = vmul.f32 %v5481_v7, %v7464_v41  ;;  %v8197_v41 = vld [vmem:[#allocation14_spill] sm:$0xff] }
 0x56c   : > { %5178 = vmatprep.subr.mxu1 %v5688_v60 }
 0x56d   : > { %5142 = vmatpush3.xpose.msk.msra.mxu0 %vm437_vm0, %v6938_v47  ;;  %v2803_v47 = vmul.f32 %v5481_v7, %v5473_v24  ;;  %v8219_v24 = vld [vmem:[#allocation36_spill] sm:$0xff]  ;;  %v8224_v7 = vld [vmem:[#allocation41_spill] sm:$0xff] }
 0x56e   : > { %5143 = vmatprep.subr.mxu0 %v5688_v60 }
 0x56f   : > { %5179 = vmatpush3.xpose.msk.msra.mxu1 %vm437_vm0, %v6942_v61  ;;  %v8191_v61 = vld [vmem:[#allocation8_spill] sm:$0xff]  ;;  %v2819_v59 = vmul.f32 0.015625, %v2803_v47  ;;  %v2721_v47 = vmul.f32 1.442695, %v2709_v44 }
 0x570   : > { %5180 = vmatprep.subr.mxu1 %v5688_v60 }
 0x571   : > { %5144 = vmatpush3.xpose.msk.msra.mxu0 %vm437_vm0, %v6948_v10  ;;  %v2820_v10 = vmul.f32 0.015625, %v2804_v58  ;;  %v2827_v53 = vadd.f32 %v2819_v59, %v2811_v37  ;;  %v8226_v58 = vld [vmem:[#allocation43_spill] sm:$0xff] }
 0x572   : > { %5145 = vmatprep.subr.mxu0 %v5688_v60 }
 0x573   : > { %5181 = vmatpush3.xpose.msk.msra.mxu1 %vm437_vm0, %v8189_v1  ;;  %v2828_v23 = vadd.f32 %v2820_v10, %v2812_v32  ;;  %v8225_v1 = vld [vmem:[#allocation42_spill] sm:$0xff] }
 0x574   : > { %5182 = vmatprep.subr.mxu1 %v5688_v60 }
 0x575   : > { %5146 = vmatpush3.xpose.msk.msra.mxu0 %vm437_vm0, %v8190_v34  ;;  %v2723_v34 = vmul.f32 1.442695, %v2710_v20 }
 0x576   : > { %5147 = vmatprep.subr.mxu0 %v5688_v60 }
 0x577   : > { %5183 = vmatpush3.xpose.msk.msra.mxu1 %vm437_vm0, %v8191_v61  ;;  %5482 = vpow2.f32 %v2723_v34  ;;  %v8253_v34 = vld [vmem:[#allocation70_spill] sm:$0xff] }
 0x578   : > { %5184 = vmatprep.subr.mxu1 %v5688_v60  ;;  %5484 = vpow2.f32 %v2721_v47 }
 0x579   : > { %5148 = vmatpush3.xpose.msk.msra.mxu0 %vm437_vm0, %v8192_v49 }
 0x57a   : > { %5149 = vmatprep.subr.mxu0 %v5688_v60 }
 0x57b   : > { %5185 = vmatpush3.xpose.msk.msra.mxu1 %vm437_vm0, %v8193_v15 }
 0x57c   : > { %5224 = vmatprep.subr.mxu1 %v5688_v60 }
 0x57d   : > { %5150 = vmatpush3.xpose.msk.msra.mxu0 %vm437_vm0, %v8194_v40 }
 0x57e   : > { %5187 = vmatmul.mubr.msk.f32.vlgmr.msra.gmra.mxu1 %vm437_vm0, %v2828_v23  ;;  %5189 = vmatprep.subr.mxu0 %v5688_v60 }
 0x57f   : > { %5225 = vmatpush3.xpose.msk.msra.mxu1 %vm437_vm0, %v8195_v30  ;;  %5256 = vmatprep.mubr.msk.f32.mxu1 %vm5689_vm11, %v5688_v60  ;;  %v8227_v30 = vld [vmem:[#allocation44_spill] sm:$0xff] }
 0x580   : > { %5152 = vmatmul.mubr.msk.f32.vlgmr.msra.gmra.mxu0 %vm437_vm0, %v2827_v53  ;;  %5226 = vmatprep.subr.mxu1 %v5688_v60 }
 0x581   : > { %5190 = vmatpush3.xpose.msk.msra.mxu0 %vm437_vm0, %v8196_v35  ;;  %5221 = vmatprep.mubr.msk.f32.mxu0 %vm5689_vm11, %v5688_v60  ;;  %v8230_v35 = vld [vmem:[#allocation47_spill] sm:$0xff] }
 0x582   : > { %5191 = vmatprep.subr.mxu0 %v5688_v60 }
 0x583   : > { %5227 = vmatpush3.xpose.msk.msra.mxu1 %vm437_vm0, %v8197_v41  ;;  %v8231_v41 = vld [vmem:[#allocation48_spill] sm:$0xff] }
 0x584   : > { %5228 = vmatprep.subr.mxu1 %v5688_v60  ;;  %v5483_v61 = vpop.eup %5482 }
 0x585   : > { %5192 = vmatpush3.xpose.msk.msra.mxu0 %vm437_vm0, %v8198_v4  ;;  %v5485_v32 = vpop.eup %5484  ;;  %v8232_v4 = vld [vmem:[#allocation49_spill] sm:$0xff] }
 0x586   : > { %5193 = vmatprep.subr.mxu0 %v5688_v60 }
 0x587   : > { %5229 = vmatpush3.xpose.msk.msra.mxu1 %vm437_vm0, %v8199_v54  ;;  %v8233_v54 = vld [vmem:[#allocation50_spill] sm:$0xff] }
 0x588   : > { %5230 = vmatprep.subr.mxu1 %v5688_v60 }
 0x589   : > { %5194 = vmatpush3.xpose.msk.msra.mxu0 %vm437_vm0, %v8200_v21  ;;  %v8234_v21 = vld [vmem:[#allocation51_spill] sm:$0xff] }
 0x58a   : > { %5195 = vmatprep.subr.mxu0 %v5688_v60 }
 0x58b   : > { %5231 = vmatpush3.xpose.msk.msra.mxu1 %vm437_vm0, %v8201_v6  ;;  %v2727_v6 = vmul.f32 1.442695, %v2712_v43 }
 0x58c   : > { %5232 = vmatprep.subr.mxu1 %v5688_v60 }
 0x58d   : > { %5196 = vmatpush3.xpose.msk.msra.mxu0 %vm437_vm0, %v8202_v18  ;;  %v8235_v18 = vld [vmem:[#allocation52_spill] sm:$0xff] }
 0x58e   : > { %5197 = vmatprep.subr.mxu0 %v5688_v60 }
 0x58f   : > { %5233 = vmatpush3.xpose.msk.msra.mxu1 %vm437_vm0, %v8203_v45  ;;  %v2725_v45 = vmul.f32 1.442695, %v2711_v52  ;;  %v8240_v52 = vld [vmem:[#allocation57_spill] sm:$0xff] }
 0x590   : > { %5234 = vmatprep.subr.mxu1 %v5688_v60 }
 0x591   : > { %5198 = vmatpush3.xpose.msk.msra.mxu0 %vm437_vm0, %v8204_v48  ;;  %v8236_v48 = vld [vmem:[#allocation53_spill] sm:$0xff] }
 0x592   : > { %5199 = vmatprep.subr.mxu0 %v5688_v60 }
 0x593   : > { %5235 = vmatpush3.xpose.msk.msra.mxu1 %vm437_vm0, %v8205_v11  ;;  %v8237_v11 = vld [vmem:[#allocation54_spill] sm:$0xff] }
 0x594   : > { %5236 = vmatprep.subr.mxu1 %v5688_v60 }
 0x595   : > { %5200 = vmatpush3.xpose.msk.msra.mxu0 %vm437_vm0, %v8206_v39 }
 0x596   : > { %5201 = vmatprep.subr.mxu0 %v5688_v60 }
 0x597   : > { %5237 = vmatpush3.xpose.msk.msra.mxu1 %vm437_vm0, %v8207_v17  ;;  %v8241_v17 = vld [vmem:[#allocation58_spill] sm:$0xff] }
 0x598   : > { %5238 = vmatprep.subr.mxu1 %v5688_v60 }
 0x599   : > { %5202 = vmatpush3.xpose.msk.msra.mxu0 %vm437_vm0, %v8208_v28 }
 0x59a   : > { %5203 = vmatprep.subr.mxu0 %v5688_v60 }
 0x59b   : > { %5239 = vmatpush3.xpose.msk.msra.mxu1 %vm437_vm0, %v8209_v3  ;;  %v8242_v3 = vld [vmem:[#allocation59_spill] sm:$0xff] }
 0x59c   : > { %5240 = vmatprep.subr.mxu1 %v5688_v60 }
 0x59d   : > { %5204 = vmatpush3.xpose.msk.msra.mxu0 %vm437_vm0, %v8210_v14 }
 0x59e   : > { %5205 = vmatprep.subr.mxu0 %v5688_v60 }
 0x59f   : > { %5241 = vmatpush3.xpose.msk.msra.mxu1 %vm437_vm0, %v8211_v9 }
 0x5a0   : > { %5242 = vmatprep.subr.mxu1 %v5688_v60 }
 0x5a1   : > { %5206 = vmatpush3.xpose.msk.msra.mxu0 %vm437_vm0, %v8212_v55  ;;  %v8243_v55 = vld [vmem:[#allocation60_spill] sm:$0xff] }
 0x5a2   : > { %5207 = vmatprep.subr.mxu0 %v5688_v60 }
 0x5a3   : > { %5243 = vmatpush3.xpose.msk.msra.mxu1 %vm437_vm0, %v8213_v51 }
 0x5a4   : > { %5244 = vmatprep.subr.mxu1 %v5688_v60 }
 0x5a5   : > { %5208 = vmatpush3.xpose.msk.msra.mxu0 %vm437_vm0, %v8214_v42 }
 0x5a6   : > { %5209 = vmatprep.subr.mxu0 %v5688_v60 }
 0x5a7   : > { %5245 = vmatpush3.xpose.msk.msra.mxu1 %vm437_vm0, %v8215_v5  ;;  %v8244_v5 = vld [vmem:[#allocation61_spill] sm:$0xff] }
 0x5a8   : > { %5246 = vmatprep.subr.mxu1 %v5688_v60 }
 0x5a9   : > { %5210 = vmatpush3.xpose.msk.msra.mxu0 %vm437_vm0, %v8216_v27 }
 0x5aa   : > { %5211 = vmatprep.subr.mxu0 %v5688_v60 }
 0x5ab   : > { %5247 = vmatpush3.xpose.msk.msra.mxu1 %vm437_vm0, %v8217_v38  ;;  %v8245_v38 = vld [vmem:[#allocation62_spill] sm:$0xff] }
 0x5ac   : > { %5248 = vmatprep.subr.mxu1 %v5688_v60 }
 0x5ad   : > { %5212 = vmatpush3.xpose.msk.msra.mxu0 %vm437_vm0, %v8218_v13  ;;  %v8246_v13 = vld [vmem:[#allocation63_spill] sm:$0xff] }
 0x5ae   : > { %5213 = vmatprep.subr.mxu0 %v5688_v60 }
 0x5af   : > { %5249 = vmatpush3.xpose.msk.msra.mxu1 %vm437_vm0, %v8219_v24  ;;  %v8247_v24 = vld [vmem:[#allocation64_spill] sm:$0xff] }
 0x5b0   : > { %5250 = vmatprep.subr.mxu1 %v5688_v60 }
 0x5b1   : > { %5214 = vmatpush3.xpose.msk.msra.mxu0 %vm437_vm0, %v8220_v46  ;;  %v8248_v46 = vld [vmem:[#allocation65_spill] sm:$0xff] }
 0x5b2   : > { %5215 = vmatprep.subr.mxu0 %v5688_v60 }
 0x5b3   : > { %5251 = vmatpush3.xpose.msk.msra.mxu1 %vm437_vm0, %v8221_v2  ;;  %v8249_v2 = vld [vmem:[#allocation66_spill] sm:$0xff] }
 0x5b4   : > { %5252 = vmatprep.subr.mxu1 %v5688_v60 }
 0x5b5   : > { %5216 = vmatpush3.xpose.msk.msra.mxu0 %vm437_vm0, %v8222_v36  ;;  %v8250_v36 = vld [vmem:[#allocation67_spill] sm:$0xff] }
 0x5b6   : > { %5217 = vmatprep.subr.mxu0 %v5688_v60 }
 0x5b7   : > { %5253 = vmatpush3.xpose.msk.msra.mxu1 %vm437_vm0, %v8223_v56  ;;  %v8251_v56 = vld [vmem:[#allocation68_spill] sm:$0xff] }
 0x5b8   : > { %5254 = vmatprep.subr.mxu1 %v5688_v60 }
 0x5b9   : > { %5218 = vmatpush3.xpose.msk.msra.mxu0 %vm437_vm0, %v8224_v7 }
 0x5ba   : > { %5219 = vmatprep.subr.mxu0 %v5688_v60 }
 0x5bb   : > { %5255 = vmatpush3.xpose.msk.msra.mxu1 %vm437_vm0, %v8225_v1  ;;  %v8252_v1 = vld [vmem:[#allocation69_spill] sm:$0xff] }
 0x5bc   : > { %5294 = vmatprep.subr.mxu1 %v5688_v60 }
 0x5bd   : > { %5220 = vmatpush3.xpose.msk.msra.mxu0 %vm437_vm0, %v8226_v58 }
 0x5be   : > { %5259 = vmatprep.subr.mxu0 %v5688_v60 }
 0x5ce   : > { %v2770_v10 = vpop.xlane.xlu1 %2769 }
 0x5cf   : > { %v2782_v49 = vadd.f32 %v5483_v61, %v2770_v10 }
 0x5d0   : > { %v2767_v59 = vpop.xlane.xlu0 %2766 }
 0x5d1   : > { %5486 = vrcp.f32 %v2782_v49  ;;  %v2781_v15 = vadd.f32 %v5485_v32, %v2767_v59  ;;  %v8255_v49 = vld [vmem:[#allocation72_spill] sm:$0xff] }
 0x5d3   : > { %5488 = vrcp.f32 %v2781_v15 }
 0x5d4   : > { %5490 = vpow2.f32 %v2727_v6 }
 0x5d5   : > { %5492 = vpow2.f32 %v2725_v45 }
 0x5de   : > { %v5487_v23 = vpop.eup %5486 }
 0x5df   : > { %v2806_v37 = vmul.f32 %v5487_v23, %v5483_v61  ;;  %v2814_v62 = vmul.f32 %v5487_v23, %v7510_v50  ;;  %v8228_v50 = vld [vmem:[#allocation45_spill] sm:$0xff]  ;;  %v8254_v61 = vld [vmem:[#allocation71_spill] sm:$0xff]  ;;  %v3816_v23 = vld [vmem:[%s8044_s3 + $0x78] sm:$0xff] }
 0x5e0   : > { %v5489_v25 = vpop.eup %5488 }
 0x5e1   : > { %v2822_v20 = vmul.f32 0.015625, %v2806_v37  ;;  %v2805_v40 = vmul.f32 %v5489_v25, %v5485_v32  ;;  %v2813_v57 = vmul.f32 %v5489_v25, %v7517_v63  ;;  %v8229_v63 = vld [vmem:[#allocation46_spill] sm:$0xff]  ;;  %v5491_v14 = vpop.eup %5490 }
 0x5e2   : > { %v5493_v42 = vpop.eup %5492 }
 0x5e3   : > { %v2830_v53 = vadd.f32 %v2822_v20, %v2814_v62  ;;  %v2821_v22 = vmul.f32 0.015625, %v2805_v40  ;;  %v3811_v62 = vld [vmem:[%s8044_s3 + $0x50] sm:$0xff]  ;;  %v3810_v20 = vld [vmem:[%s8044_s3 + $0x48] sm:$0xff]  ;;  %v3809_v40 = vld [vmem:[%s8044_s3 + $0x40] sm:$0xff] }
 0x5e5   : > { %5257 = vmatmul.mubr.msk.f32.vlgmr.msra.gmra.mxu1 %vm437_vm0, %v2830_v53  ;;  %v2829_v44 = vadd.f32 %v2821_v22, %v2813_v57  ;;  %v3808_v53 = vld [vmem:[%s8044_s3 + $0x38] sm:$0xff]  ;;  %v3807_v57 = vld [vmem:[%s8044_s3 + $0x30] sm:$0xff]  ;;  %v3806_v22 = vld [vmem:[%s8044_s3 + $0x28] sm:$0xff] }
 0x5e6   : > { %5295 = vmatpush3.xpose.msk.msra.mxu1 %vm437_vm0, %v8227_v30  ;;  %5326 = vmatprep.mubr.msk.f32.mxu1 %vm5689_vm11, %v5688_v60  ;;  %v3804_v30 = vld [vmem:[%s8044_s3 + $0x18] sm:$0xff] }
 0x5e7   : > { %5222 = vmatmul.mubr.msk.f32.vlgmr.msra.gmra.mxu0 %vm437_vm0, %v2829_v44  ;;  %5296 = vmatprep.subr.mxu1 %v5688_v60  ;;  %v3805_v44 = vld [vmem:[%s8044_s3 + $0x20] sm:$0xff] }
 0x5e8   : > { %5260 = vmatpush3.xpose.msk.msra.mxu0 %vm437_vm0, %v8228_v50  ;;  %5291 = vmatprep.mubr.msk.f32.mxu0 %vm5689_vm11, %v5688_v60 }
 0x5e9   : > { %5261 = vmatprep.subr.mxu0 %v5688_v60 }
 0x5ea   : > { %5297 = vmatpush3.xpose.msk.msra.mxu1 %vm437_vm0, %v8229_v63  ;;  %v3803_v63 = vld [vmem:[%s8044_s3 + $0x10] sm:$0xff] }
 0x5eb   : > { %5298 = vmatprep.subr.mxu1 %v5688_v60 }
 0x5ec   : > { %5262 = vmatpush3.xpose.msk.msra.mxu0 %vm437_vm0, %v8230_v35 }
 0x5ed   : > { %5263 = vmatprep.subr.mxu0 %v5688_v60 }
 0x5ee   : > { %5299 = vmatpush3.xpose.msk.msra.mxu1 %vm437_vm0, %v8231_v41  ;;  %v2776_v28 = vpop.xlane.xlu1 %2775 }
 0x5ef   : > { %5300 = vmatprep.subr.mxu1 %v5688_v60  ;;  %v2784_v51 = vadd.f32 %v5491_v14, %v2776_v28  ;;  %v4003_v28 = vld [vmem:[%s8045_s4 + $0x50] sm:$0xff] }
 0x5f0   : > { %5264 = vmatpush3.xpose.msk.msra.mxu0 %vm437_vm0, %v8232_v4  ;;  %v3802_v4 = vld [vmem:[%s8044_s3 + $0x8] sm:$0xff] }
 0x5f1   : > { %5265 = vmatprep.subr.mxu0 %v5688_v60  ;;  %v2773_v9 = vpop.xlane.xlu0 %2772  ;;  %5494 = vrcp.f32 %v2784_v51  ;;  %v3998_v51 = vld [vmem:[%s8045_s4 + $0x28] sm:$0xff] }
 0x5f2   : > { %5301 = vmatpush3.xpose.msk.msra.mxu1 %vm437_vm0, %v8233_v54  ;;  %v2783_v27 = vadd.f32 %v5493_v42, %v2773_v9  ;;  %v4000_v9 = vld [vmem:[%s8045_s4 + $0x38] sm:$0xff] }
 0x5f3   : > { %5302 = vmatprep.subr.mxu1 %v5688_v60 }
 0x5f4   : > { %5266 = vmatpush3.xpose.msk.msra.mxu0 %vm437_vm0, %v8234_v21  ;;  %5496 = vrcp.f32 %v2783_v27  ;;  %v3801_v21 = vld [vmem:[%s8044_s3] sm:$0xff]  ;;  %v3995_v27 = vld [vmem:[%s8045_s4 + $0x10] sm:$0xff] }
 0x5f5   : > { %5267 = vmatprep.subr.mxu0 %v5688_v60 }
 0x5f6   : > { %5303 = vmatpush3.xpose.msk.msra.mxu1 %vm437_vm0, %v8235_v18 }
 0x5f7   : > { %5304 = vmatprep.subr.mxu1 %v5688_v60 }
 0x5f8   : > { %5268 = vmatpush3.xpose.msk.msra.mxu0 %vm437_vm0, %v8236_v48 }
 0x5f9   : > { %5269 = vmatprep.subr.mxu0 %v5688_v60 }
 0x5fa   : > { %5305 = vmatpush3.xpose.msk.msra.mxu1 %vm437_vm0, %v8237_v11 }
 0x5fb   : > { %5306 = vmatprep.subr.mxu1 %v5688_v60 }
 0x5fc   : > { %5270 = vmatpush3.xpose.msk.msra.mxu0 %vm437_vm0, %v8238_v26 }
 0x5fd   : > { %5271 = vmatprep.subr.mxu0 %v5688_v60 }
 0x5fe   : > { %v7797_v31 = vpop.f32.mrf.mxu1  ;;  %5307 = vmatpush3.xpose.msk.msra.mxu1 %vm437_vm0, %v8239_v33  ;;  %v5495_v7 = vpop.eup %5494 }
 0x5ff   : > { %5308 = vmatprep.subr.mxu1 %v5688_v60  ;;  %v2808_v47 = vmul.f32 %v5495_v7, %v5491_v14  ;;  %v2816_v59 = vmul.f32 %v5495_v7, %v7590_v16  ;;  %v3813_v16 = vld [vmem:[%s8044_s3 + $0x60] sm:$0xff]  ;;  %v8256_v7 = vld [vmem:[#allocation5_spill] sm:$0xff] }
 0x600   : > { %v7802_v43 = vpop.f32.mrf.mxu0  ;;  %v5118_v8 = vpop.f32.mrf.mxu1  ;;  %5272 = vmatpush3.xpose.msk.msra.mxu0 %vm437_vm0, %v8240_v52  ;;  %v4006_v52 = vld [vmem:[%s8045_s4 + $0x68] sm:$0xff]  ;;  %v4001_v14 = vld [vmem:[%s8045_s4 + $0x40] sm:$0xff] }
 0x601   : > { %5273 = vmatprep.subr.mxu0 %v5688_v60  ;;  %v5497_v58 = vpop.eup %5496  ;;  %v2824_v32 = vmul.f32 0.015625, %v2808_v47  ;;  %v4008_v8 = vld [vmem:[%s8045_s4 + $0x78] sm:$0xff] }
 0x602   : > { %v5083_v39 = vpop.f32.mrf.mxu0  ;;  %5309 = vmatpush3.xpose.msk.msra.mxu1 %vm437_vm0, %v8241_v17  ;;  %v2807_v10 = vmul.f32 %v5497_v58, %v5493_v42  ;;  %v2815_v25 = vmul.f32 %v5497_v58, %v7598_v29  ;;  %v3812_v29 = vld [vmem:[%s8044_s3 + $0x58] sm:$0xff]  ;;  %v3997_v42 = vld [vmem:[%s8045_s4 + $0x20] sm:$0xff] }
 0x603   : > { %5310 = vmatprep.subr.mxu1 %v5688_v60  ;;  %v2832_v37 = vadd.f32 %v2824_v32, %v2816_v59  ;;  %v4005_v39 = vld [vmem:[%s8045_s4 + $0x60] sm:$0xff]  ;;  %v4004_v17 = vld [vmem:[%s8045_s4 + $0x58] sm:$0xff] }
 0x604   : > { %5274 = vmatpush3.xpose.msk.msra.mxu0 %vm437_vm0, %v8242_v3  ;;  %v2823_v15 = vmul.f32 0.015625, %v2807_v10  ;;  %v4002_v3 = vld [vmem:[%s8045_s4 + $0x48] sm:$0xff] }
 0x605   : > { %5275 = vmatprep.subr.mxu0 %v5688_v60 }
 0x606   : > { %5311 = vmatpush3.xpose.msk.msra.mxu1 %vm437_vm0, %v8243_v55  ;;  %v3999_v55 = vld [vmem:[%s8045_s4 + $0x30] sm:$0xff] }
 0x607   : > { %5312 = vmatprep.subr.mxu1 %v5688_v60 }
 0x608   : > { %5276 = vmatpush3.xpose.msk.msra.mxu0 %vm437_vm0, %v8244_v5  ;;  %v3996_v5 = vld [vmem:[%s8045_s4 + $0x18] sm:$0xff] }
 0x609   : > { %5277 = vmatprep.subr.mxu0 %v5688_v60 }
 0x60a   : > { %5313 = vmatpush3.xpose.msk.msra.mxu1 %vm437_vm0, %v8245_v38  ;;  %v3994_v38 = vld [vmem:[%s8045_s4 + $0x8] sm:$0xff] }
 0x60b   : > { %5314 = vmatprep.subr.mxu1 %v5688_v60 }
 0x60c   : > { %5278 = vmatpush3.xpose.msk.msra.mxu0 %vm437_vm0, %v8246_v13  ;;  %v3993_v13 = vld [vmem:[%s8045_s4] sm:$0xff] }
 0x60d   : > { %5279 = vmatprep.subr.mxu0 %v5688_v60 }
 0x60e   : > { %5315 = vmatpush3.xpose.msk.msra.mxu1 %vm437_vm0, %v8247_v24 }
 0x60f   : > { %5316 = vmatprep.subr.mxu1 %v5688_v60 }
 0x610   : > { %5280 = vmatpush3.xpose.msk.msra.mxu0 %vm437_vm0, %v8248_v46 }
 0x611   : > { %5281 = vmatprep.subr.mxu0 %v5688_v60 }
 0x612   : > { %5317 = vmatpush3.xpose.msk.msra.mxu1 %vm437_vm0, %v8249_v2 }
 0x613   : > { %5318 = vmatprep.subr.mxu1 %v5688_v60 }
 0x614   : > { %5282 = vmatpush3.xpose.msk.msra.mxu0 %vm437_vm0, %v8250_v36 }
 0x615   : > { %5283 = vmatprep.subr.mxu0 %v5688_v60 }
 0x616   : > { %5319 = vmatpush3.xpose.msk.msra.mxu1 %vm437_vm0, %v8251_v56 }
 0x617   : > { %5320 = vmatprep.subr.mxu1 %v5688_v60 }
 0x618   : > { %5284 = vmatpush3.xpose.msk.msra.mxu0 %vm437_vm0, %v8252_v1 }
 0x619   : > { %5285 = vmatprep.subr.mxu0 %v5688_v60 }
 0x61a   : > { %5321 = vmatpush3.xpose.msk.msra.mxu1 %vm437_vm0, %v8253_v34 }
 0x61b   : > { %5322 = vmatprep.subr.mxu1 %v5688_v60 }
 0x61c   : > { %5286 = vmatpush3.xpose.msk.msra.mxu0 %vm437_vm0, %v8254_v61 }
 0x61d   : > { %5287 = vmatprep.subr.mxu0 %v5688_v60 }
 0x61e   : > { %5323 = vmatpush3.xpose.msk.msra.mxu1 %vm437_vm0, %v8255_v49 }
 0x61f   : > { %5324 = vmatprep.subr.mxu1 %v5688_v60 }
 0x620   : > { %5288 = vmatpush3.xpose.msk.msra.mxu0 %vm437_vm0, %v7294_v0  ;;  %v2831_v0 = vadd.f32 %v2823_v15, %v2815_v25 }
 0x621   : > { %5289 = vmatprep.subr.mxu0 %v5688_v60 }
 0x622   : > { %5325 = vmatpush3.xpose.msk.msra.mxu1 %vm437_vm0, %v7298_v12  ;;  %v3815_v12 = vld [vmem:[%s8044_s3 + $0x70] sm:$0xff] }
 0x623   : > { %5373 = vmatprep.subr.mxu1 %v5688_v60 }
 0x624   : > { %5290 = vmatpush3.xpose.msk.msra.mxu0 %vm437_vm0, %v7305_v19  ;;  %v3814_v19 = vld [vmem:[%s8044_s3 + $0x68] sm:$0xff] }
 0x625   : > { %5327 = vmatmul.mubr.msk.f32.vlgmr.msra.gmra.mxu1 %vm437_vm0, %v2832_v37  ;;  %5329 = vmatprep.subr.mxu0 %v3816_v23 }
 0x626   : > { %5405 = vmatprep.mubr.msk.f32.mxu1 %vm5689_vm11, %v5688_v60  ;;  %5374 = vmatpush3.msra.mxu1 %v4008_v8 }
 0x627   : > { %5292 = vmatmul.mubr.msk.f32.vlgmr.msra.gmra.mxu0 %vm437_vm0, %v2831_v0  ;;  %5375 = vmatprep.subr.mxu1 %v5688_v60 }
 0x628   : > { %5330 = vmatpush3.msra.mxu0 %v3816_v23  ;;  %5361 = vmatprep.mubr.f32.mxu0 %v7802_v43 }
 0x629   : > { %5331 = vmatprep.subr.mxu0 %v3815_v12 }
 0x62a   : > { %5332 = vmatpush3.msra.mxu0 %v3815_v12 }
 0x62b   : > { %5333 = vmatprep.subr.mxu0 %v3814_v19 }
 0x62c   : > { %5334 = vmatpush3.msra.mxu0 %v3814_v19 }
 0x62d   : > { %5335 = vmatprep.subr.mxu0 %v3813_v16 }
 0x62e   : > { %5336 = vmatpush3.msra.mxu0 %v3813_v16 }
 0x62f   : > { %5337 = vmatprep.subr.mxu0 %v3812_v29 }
 0x630   : > { %5338 = vmatpush3.msra.mxu0 %v3812_v29 }
 0x631   : > { %5339 = vmatprep.subr.mxu0 %v3811_v62 }
 0x632   : > { %5340 = vmatpush3.msra.mxu0 %v3811_v62 }
 0x633   : > { %5341 = vmatprep.subr.mxu0 %v3810_v20 }
 0x634   : > { %5342 = vmatpush3.msra.mxu0 %v3810_v20 }
 0x635   : > { %5343 = vmatprep.subr.mxu0 %v3809_v40 }
 0x636   : > { %5344 = vmatpush3.msra.mxu0 %v3809_v40 }
 0x637   : > { %5345 = vmatprep.subr.mxu0 %v3808_v53 }
 0x638   : > { %5346 = vmatpush3.msra.mxu0 %v3808_v53 }
 0x639   : > { %5347 = vmatprep.subr.mxu0 %v3807_v57 }
 0x63a   : > { %5348 = vmatpush3.msra.mxu0 %v3807_v57 }
 0x63b   : > { %5349 = vmatprep.subr.mxu0 %v3806_v22 }
 0x63c   : > { %5350 = vmatpush3.msra.mxu0 %v3806_v22 }
 0x63d   : > { %5351 = vmatprep.subr.mxu0 %v3805_v44 }
 0x63e   : > { %v3313_v50 = vpop.f32.mrf.mxu1  ;;  %5352 = vmatpush3.msra.mxu0 %v3805_v44 }
 0x63f   : > { %5353 = vmatprep.subr.mxu0 %v3804_v30 }
 0x640   : > { %v3192_v35 = vpop.f32.mrf.mxu0  ;;  %v5188_v41 = vpop.f32.mrf.mxu1  ;;  %5354 = vmatpush3.msra.mxu0 %v3804_v30 }
 0x641   : > { %5355 = vmatprep.subr.mxu0 %v3803_v63 }
 0x642   : > { %v5153_v54 = vpop.f32.mrf.mxu0  ;;  %5356 = vmatpush3.msra.mxu0 %v3803_v63 }
 0x643   : > { %5357 = vmatprep.subr.mxu0 %v3802_v4 }
 0x644   : > { %5358 = vmatpush3.msra.mxu0 %v3802_v4 }
 0x645   : > { %5359 = vmatprep.subr.mxu0 %v3801_v21 }
 0x646   : > { %5360 = vmatpush3.msra.mxu0 %v3801_v21 }
 0x647   : > { %5362 = vmatmul.mubr.f32.vlgmr.msra.gmra.mxu0 %v7797_v31  ;;  %v4007_v31 = vld [vmem:[%s8045_s4 + $0x70] sm:$0xff] }
 0x648   : > { %5364 = vmatprep.mubr.f32.mxu0 %v3192_v35  ;;  %5376 = vmatpush3.msra.mxu1 %v4007_v31 }
 0x649   : > { %5377 = vmatprep.subr.mxu1 %v5688_v60 }
 0x64a   : > { %5378 = vmatpush3.msra.mxu1 %v4006_v52 }
 0x64b   : > { %5365 = vmatmul.mubr.f32.gmra.mxu0 %v3313_v50  ;;  %5379 = vmatprep.subr.mxu1 %v5688_v60 }
 0x64c   : > { %5380 = vmatpush3.msra.mxu1 %v4005_v39 }
 0x64d   : > { %5381 = vmatprep.subr.mxu1 %v5688_v60 }
 0x64e   : > { %5382 = vmatpush3.msra.mxu1 %v4004_v17 }
 0x64f   : > { %5383 = vmatprep.subr.mxu1 %v5688_v60 }
 0x650   : > { %5384 = vmatpush3.msra.mxu1 %v4003_v28 }
 0x651   : > { %5385 = vmatprep.subr.mxu1 %v5688_v60 }
 0x652   : > { %5386 = vmatpush3.msra.mxu1 %v4002_v3 }
 0x653   : > { %5387 = vmatprep.subr.mxu1 %v5688_v60 }
 0x654   : > { %5388 = vmatpush3.msra.mxu1 %v4001_v14 }
 0x655   : > { %5389 = vmatprep.subr.mxu1 %v5688_v60 }
 0x656   : > { %5390 = vmatpush3.msra.mxu1 %v4000_v9 }
 0x657   : > { %5391 = vmatprep.subr.mxu1 %v5688_v60 }
 0x658   : > { %5392 = vmatpush3.msra.mxu1 %v3999_v55 }
 0x659   : > { %5393 = vmatprep.subr.mxu1 %v5688_v60 }
 0x65a   : > { %5394 = vmatpush3.msra.mxu1 %v3998_v51 }
 0x65b   : > { %5395 = vmatprep.subr.mxu1 %v5688_v60 }
 0x65c   : > { %5396 = vmatpush3.msra.mxu1 %v3997_v42 }
 0x65d   : > { %5397 = vmatprep.subr.mxu1 %v5688_v60 }
 0x65e   : > { %5398 = vmatpush3.msra.mxu1 %v3996_v5 }
 0x65f   : > { %5399 = vmatprep.subr.mxu1 %v5688_v60 }
 0x660   : > { %5400 = vmatpush3.msra.mxu1 %v3995_v27 }
 0x661   : > { %5401 = vmatprep.subr.mxu1 %v5688_v60 }
 0x662   : > { %5402 = vmatpush3.msra.mxu1 %v3994_v38 }
 0x663   : > { %5403 = vmatprep.subr.mxu1 %v5688_v60 }
 0x664   : > { %5404 = vmatpush3.msra.mxu1 %v3993_v13 }
 0x6a5   : > { %v3555_v6 = vpop.f32.mrf.mxu1 }
 0x6a7   : > { %v3434_v18 = vpop.f32.mrf.mxu0  ;;  %v5258_v45 = vpop.f32.mrf.mxu1 }
 0x6a8   : > { %5367 = vmatprep.mubr.f32.mxu0 %v3434_v18  ;;  %v4329_v18 = vld [vmem:[%s8047_s6] ss:$0 sm:$0xff] }
 0x6a9   : > { %v5223_v48 = vpop.f32.mrf.mxu0  ;;  %5368 = vmatmul.mubr.f32.gmra.mxu0 %v3555_v6 }
 0x6e5   : > { %v3797_v11 = vpop.f32.mrf.mxu1 }
 0x6e7   : > { %v3676_v26 = vpop.f32.mrf.mxu0  ;;  %v5328_v33 = vpop.f32.mrf.mxu1 }
 0x6e8   : > { %5370 = vmatprep.mubr.f32.mxu0 %v3676_v26 }
 0x6e9   : > { %v5293_v43 = vpop.f32.mrf.mxu0  ;;  %5371 = vmatmul.mubr.f32.gmra.mxu0 %v3797_v11 }
 0x707   : > { %v5363_v24 = vpop.f32.mrf.mxu0 }
 0x708   : > { %v3923_v1 = vmul.f32 %v5363_v24, %v8256_v7 }
 0x709   : > { %v3883_v46 = vpop.f32.mrf.mxu0 }
 0x70a   : > { %v3936_v47 = vrot.slane %v3923_v1, 4  ;;  %v3922_v61 = vmul.f32 %v8256_v7, %v3883_v46 }
 0x70b   : > { %v5366_v2 = vpop.f32.mrf.mxu0 }
 0x70c   : > { %v3925_v32 = vmul.f32 %v5366_v2, %v8256_v7  ;;  %v3937_v60 = vadd.f32 %v3936_v47, %v3923_v1  ;;  %v3930_v59 = vrot.slane %v3922_v61, 4 }
 0x70d   : > { %v3893_v36 = vpop.f32.mrf.mxu0 }
 0x70e   : > { %v3924_v58 = vmul.f32 %v8256_v7, %v3893_v36  ;;  %v3948_v37 = vrot.slane %v3925_v32, 4  ;;  %v3938_v0 = vrot.slane %v3937_v60, 2  ;;  %v3931_v12 = vadd.f32 %v3930_v59, %v3922_v61 }
 0x710   : > { %v3942_v10 = vrot.slane %v3924_v58, 4  ;;  %v3949_v29 = vadd.f32 %v3948_v37, %v3925_v32  ;;  %v3939_v20 = vadd.f32 %v3938_v0, %v3937_v60  ;;  %v3932_v40 = vrot.slane %v3931_v12, 2 }
 0x712   : > { %v3943_v15 = vadd.f32 %v3942_v10, %v3924_v58  ;;  %v3950_v22 = vrot.slane %v3949_v29, 2  ;;  %v3940_v30 = vrot.slane %v3939_v20, 1  ;;  %v3933_v50 = vadd.f32 %v3932_v40, %v3931_v12 }
 0x714   : > { %v3944_v19 = vrot.slane %v3943_v15, 2  ;;  %v3951_v41 = vadd.f32 %v3950_v22, %v3949_v29  ;;  %v3941_v54 = vadd.f32 %v3940_v30, %v3939_v20  ;;  %v3934_v21 = vrot.slane %v3933_v50, 1  ;;  %v4330_v29 = vld [vmem:[%s8048_s7] ss:$0 sm:$0xff] }
 0x716   : > { %v3945_v53 = vadd.f32 %v3944_v19, %v3943_v15  ;;  %v3952_v26 = vrot.slane %v3951_v41, 1  ;;  %v3986_v52 = vadd.f32 %v4329_v18, %v3941_v54  ;;  %v3935_v39 = vadd.f32 %v3934_v21, %v3933_v50 }
 0x718   : > { %v3946_v63 = vrot.slane %v3945_v53, 1  ;;  %v3953_v9 = vadd.f32 %v3952_v26, %v3951_v41  ;;  %v4024_v5 = vrot.slane %v3986_v52, 7  ;;  %v3985_v27 = vadd.f32 %v4329_v18, %v3935_v39 }
 0x71a   : > { %v3947_v45 = vadd.f32 %v3946_v63, %v3945_v53  ;;  %v3988_v2 = vadd.f32 %v4329_v18, %v3953_v9  ;;  %v4025_v1 = vsel %vm1766_vm2, %v4024_v5, %v3985_v27 }
 0x71c   : > { %v3987_v17 = vadd.f32 %v4329_v18, %v3947_v45  ;;  %v4028_v10 = vrot.slane %v3988_v2, 5 }
 0x71e   : > { %v4026_v38 = vrot.slane %v3987_v17, 6 }
 0x720   : > { %v4027_v58 = vsel %vm1768_vm3, %v4026_v38, %v4025_v1 }
 0x721   : > { %v4029_v59 = vsel %vm1770_vm4, %v4028_v10, %v4027_v58 }
 0x769   : > { %v5369_v56 = vpop.f32.mrf.mxu0 }
 0x76a   : > { %v3927_v25 = vmul.f32 %v5369_v56, %v8256_v7 }
 0x76b   : > { %v3903_v34 = vpop.f32.mrf.mxu0 }
 0x76c   : > { %v3926_v49 = vmul.f32 %v8256_v7, %v3903_v34  ;;  %v3960_v62 = vrot.slane %v3927_v25, 4 }
 0x76e   : > { %v3954_v23 = vrot.slane %v3926_v49, 4  ;;  %v3961_v44 = vadd.f32 %v3960_v62, %v3927_v25 }
 0x770   : > { %v3955_v16 = vadd.f32 %v3954_v23, %v3926_v49  ;;  %v3962_v4 = vrot.slane %v3961_v44, 2 }
 0x772   : > { %v3956_v57 = vrot.slane %v3955_v16, 2  ;;  %v3963_v33 = vadd.f32 %v3962_v4, %v3961_v44 }
 0x774   : > { %v3957_v35 = vadd.f32 %v3956_v57, %v3955_v16  ;;  %v3964_v55 = vrot.slane %v3963_v33, 1 }
 0x776   : > { %v3958_v48 = vrot.slane %v3957_v35, 1  ;;  %v3965_v36 = vadd.f32 %v3964_v55, %v3963_v33 }
 0x778   : > { %v3959_v28 = vadd.f32 %v3958_v48, %v3957_v35  ;;  %v3990_v49 = vadd.f32 %v4329_v18, %v3965_v36 }
 0x77a   : > { %v3989_v13 = vadd.f32 %v4329_v18, %v3959_v28  ;;  %v4032_v37 = vrot.slane %v3990_v49, 3 }
 0x77c   : > { %v4030_v34 = vrot.slane %v3989_v13, 4 }
 0x77e   : > { %v4031_v23 = vsel %vm1772_vm5, %v4030_v34, %v4029_v59 }
 0x77f   : > { %v4033_v0 = vsel %vm1774_vm6, %v4032_v37, %v4031_v23 }
 0x7a9   : > { %v5372_v6 = vpop.f32.mrf.mxu0 }
 0x7aa   : > { %v3929_v11 = vmul.f32 %v5372_v6, %v8256_v7 }
 0x7ab   : > { %v3913_v43 = vpop.f32.mrf.mxu0 }
 0x7ac   : > { %v3972_v8 = vrot.slane %v3929_v11, 4  ;;  %v3928_v31 = vmul.f32 %v8256_v7, %v3913_v43 }
 0x7ae   : > { %v3973_v3 = vadd.f32 %v3972_v8, %v3929_v11  ;;  %v3966_v14 = vrot.slane %v3928_v31, 4 }
 0x7b0   : > { %v3974_v51 = vrot.slane %v3973_v3, 2  ;;  %v3967_v42 = vadd.f32 %v3966_v14, %v3928_v31 }
 0x7b2   : > { %v3975_v24 = vadd.f32 %v3974_v51, %v3973_v3  ;;  %v3968_v46 = vrot.slane %v3967_v42, 2 }
 0x7b4   : > { %v3976_v56 = vrot.slane %v3975_v24, 1  ;;  %v3969_v7 = vadd.f32 %v3968_v46, %v3967_v42 }
 0x7b6   : > { %v3977_v47 = vadd.f32 %v3976_v56, %v3975_v24  ;;  %v3970_v61 = vrot.slane %v3969_v7, 1 }
 0x7b8   : > { %v3971_v32 = vadd.f32 %v3970_v61, %v3969_v7  ;;  %v3992_v60 = vadd.f32 %v4329_v18, %v3977_v47 }
 0x7ba   : > { %v3991_v15 = vadd.f32 %v4329_v18, %v3971_v32  ;;  %v4036_v12 = vrot.slane %v3992_v60, 1 }
 0x7bc   : > { %v4034_v25 = vrot.slane %v3991_v15, 2 }
 0x7be   : > { %v4035_v19 = vsel %vm1776_vm7, %v4034_v25, %v4033_v0 }
 0x7bf   : > { %v4037_v16 = vsel %vm1778_vm8, %v4036_v12, %v4035_v19 }
 0x7c0   : > { %5406 = vmatmul.mubr.f32.vlgmr.msra.gmra.mxu1 %v4037_v16 }
 0x880   : > { %v4105_v62 = vpop.f32.mrf.mxu1 }
 0x881   : > { %v4106_v20 = vadd.f32 %v4330_v29, %v4105_v62 }
 0x882   : > { %v5407_v40 = vpop.f32.mrf.mxu1 }
 0x883   : > { %4109 = vst [vmem:[%s301_s20] sm:$0xff] %v4106_v20 }
 0x884   : > { %5639 = shalt.err (!%p5636_p3)
}
 0x885   : > { %s5640_s17 = scalar_lea.hbm %s8006_s25, 128  ;;  %s5644_s19 = scalar_lea.hbm %s8049_s8, 256 }
 0x886   : > { %p5641_p4 = scmp.ne.s32.totalorder %s8006_s25, %s5640_s17  ;;  %p5645_p9 = scmp.lt.s32.totalorder %s8006_s25, %s8049_s8 }
 0x887   : > { %p5646_p10 = scmp.lt.s32.totalorder %s5644_s19, %s5640_s17 }
 0x888   : > { %p5642_p7 = pnand %p5641_p4, %p5775_p5 }
 0x889   : > { %p5647_p11 = por %p5646_p10, %p5645_p9 }
 0x88a   : > { %p5643_p8 = pneg %p5642_p7 }
 0x88c   : > { %p5648_p12 = pnand %p5647_p11, %p5643_p8 }
 0x88e   : > { %5651 = shalt.err (!%p5648_p12)
}
 0x88f   : > { %5408 = dma.vmem_to_hbm [thread:$0]  (%p5775_p5), %s4125_s22, 128, %s8006_s25, %s4111_s26  }
 0x890 PF: > { %p5414_p13 = scmp.ge.s32.totalorder %s5686_s30, 2  ;;  %s4136_s24 = sand.u32 1, %s5674_s27  }
 0x891   : > { %s4137_s10 = scalar_lea.sflag [#allocation3], %s4136_s24 }
 0x892   : > { %p5411_p0 = pnand %p5414_p13, %p5779_p6 }
 0x894   : > { %p5412_p1 = pneg %p5411_p0 }
 0x896   : > { %5669 = dma.done.wait (%p5412_p1), %s4137_s10, 128  }
 0x897   : > { %5671 = vsyncadd (%p5412_p1), %s4137_s10, 4294967168  ;;  %p18_p2 = scmp.ge.s32.totalorder %s5762_s11, 4   ;;  %s8257_s27 = smov %s5678_s28 }
 0x898   : > { %s8258_s28 = smov %s5682_s29  ;;  %s8259_s29 = smov %s5773_s14 }
 0x899   : > { %s8260_s30 = smov %s5762_s11  ;;  %20 = sbr.rel (!%p18_p2) target bundleno = 3 (0x3), region = 87 }
 0x89e   :  { %4142 = vsyncpa [#allocation3], 1 }
 0x89f   :  { %4144 = vsyncpa [#allocation3 + $0x1], 1 }

</bundles_post_ra>
